<compile_context>
chip_gen: v6e
topology: v6e:2x2x1
jax: 0.10.0
libtpu: 0.0.40
codegen_flags: <defaults>
</compile_context>

<pallas_src>
import functools
import math

import jax
import jax.numpy as jnp
from jax.experimental import pallas as pl
from jax.experimental.pallas import tpu as pltpu

# Flip to jnp.bfloat16 for real workloads on v5e/v6e/v7x (MXU is bf16-native);
# accumulation stays f32 via preferred_element_type.  f32 default keeps exact
# torch-f32 forward semantics for this small correctness check.
MATMUL_DTYPE = jnp.float32
LN_EPS = 1e-5


# ----------------------------------------------------------------------------
# In-kernel helpers
# ----------------------------------------------------------------------------
def _ln(x, g, b):
    mu = jnp.mean(x, axis=-1, keepdims=True)
    xc = x - mu
    var = jnp.mean(xc * xc, axis=-1, keepdims=True)
    return xc * jax.lax.rsqrt(var + LN_EPS) * g + b


def _mha(x_q, x_k, wq, bq, wk, bk, wv, bv, wo, bo, heads):
    """Multi-head cross attention with full-width projection matmuls.

    wq/wk/wv: (Din, D), wo: (D, Dq), biases (1, D)/(1, Dq).  The softmax
    scale 1/sqrt(dh) is pre-folded into wq/bq (see prepare_params), so the
    score einsum needs no extra VPU multiply.  Heads only appear as a
    reshape/transpose of the projected activations.
    """
    Lq = x_q.shape[0]
    Lk = x_k.shape[0]
    D = wq.shape[1]
    dh = D // heads
    md = MATMUL_DTYPE

    # One MXU matmul each: contraction K = Din, output N = D (full width).
    Q = jnp.dot(x_q.astype(md), wq.astype(md),
                preferred_element_type=jnp.float32) + bq          # (Lq, D)
    K = jnp.dot(x_k.astype(md), wk.astype(md),
                preferred_element_type=jnp.float32) + bk          # (Lk, D)
    V = jnp.dot(x_k.astype(md), wv.astype(md),
                preferred_element_type=jnp.float32) + bv          # (Lk, D)

    # Head split on the (small) projected activations only.
    Qh = Q.reshape(Lq, heads, dh).transpose(1, 0, 2)              # (H, Lq, dh)
    Kh = K.reshape(Lk, heads, dh).transpose(1, 0, 2)              # (H, Lk, dh)
    Vh = V.reshape(Lk, heads, dh).transpose(1, 0, 2)              # (H, Lk, dh)

    s = jnp.einsum('hqd,hkd->hqk', Qh.astype(md), Kh.astype(md),
                   preferred_element_type=jnp.float32)            # (H, Lq, Lk)
    s = s - jnp.max(s, axis=-1, keepdims=True)
    p = jnp.exp(s)
    # Intentional deviation from exact torch softmax: EUP approx reciprocal
    # (~1e-3 rel error, free bundle slot).  Use approx=False for bit-closer
    # parity.
    p = p * pl.reciprocal(jnp.sum(p, axis=-1, keepdims=True), approx=True)

    ctx = jnp.einsum('hqk,hkd->hqd', p.astype(md), Vh.astype(md),
                     preferred_element_type=jnp.float32)          # (H, Lq, dh)
    ctx = ctx.transpose(1, 0, 2).reshape(Lq, D)                   # (Lq, D)

    # Output projection: one full-depth matmul, no per-head reduction.
    return jnp.dot(ctx.astype(md), wo.astype(md),
                   preferred_element_type=jnp.float32) + bo       # (Lq, Dq)


# ----------------------------------------------------------------------------
# Fused per-layer kernel:
#   c1 = MHA(q, k1); c2 = MHA(q, k2)
#   c1o = LN(c1 + q); c2o = LN(c2 + q)               (layer LN, shared params)
#   fused = ReLU(c1o @ fw1 + c2o @ fw2 + fb)         (== Linear(concat))
#   out = LN_outer(fused)                            (module-level LN)
# ----------------------------------------------------------------------------
def _fused_layer_kernel(
        q_ref, k1_ref, k2_ref,
        wq1_ref, bq1_ref, wk1_ref, bk1_ref, wv1_ref, bv1_ref, wo1_ref, bo1_ref,
        wq2_ref, bq2_ref, wk2_ref, bk2_ref, wv2_ref, bv2_ref, wo2_ref, bo2_ref,
        lg_ref, lb_ref, fw1_ref, fw2_ref, fb_ref, og_ref, ob_ref,
        o_ref, *, heads):
    q = q_ref[0]          # (Lq, Dq)
    k1 = k1_ref[0]        # (Lk1, Dk1)
    k2 = k2_ref[0]        # (Lk2, Dk2)

    a1 = _mha(q, k1, wq1_ref[...], bq1_ref[...], wk1_ref[...], bk1_ref[...],
              wv1_ref[...], bv1_ref[...], wo1_ref[...], bo1_ref[...], heads)
    a2 = _mha(q, k2, wq2_ref[...], bq2_ref[...], wk2_ref[...], bk2_ref[...],
              wv2_ref[...], bv2_ref[...], wo2_ref[...], bo2_ref[...], heads)

    c1o = _ln(a1 + q, lg_ref[...], lb_ref[...])
    c2o = _ln(a2 + q, lg_ref[...], lb_ref[...])

    md = MATMUL_DTYPE
    fused = (jnp.dot(c1o.astype(md), fw1_ref[...].astype(md),
                     preferred_element_type=jnp.float32)
             + jnp.dot(c2o.astype(md), fw2_ref[...].astype(md),
                       preferred_element_type=jnp.float32)
             + fb_ref[...])
    fused = jnp.maximum(fused, 0.0)

    o_ref[0] = _ln(fused, og_ref[...], ob_ref[...])


# ----------------------------------------------------------------------------
# Wrapper: one pallas_call per layer, weights resident (constant index_map)
# ----------------------------------------------------------------------------
def fused_layer(q, k1, k2, lp, outer_ln_g, outer_ln_b, heads):
    B, Lq, Dq = q.shape
    _, Lk1, Dk1 = k1.shape
    _, Lk2, Dk2 = k2.shape
    assert Dq % heads == 0, "q_size must be divisible by heads"

    c1, c2 = lp["c1"], lp["c2"]
    weights = (
        c1["wq"], c1["bq"], c1["wk"], c1["bk"], c1["wv"], c1["bv"], c1["wo"], c1["bo"],
        c2["wq"], c2["bq"], c2["wk"], c2["bk"], c2["wv"], c2["bv"], c2["wo"], c2["bo"],
        lp["ln_g"], lp["ln_b"], lp["fw1"], lp["fw2"], lp["fb"],
        outer_ln_g, outer_ln_b,
    )

    def full_spec(arr):
        # Constant block index across the grid -> fetched once, never re-DMA'd.
        # TODO(synk): pipeline_mode=pl.Buffered(1) at realistic sizes to drop
        # the redundant second weight buffer (VMEM) on v7x.
        nd = arr.ndim
        return pl.BlockSpec(arr.shape, lambda b, _nd=nd: (0,) * _nd)

    in_specs = [
        pl.BlockSpec((1, Lq, Dq), lambda b: (b, 0, 0)),
        pl.BlockSpec((1, Lk1, Dk1), lambda b: (b, 0, 0)),
        pl.BlockSpec((1, Lk2, Dk2), lambda b: (b, 0, 0)),
    ] + [full_spec(w) for w in weights]

    # TODO(synk): at realistic Lq/Lk add flash-style Lk tiling (extra
    # "arbitrary" grid axis + m/l/acc scratch) and an Lq "parallel" axis so the
    # (H, Lq, Lk) score tensor never materializes and per-step VMEM is bounded.
    return pl.pallas_call(
        functools.partial(_fused_layer_kernel, heads=heads),
        out_shape=jax.ShapeDtypeStruct((B, Lq, Dq), jnp.float32),
        grid=(B,),
        in_specs=in_specs,
        out_specs=pl.BlockSpec((1, Lq, Dq), lambda b: (b, 0, 0)),
        compiler_params=pltpu.CompilerParams(
            dimension_semantics=("parallel",),
            vmem_limit_bytes=32 * 1024 * 1024),
    )(q, k1, k2, *weights)


def module_forward(q, k1, k2, params, heads, k1_mask=None, k2_mask=None):
    if k1_mask is not None or k2_mask is not None:
        # TODO(synk): key-padding-mask path not implemented in the fused kernel.
        raise NotImplementedError("key padding masks are not supported")
    for lp in params["layers"]:
        q = fused_layer(q, k1, k2, lp, params["ln_g"], params["ln_b"], heads)
    return q


# ----------------------------------------------------------------------------
# One-time host-side weight prep (hoisted out of the per-forward path):
# fold the 1/sqrt(dh) softmax scale into wq/bq so the kernel never multiplies
# the (H, Lq, Lk) score tensor.  Weights keep their natural (Din, D) layout.
# ----------------------------------------------------------------------------
def prepare_params(params, heads):
    q_size = params["ln_g"].shape[-1]
    scale = 1.0 / math.sqrt(q_size // heads)

    def _scale_q(p):
        return dict(p, wq=p["wq"] * scale, bq=p["bq"] * scale)

    return dict(
        ln_g=params["ln_g"], ln_b=params["ln_b"],
        layers=[dict(lp, c1=_scale_q(lp["c1"]), c2=_scale_q(lp["c2"]))
                for lp in params["layers"]],
    )


# ----------------------------------------------------------------------------
# Deterministic parameter init (matches torch module's shapes)
# ----------------------------------------------------------------------------
def _dense(key, din, dout, scale=0.05):
    kw, kb = jax.random.split(key)
    w = jax.random.normal(kw, (din, dout), jnp.float32) * scale
    b = jax.random.normal(kb, (1, dout), jnp.float32) * scale
    return w, b


def _cross_attn_params(key, q_size, k_size):
    ks = jax.random.split(key, 4)
    wq, bq = _dense(ks[0], q_size, q_size)
    wk, bk = _dense(ks[1], k_size, q_size)
    wv, bv = _dense(ks[2], k_size, q_size)
    wo, bo = _dense(ks[3], q_size, q_size)
    return dict(wq=wq, bq=bq, wk=wk, bk=bk, wv=wv, bv=bv, wo=wo, bo=bo)


def init_params(key, q_size, k1_size, k2_size, layers):
    params = {
        "ln_g": jnp.ones((1, q_size), jnp.float32),
        "ln_b": jnp.zeros((1, q_size), jnp.float32),
        "layers": [],
    }
    for i in range(layers):
        k_layer = jax.random.fold_in(key, i)
        k1, k2, k3 = jax.random.split(k_layer, 3)
        fw1, fb = _dense(k3, q_size, q_size)                          # first half of (2q->q)
        fw2, _ = _dense(jax.random.fold_in(k3, 7), q_size, q_size)    # second half
        params["layers"].append(dict(
            c1=_cross_attn_params(k1, q_size, k1_size),
            c2=_cross_attn_params(k2, q_size, k2_size),
            ln_g=jnp.ones((1, q_size), jnp.float32),
            ln_b=jnp.zeros((1, q_size), jnp.float32),
            fw1=fw1, fw2=fw2, fb=fb,
        ))
    return params


# ----------------------------------------------------------------------------
# Pure-JAX reference (f32, exact softmax) for correctness check
# ----------------------------------------------------------------------------
def _ref_cross_attention(q, k, p, heads):
    Q = q @ p["wq"] + p["bq"]
    K = k @ p["wk"] + p["bk"]
    V = k @ p["wv"] + p["bv"]
    B, Lq, D = Q.shape
    Lk = K.shape[1]
    dh = D // heads
    Qh = Q.reshape(B, Lq, heads, dh).transpose(0, 2, 1, 3)
    Kh = K.reshape(B, Lk, heads, dh).transpose(0, 2, 1, 3)
    Vh = V.reshape(B, Lk, heads, dh).transpose(0, 2, 1, 3)
    s = jnp.einsum("bhqd,bhkd->bhqk", Qh, Kh) / math.sqrt(dh)
    a = jax.nn.softmax(s, axis=-1)
    ctx = jnp.einsum("bhqk,bhkd->bhqd", a, Vh).transpose(0, 2, 1, 3).reshape(B, Lq, D)
    return ctx @ p["wo"] + p["bo"]


def _ref_ln(x, g, b, eps=LN_EPS):
    mu = jnp.mean(x, axis=-1, keepdims=True)
    var = jnp.mean((x - mu) ** 2, axis=-1, keepdims=True)
    return (x - mu) / jnp.sqrt(var + eps) * g + b


def _ref_forward(q, k1, k2, params, heads):
    for lp in params["layers"]:
        c1 = _ref_ln(_ref_cross_attention(q, k1, lp["c1"], heads) + q,
                     lp["ln_g"], lp["ln_b"])
        c2 = _ref_ln(_ref_cross_attention(q, k2, lp["c2"], heads) + q,
                     lp["ln_g"], lp["ln_b"])
        fused = jax.nn.relu(c1 @ lp["fw1"] + c2 @ lp["fw2"] + lp["fb"])
        q = _ref_ln(fused, params["ln_g"], params["ln_b"])
    return q


# ----------------------------------------------------------------------------
if __name__ == "__main__":
    # Small demo shapes for correctness.  Note: feature dims < 128 are not
    # lane-dense; benchmark / deploy with D >= 128 (multiples of 128).
    B, Lq, Lk = 2, 8, 8
    q_size, k1_size, k2_size = 32, 16, 24
    heads, layers = 8, 2

    key = jax.random.PRNGKey(0)
    kq, kk1, kk2, kp = jax.random.split(key, 4)
    q = jax.random.normal(kq, (B, Lq, q_size), jnp.float32)
    k1 = jax.random.normal(kk1, (B, Lk, k1_size), jnp.float32)
    k2 = jax.random.normal(kk2, (B, Lk, k2_size), jnp.float32)

    params = init_params(kp, q_size, k1_size, k2_size, layers)
    prepped = prepare_params(params, heads)   # one-time host-side prep

    fwd = jax.jit(functools.partial(module_forward, heads=heads))
    out = jax.block_until_ready(fwd(q, k1, k2, prepped))

    ref = jax.block_until_ready(_ref_forward(q, k1, k2, params, heads))
    assert out.shape == (B, Lq, q_size)
    # 2e-3 tolerance leaves headroom for the EUP approx-reciprocal in softmax.
    assert jnp.allclose(out, ref, rtol=2e-3, atol=2e-3), "mismatch vs JAX reference"

    print("KERNEL_OK")
</pallas_src>

<mosaic_0001>
module attributes {stable_mosaic.version = 11 : i64} {
  func.func @_fused_layer_kernel(%arg0: i32, %arg1: memref<1x8x32xf32, #tpu.memory_space<vmem>>, %arg2: memref<1x8x16xf32, #tpu.memory_space<vmem>>, %arg3: memref<1x8x24xf32, #tpu.memory_space<vmem>>, %arg4: memref<32x32xf32, #tpu.memory_space<vmem>>, %arg5: memref<1x32xf32, #tpu.memory_space<vmem>>, %arg6: memref<16x32xf32, #tpu.memory_space<vmem>>, %arg7: memref<1x32xf32, #tpu.memory_space<vmem>>, %arg8: memref<16x32xf32, #tpu.memory_space<vmem>>, %arg9: memref<1x32xf32, #tpu.memory_space<vmem>>, %arg10: memref<32x32xf32, #tpu.memory_space<vmem>>, %arg11: memref<1x32xf32, #tpu.memory_space<vmem>>, %arg12: memref<32x32xf32, #tpu.memory_space<vmem>>, %arg13: memref<1x32xf32, #tpu.memory_space<vmem>>, %arg14: memref<24x32xf32, #tpu.memory_space<vmem>>, %arg15: memref<1x32xf32, #tpu.memory_space<vmem>>, %arg16: memref<24x32xf32, #tpu.memory_space<vmem>>, %arg17: memref<1x32xf32, #tpu.memory_space<vmem>>, %arg18: memref<32x32xf32, #tpu.memory_space<vmem>>, %arg19: memref<1x32xf32, #tpu.memory_space<vmem>>, %arg20: memref<1x32xf32, #tpu.memory_space<vmem>>, %arg21: memref<1x32xf32, #tpu.memory_space<vmem>>, %arg22: memref<32x32xf32, #tpu.memory_space<vmem>>, %arg23: memref<32x32xf32, #tpu.memory_space<vmem>>, %arg24: memref<1x32xf32, #tpu.memory_space<vmem>>, %arg25: memref<1x32xf32, #tpu.memory_space<vmem>>, %arg26: memref<1x32xf32, #tpu.memory_space<vmem>>, %arg27: memref<1x8x32xf32, #tpu.memory_space<vmem>>) attributes {dimension_semantics = [#tpu.dimension_semantics<parallel>], iteration_bounds = array<i64: 2>, scalar_prefetch = 0 : i64, scratch_operands = 0 : i64, tpu.core_type = #tpu.core_type<tc>, window_params = [{transform_indices = @transform_0, window_bounds = array<i64: 1, 8, 32>}, {transform_indices = @transform_1, window_bounds = array<i64: 1, 8, 16>}, {transform_indices = @transform_2, window_bounds = array<i64: 1, 8, 24>}, {pipeline_mode = #tpu.pipeline_mode<synchronous>, transform_indices = @transform_3, window_bounds = array<i64: 32, 32>}, {pipeline_mode = #tpu.pipeline_mode<synchronous>, transform_indices = @transform_4, window_bounds = array<i64: 1, 32>}, {pipeline_mode = #tpu.pipeline_mode<synchronous>, transform_indices = @transform_5, window_bounds = array<i64: 16, 32>}, {pipeline_mode = #tpu.pipeline_mode<synchronous>, transform_indices = @transform_6, window_bounds = array<i64: 1, 32>}, {pipeline_mode = #tpu.pipeline_mode<synchronous>, transform_indices = @transform_7, window_bounds = array<i64: 16, 32>}, {pipeline_mode = #tpu.pipeline_mode<synchronous>, transform_indices = @transform_8, window_bounds = array<i64: 1, 32>}, {pipeline_mode = #tpu.pipeline_mode<synchronous>, transform_indices = @transform_9, window_bounds = array<i64: 32, 32>}, {pipeline_mode = #tpu.pipeline_mode<synchronous>, transform_indices = @transform_10, window_bounds = array<i64: 1, 32>}, {pipeline_mode = #tpu.pipeline_mode<synchronous>, transform_indices = @transform_11, window_bounds = array<i64: 32, 32>}, {pipeline_mode = #tpu.pipeline_mode<synchronous>, transform_indices = @transform_12, window_bounds = array<i64: 1, 32>}, {pipeline_mode = #tpu.pipeline_mode<synchronous>, transform_indices = @transform_13, window_bounds = array<i64: 24, 32>}, {pipeline_mode = #tpu.pipeline_mode<synchronous>, transform_indices = @transform_14, window_bounds = array<i64: 1, 32>}, {pipeline_mode = #tpu.pipeline_mode<synchronous>, transform_indices = @transform_15, window_bounds = array<i64: 24, 32>}, {pipeline_mode = #tpu.pipeline_mode<synchronous>, transform_indices = @transform_16, window_bounds = array<i64: 1, 32>}, {pipeline_mode = #tpu.pipeline_mode<synchronous>, transform_indices = @transform_17, window_bounds = array<i64: 32, 32>}, {pipeline_mode = #tpu.pipeline_mode<synchronous>, transform_indices = @transform_18, window_bounds = array<i64: 1, 32>}, {pipeline_mode = #tpu.pipeline_mode<synchronous>, transform_indices = @transform_19, window_bounds = array<i64: 1, 32>}, {pipeline_mode = #tpu.pipeline_mode<synchronous>, transform_indices = @transform_20, window_bounds = array<i64: 1, 32>}, {pipeline_mode = #tpu.pipeline_mode<synchronous>, transform_indices = @transform_21, window_bounds = array<i64: 32, 32>}, {pipeline_mode = #tpu.pipeline_mode<synchronous>, transform_indices = @transform_22, window_bounds = array<i64: 32, 32>}, {pipeline_mode = #tpu.pipeline_mode<synchronous>, transform_indices = @transform_23, window_bounds = array<i64: 1, 32>}, {pipeline_mode = #tpu.pipeline_mode<synchronous>, transform_indices = @transform_24, window_bounds = array<i64: 1, 32>}, {pipeline_mode = #tpu.pipeline_mode<synchronous>, transform_indices = @transform_25, window_bounds = array<i64: 1, 32>}, {transform_indices = @transform_26, window_bounds = array<i64: 1, 8, 32>}]} {
    %c0 = arith.constant 0 : index
    %c0_0 = arith.constant 0 : index
    %c0_1 = arith.constant 0 : index
    %0 = vector.load %arg1[%c0, %c0_0, %c0_1] : memref<1x8x32xf32, #tpu.memory_space<vmem>>, vector<1x8x32xf32>
    %1 = vector.shape_cast %0 : vector<1x8x32xf32> to vector<8x32xf32>
    %c0_2 = arith.constant 0 : index
    %c0_3 = arith.constant 0 : index
    %c0_4 = arith.constant 0 : index
    %2 = vector.load %arg2[%c0_2, %c0_3, %c0_4] : memref<1x8x16xf32, #tpu.memory_space<vmem>>, vector<1x8x16xf32>
    %3 = vector.shape_cast %2 : vector<1x8x16xf32> to vector<8x16xf32>
    %c0_5 = arith.constant 0 : index
    %c0_6 = arith.constant 0 : index
    %c0_7 = arith.constant 0 : index
    %4 = vector.load %arg3[%c0_5, %c0_6, %c0_7] : memref<1x8x24xf32, #tpu.memory_space<vmem>>, vector<1x8x24xf32>
    %5 = vector.shape_cast %4 : vector<1x8x24xf32> to vector<8x24xf32>
    %c0_8 = arith.constant 0 : index
    %c0_9 = arith.constant 0 : index
    %6 = vector.load %arg4[%c0_8, %c0_9] : memref<32x32xf32, #tpu.memory_space<vmem>>, vector<32x32xf32>
    %c0_10 = arith.constant 0 : index
    %c0_11 = arith.constant 0 : index
    %7 = vector.load %arg5[%c0_10, %c0_11] : memref<1x32xf32, #tpu.memory_space<vmem>>, vector<1x32xf32>
    %c0_12 = arith.constant 0 : index
    %c0_13 = arith.constant 0 : index
    %8 = vector.load %arg6[%c0_12, %c0_13] : memref<16x32xf32, #tpu.memory_space<vmem>>, vector<16x32xf32>
    %c0_14 = arith.constant 0 : index
    %c0_15 = arith.constant 0 : index
    %9 = vector.load %arg7[%c0_14, %c0_15] : memref<1x32xf32, #tpu.memory_space<vmem>>, vector<1x32xf32>
    %c0_16 = arith.constant 0 : index
    %c0_17 = arith.constant 0 : index
    %10 = vector.load %arg8[%c0_16, %c0_17] : memref<16x32xf32, #tpu.memory_space<vmem>>, vector<16x32xf32>
    %c0_18 = arith.constant 0 : index
    %c0_19 = arith.constant 0 : index
    %11 = vector.load %arg9[%c0_18, %c0_19] : memref<1x32xf32, #tpu.memory_space<vmem>>, vector<1x32xf32>
    %c0_20 = arith.constant 0 : index
    %c0_21 = arith.constant 0 : index
    %12 = vector.load %arg10[%c0_20, %c0_21] : memref<32x32xf32, #tpu.memory_space<vmem>>, vector<32x32xf32>
    %c0_22 = arith.constant 0 : index
    %c0_23 = arith.constant 0 : index
    %13 = vector.load %arg11[%c0_22, %c0_23] : memref<1x32xf32, #tpu.memory_space<vmem>>, vector<1x32xf32>
    %cst = arith.constant dense<0.000000e+00> : vector<8x32xf32>
    %14 = tpu.matmul %1, %6, %cst {dimension_numbers = #tpu.dot_dimension_numbers<[1], [0], [0], [1], [0, 0, 1, 1], [], []>} : vector<8x32xf32>, vector<32x32xf32>, vector<8x32xf32> -> vector<8x32xf32>
    %15 = vector.broadcast %7 : vector<1x32xf32> to vector<8x32xf32>
    %16 = arith.addf %14, %15 : vector<8x32xf32>
    %cst_24 = arith.constant dense<0.000000e+00> : vector<8x32xf32>
    %17 = tpu.matmul %3, %8, %cst_24 {dimension_numbers = #tpu.dot_dimension_numbers<[1], [0], [0], [1], [0, 0, 1, 1], [], []>} : vector<8x16xf32>, vector<16x32xf32>, vector<8x32xf32> -> vector<8x32xf32>
    %18 = vector.broadcast %9 : vector<1x32xf32> to vector<8x32xf32>
    %19 = arith.addf %17, %18 : vector<8x32xf32>
    %cst_25 = arith.constant dense<0.000000e+00> : vector<8x32xf32>
    %20 = tpu.matmul %3, %10, %cst_25 {dimension_numbers = #tpu.dot_dimension_numbers<[1], [0], [0], [1], [0, 0, 1, 1], [], []>} : vector<8x16xf32>, vector<16x32xf32>, vector<8x32xf32> -> vector<8x32xf32>
    %21 = vector.broadcast %11 : vector<1x32xf32> to vector<8x32xf32>
    %22 = arith.addf %20, %21 : vector<8x32xf32>
    %23 = vector.shape_cast %16 : vector<8x32xf32> to vector<8x8x4xf32>
    %24 = tpu.transpose %23, [1, 0, 2] : vector<8x8x4xf32> -> vector<8x8x4xf32>
    %25 = vector.shape_cast %19 : vector<8x32xf32> to vector<8x8x4xf32>
    %26 = tpu.transpose %25, [1, 0, 2] : vector<8x8x4xf32> -> vector<8x8x4xf32>
    %27 = vector.shape_cast %22 : vector<8x32xf32> to vector<8x8x4xf32>
    %28 = tpu.transpose %27, [1, 0, 2] : vector<8x8x4xf32> -> vector<8x8x4xf32>
    "tpu.trace_start"() <{level = 10 : i32, message = "hqd,hkd->hqk"}> : () -> ()
    %cst_26 = arith.constant dense<0.000000e+00> : vector<8x8x8xf32>
    %29 = tpu.matmul %24, %26, %cst_26 {dimension_numbers = #tpu.dot_dimension_numbers<[2], [2], [1], [1], [0, 0, 0, 1, 1, 1], [0], [0]>} : vector<8x8x4xf32>, vector<8x8x4xf32>, vector<8x8x8xf32> -> vector<8x8x8xf32>
    "tpu.trace_stop"() : () -> ()
    %cst_27 = arith.constant dense<0xFF800000> : vector<8x8xf32>
    %30 = vector.multi_reduction <maximumf>, %29, %cst_27 [2] : vector<8x8x8xf32> to vector<8x8xf32>
    %31 = vector.shape_cast %30 : vector<8x8xf32> to vector<8x8x1xf32>
    %32 = vector.broadcast %31 : vector<8x8x1xf32> to vector<8x8x8xf32>
    %33 = arith.subf %29, %32 : vector<8x8x8xf32>
    %34 = math.exp %33 : vector<8x8x8xf32>
    %cst_28 = arith.constant dense<0.000000e+00> : vector<8x8xf32>
    %35 = vector.multi_reduction <add>, %34, %cst_28 [2] : vector<8x8x8xf32> to vector<8x8xf32>
    %36 = vector.shape_cast %35 : vector<8x8xf32> to vector<8x8x1xf32>
    %37 = tpu.reciprocal %36 {approx = true} : vector<8x8x1xf32> -> vector<8x8x1xf32>
    %38 = vector.broadcast %37 : vector<8x8x1xf32> to vector<8x8x8xf32>
    %39 = arith.mulf %34, %38 : vector<8x8x8xf32>
    "tpu.trace_start"() <{level = 10 : i32, message = "hqk,hkd->hqd"}> : () -> ()
    %cst_29 = arith.constant dense<0.000000e+00> : vector<8x8x4xf32>
    %40 = tpu.matmul %39, %28, %cst_29 {dimension_numbers = #tpu.dot_dimension_numbers<[2], [1], [1], [2], [0, 0, 0, 1, 1, 2], [0], [0]>} : vector<8x8x8xf32>, vector<8x8x4xf32>, vector<8x8x4xf32> -> vector<8x8x4xf32>
    "tpu.trace_stop"() : () -> ()
    %41 = tpu.transpose %40, [1, 0, 2] : vector<8x8x4xf32> -> vector<8x8x4xf32>
    %42 = vector.shape_cast %41 : vector<8x8x4xf32> to vector<8x32xf32>
    %cst_30 = arith.constant dense<0.000000e+00> : vector<8x32xf32>
    %43 = tpu.matmul %42, %12, %cst_30 {dimension_numbers = #tpu.dot_dimension_numbers<[1], [0], [0], [1], [0, 0, 1, 1], [], []>} : vector<8x32xf32>, vector<32x32xf32>, vector<8x32xf32> -> vector<8x32xf32>
    %44 = vector.broadcast %13 : vector<1x32xf32> to vector<8x32xf32>
    %45 = arith.addf %43, %44 : vector<8x32xf32>
    %c0_31 = arith.constant 0 : index
    %c0_32 = arith.constant 0 : index
    %46 = vector.load %arg12[%c0_31, %c0_32] : memref<32x32xf32, #tpu.memory_space<vmem>>, vector<32x32xf32>
    %c0_33 = arith.constant 0 : index
    %c0_34 = arith.constant 0 : index
    %47 = vector.load %arg13[%c0_33, %c0_34] : memref<1x32xf32, #tpu.memory_space<vmem>>, vector<1x32xf32>
    %c0_35 = arith.constant 0 : index
    %c0_36 = arith.constant 0 : index
    %48 = vector.load %arg14[%c0_35, %c0_36] : memref<24x32xf32, #tpu.memory_space<vmem>>, vector<24x32xf32>
    %c0_37 = arith.constant 0 : index
    %c0_38 = arith.constant 0 : index
    %49 = vector.load %arg15[%c0_37, %c0_38] : memref<1x32xf32, #tpu.memory_space<vmem>>, vector<1x32xf32>
    %c0_39 = arith.constant 0 : index
    %c0_40 = arith.constant 0 : index
    %50 = vector.load %arg16[%c0_39, %c0_40] : memref<24x32xf32, #tpu.memory_space<vmem>>, vector<24x32xf32>
    %c0_41 = arith.constant 0 : index
    %c0_42 = arith.constant 0 : index
    %51 = vector.load %arg17[%c0_41, %c0_42] : memref<1x32xf32, #tpu.memory_space<vmem>>, vector<1x32xf32>
    %c0_43 = arith.constant 0 : index
    %c0_44 = arith.constant 0 : index
    %52 = vector.load %arg18[%c0_43, %c0_44] : memref<32x32xf32, #tpu.memory_space<vmem>>, vector<32x32xf32>
    %c0_45 = arith.constant 0 : index
    %c0_46 = arith.constant 0 : index
    %53 = vector.load %arg19[%c0_45, %c0_46] : memref<1x32xf32, #tpu.memory_space<vmem>>, vector<1x32xf32>
    %cst_47 = arith.constant dense<0.000000e+00> : vector<8x32xf32>
    %54 = tpu.matmul %1, %46, %cst_47 {dimension_numbers = #tpu.dot_dimension_numbers<[1], [0], [0], [1], [0, 0, 1, 1], [], []>} : vector<8x32xf32>, vector<32x32xf32>, vector<8x32xf32> -> vector<8x32xf32>
    %55 = vector.broadcast %47 : vector<1x32xf32> to vector<8x32xf32>
    %56 = arith.addf %54, %55 : vector<8x32xf32>
    %cst_48 = arith.constant dense<0.000000e+00> : vector<8x32xf32>
    %57 = tpu.matmul %5, %48, %cst_48 {dimension_numbers = #tpu.dot_dimension_numbers<[1], [0], [0], [1], [0, 0, 1, 1], [], []>} : vector<8x24xf32>, vector<24x32xf32>, vector<8x32xf32> -> vector<8x32xf32>
    %58 = vector.broadcast %49 : vector<1x32xf32> to vector<8x32xf32>
    %59 = arith.addf %57, %58 : vector<8x32xf32>
    %cst_49 = arith.constant dense<0.000000e+00> : vector<8x32xf32>
    %60 = tpu.matmul %5, %50, %cst_49 {dimension_numbers = #tpu.dot_dimension_numbers<[1], [0], [0], [1], [0, 0, 1, 1], [], []>} : vector<8x24xf32>, vector<24x32xf32>, vector<8x32xf32> -> vector<8x32xf32>
    %61 = vector.broadcast %51 : vector<1x32xf32> to vector<8x32xf32>
    %62 = arith.addf %60, %61 : vector<8x32xf32>
    %63 = vector.shape_cast %56 : vector<8x32xf32> to vector<8x8x4xf32>
    %64 = tpu.transpose %63, [1, 0, 2] : vector<8x8x4xf32> -> vector<8x8x4xf32>
    %65 = vector.shape_cast %59 : vector<8x32xf32> to vector<8x8x4xf32>
    %66 = tpu.transpose %65, [1, 0, 2] : vector<8x8x4xf32> -> vector<8x8x4xf32>
    %67 = vector.shape_cast %62 : vector<8x32xf32> to vector<8x8x4xf32>
    %68 = tpu.transpose %67, [1, 0, 2] : vector<8x8x4xf32> -> vector<8x8x4xf32>
    "tpu.trace_start"() <{level = 10 : i32, message = "hqd,hkd->hqk"}> : () -> ()
    %cst_50 = arith.constant dense<0.000000e+00> : vector<8x8x8xf32>
    %69 = tpu.matmul %64, %66, %cst_50 {dimension_numbers = #tpu.dot_dimension_numbers<[2], [2], [1], [1], [0, 0, 0, 1, 1, 1], [0], [0]>} : vector<8x8x4xf32>, vector<8x8x4xf32>, vector<8x8x8xf32> -> vector<8x8x8xf32>
    "tpu.trace_stop"() : () -> ()
    %cst_51 = arith.constant dense<0xFF800000> : vector<8x8xf32>
    %70 = vector.multi_reduction <maximumf>, %69, %cst_51 [2] : vector<8x8x8xf32> to vector<8x8xf32>
    %71 = vector.shape_cast %70 : vector<8x8xf32> to vector<8x8x1xf32>
    %72 = vector.broadcast %71 : vector<8x8x1xf32> to vector<8x8x8xf32>
    %73 = arith.subf %69, %72 : vector<8x8x8xf32>
    %74 = math.exp %73 : vector<8x8x8xf32>
    %cst_52 = arith.constant dense<0.000000e+00> : vector<8x8xf32>
    %75 = vector.multi_reduction <add>, %74, %cst_52 [2] : vector<8x8x8xf32> to vector<8x8xf32>
    %76 = vector.shape_cast %75 : vector<8x8xf32> to vector<8x8x1xf32>
    %77 = tpu.reciprocal %76 {approx = true} : vector<8x8x1xf32> -> vector<8x8x1xf32>
    %78 = vector.broadcast %77 : vector<8x8x1xf32> to vector<8x8x8xf32>
    %79 = arith.mulf %74, %78 : vector<8x8x8xf32>
    "tpu.trace_start"() <{level = 10 : i32, message = "hqk,hkd->hqd"}> : () -> ()
    %cst_53 = arith.constant dense<0.000000e+00> : vector<8x8x4xf32>
    %80 = tpu.matmul %79, %68, %cst_53 {dimension_numbers = #tpu.dot_dimension_numbers<[2], [1], [1], [2], [0, 0, 0, 1, 1, 2], [0], [0]>} : vector<8x8x8xf32>, vector<8x8x4xf32>, vector<8x8x4xf32> -> vector<8x8x4xf32>
    "tpu.trace_stop"() : () -> ()
    %81 = tpu.transpose %80, [1, 0, 2] : vector<8x8x4xf32> -> vector<8x8x4xf32>
    %82 = vector.shape_cast %81 : vector<8x8x4xf32> to vector<8x32xf32>
    %cst_54 = arith.constant dense<0.000000e+00> : vector<8x32xf32>
    %83 = tpu.matmul %82, %52, %cst_54 {dimension_numbers = #tpu.dot_dimension_numbers<[1], [0], [0], [1], [0, 0, 1, 1], [], []>} : vector<8x32xf32>, vector<32x32xf32>, vector<8x32xf32> -> vector<8x32xf32>
    %84 = vector.broadcast %53 : vector<1x32xf32> to vector<8x32xf32>
    %85 = arith.addf %83, %84 : vector<8x32xf32>
    %86 = arith.addf %45, %1 : vector<8x32xf32>
    %c0_55 = arith.constant 0 : index
    %c0_56 = arith.constant 0 : index
    %87 = vector.load %arg20[%c0_55, %c0_56] : memref<1x32xf32, #tpu.memory_space<vmem>>, vector<1x32xf32>
    %c0_57 = arith.constant 0 : index
    %c0_58 = arith.constant 0 : index
    %88 = vector.load %arg21[%c0_57, %c0_58] : memref<1x32xf32, #tpu.memory_space<vmem>>, vector<1x32xf32>
    %cst_59 = arith.constant dense<0.000000e+00> : vector<8xf32>
    %89 = vector.multi_reduction <add>, %86, %cst_59 [1] : vector<8x32xf32> to vector<8xf32>
    %90 = vector.shape_cast %89 : vector<8xf32> to vector<8x1xf32>
    %cst_60 = arith.constant 3.200000e+01 : f32
    %91 = vector.broadcast %cst_60 : f32 to vector<8x1xf32>
    %92 = arith.divf %90, %91 : vector<8x1xf32>
    %93 = vector.broadcast %92 : vector<8x1xf32> to vector<8x32xf32>
    %94 = arith.subf %86, %93 : vector<8x32xf32>
    %95 = arith.mulf %94, %94 : vector<8x32xf32>
    %cst_61 = arith.constant dense<0.000000e+00> : vector<8xf32>
    %96 = vector.multi_reduction <add>, %95, %cst_61 [1] : vector<8x32xf32> to vector<8xf32>
    %97 = vector.shape_cast %96 : vector<8xf32> to vector<8x1xf32>
    %cst_62 = arith.constant 3.200000e+01 : f32
    %98 = vector.broadcast %cst_62 : f32 to vector<8x1xf32>
    %99 = arith.divf %97, %98 : vector<8x1xf32>
    %cst_63 = arith.constant 9.99999974E-6 : f32
    %100 = vector.broadcast %cst_63 : f32 to vector<8x1xf32>
    %101 = arith.addf %99, %100 : vector<8x1xf32>
    %102 = math.rsqrt %101 : vector<8x1xf32>
    %103 = vector.broadcast %102 : vector<8x1xf32> to vector<8x32xf32>
    %104 = arith.mulf %94, %103 : vector<8x32xf32>
    %105 = vector.broadcast %87 : vector<1x32xf32> to vector<8x32xf32>
    %106 = arith.mulf %104, %105 : vector<8x32xf32>
    %107 = vector.broadcast %88 : vector<1x32xf32> to vector<8x32xf32>
    %108 = arith.addf %106, %107 : vector<8x32xf32>
    %109 = arith.addf %85, %1 : vector<8x32xf32>
    %c0_64 = arith.constant 0 : index
    %c0_65 = arith.constant 0 : index
    %110 = vector.load %arg20[%c0_64, %c0_65] : memref<1x32xf32, #tpu.memory_space<vmem>>, vector<1x32xf32>
    %c0_66 = arith.constant 0 : index
    %c0_67 = arith.constant 0 : index
    %111 = vector.load %arg21[%c0_66, %c0_67] : memref<1x32xf32, #tpu.memory_space<vmem>>, vector<1x32xf32>
    %cst_68 = arith.constant dense<0.000000e+00> : vector<8xf32>
    %112 = vector.multi_reduction <add>, %109, %cst_68 [1] : vector<8x32xf32> to vector<8xf32>
    %113 = vector.shape_cast %112 : vector<8xf32> to vector<8x1xf32>
    %cst_69 = arith.constant 3.200000e+01 : f32
    %114 = vector.broadcast %cst_69 : f32 to vector<8x1xf32>
    %115 = arith.divf %113, %114 : vector<8x1xf32>
    %116 = vector.broadcast %115 : vector<8x1xf32> to vector<8x32xf32>
    %117 = arith.subf %109, %116 : vector<8x32xf32>
    %118 = arith.mulf %117, %117 : vector<8x32xf32>
    %cst_70 = arith.constant dense<0.000000e+00> : vector<8xf32>
    %119 = vector.multi_reduction <add>, %118, %cst_70 [1] : vector<8x32xf32> to vector<8xf32>
    %120 = vector.shape_cast %119 : vector<8xf32> to vector<8x1xf32>
    %cst_71 = arith.constant 3.200000e+01 : f32
    %121 = vector.broadcast %cst_71 : f32 to vector<8x1xf32>
    %122 = arith.divf %120, %121 : vector<8x1xf32>
    %cst_72 = arith.constant 9.99999974E-6 : f32
    %123 = vector.broadcast %cst_72 : f32 to vector<8x1xf32>
    %124 = arith.addf %122, %123 : vector<8x1xf32>
    %125 = math.rsqrt %124 : vector<8x1xf32>
    %126 = vector.broadcast %125 : vector<8x1xf32> to vector<8x32xf32>
    %127 = arith.mulf %117, %126 : vector<8x32xf32>
    %128 = vector.broadcast %110 : vector<1x32xf32> to vector<8x32xf32>
    %129 = arith.mulf %127, %128 : vector<8x32xf32>
    %130 = vector.broadcast %111 : vector<1x32xf32> to vector<8x32xf32>
    %131 = arith.addf %129, %130 : vector<8x32xf32>
    %c0_73 = arith.constant 0 : index
    %c0_74 = arith.constant 0 : index
    %132 = vector.load %arg22[%c0_73, %c0_74] : memref<32x32xf32, #tpu.memory_space<vmem>>, vector<32x32xf32>
    %cst_75 = arith.constant dense<0.000000e+00> : vector<8x32xf32>
    %133 = tpu.matmul %108, %132, %cst_75 {dimension_numbers = #tpu.dot_dimension_numbers<[1], [0], [0], [1], [0, 0, 1, 1], [], []>} : vector<8x32xf32>, vector<32x32xf32>, vector<8x32xf32> -> vector<8x32xf32>
    %c0_76 = arith.constant 0 : index
    %c0_77 = arith.constant 0 : index
    %134 = vector.load %arg23[%c0_76, %c0_77] : memref<32x32xf32, #tpu.memory_space<vmem>>, vector<32x32xf32>
    %cst_78 = arith.constant dense<0.000000e+00> : vector<8x32xf32>
    %135 = tpu.matmul %131, %134, %cst_78 {dimension_numbers = #tpu.dot_dimension_numbers<[1], [0], [0], [1], [0, 0, 1, 1], [], []>} : vector<8x32xf32>, vector<32x32xf32>, vector<8x32xf32> -> vector<8x32xf32>
    %136 = arith.addf %133, %135 : vector<8x32xf32>
    %c0_79 = arith.constant 0 : index
    %c0_80 = arith.constant 0 : index
    %137 = vector.load %arg24[%c0_79, %c0_80] : memref<1x32xf32, #tpu.memory_space<vmem>>, vector<1x32xf32>
    %138 = vector.broadcast %137 : vector<1x32xf32> to vector<8x32xf32>
    %139 = arith.addf %136, %138 : vector<8x32xf32>
    %cst_81 = arith.constant 0.000000e+00 : f32
    %140 = vector.broadcast %cst_81 : f32 to vector<8x32xf32>
    %141 = arith.maximumf %139, %140 : vector<8x32xf32>
    %c0_82 = arith.constant 0 : index
    %c0_83 = arith.constant 0 : index
    %142 = vector.load %arg25[%c0_82, %c0_83] : memref<1x32xf32, #tpu.memory_space<vmem>>, vector<1x32xf32>
    %c0_84 = arith.constant 0 : index
    %c0_85 = arith.constant 0 : index
    %143 = vector.load %arg26[%c0_84, %c0_85] : memref<1x32xf32, #tpu.memory_space<vmem>>, vector<1x32xf32>
    %cst_86 = arith.constant dense<0.000000e+00> : vector<8xf32>
    %144 = vector.multi_reduction <add>, %141, %cst_86 [1] : vector<8x32xf32> to vector<8xf32>
    %145 = vector.shape_cast %144 : vector<8xf32> to vector<8x1xf32>
    %cst_87 = arith.constant 3.200000e+01 : f32
    %146 = vector.broadcast %cst_87 : f32 to vector<8x1xf32>
    %147 = arith.divf %145, %146 : vector<8x1xf32>
    %148 = vector.broadcast %147 : vector<8x1xf32> to vector<8x32xf32>
    %149 = arith.subf %141, %148 : vector<8x32xf32>
    %150 = arith.mulf %149, %149 : vector<8x32xf32>
    %cst_88 = arith.constant dense<0.000000e+00> : vector<8xf32>
    %151 = vector.multi_reduction <add>, %150, %cst_88 [1] : vector<8x32xf32> to vector<8xf32>
    %152 = vector.shape_cast %151 : vector<8xf32> to vector<8x1xf32>
    %cst_89 = arith.constant 3.200000e+01 : f32
    %153 = vector.broadcast %cst_89 : f32 to vector<8x1xf32>
    %154 = arith.divf %152, %153 : vector<8x1xf32>
    %cst_90 = arith.constant 9.99999974E-6 : f32
    %155 = vector.broadcast %cst_90 : f32 to vector<8x1xf32>
    %156 = arith.addf %154, %155 : vector<8x1xf32>
    %157 = math.rsqrt %156 : vector<8x1xf32>
    %158 = vector.broadcast %157 : vector<8x1xf32> to vector<8x32xf32>
    %159 = arith.mulf %149, %158 : vector<8x32xf32>
    %160 = vector.broadcast %142 : vector<1x32xf32> to vector<8x32xf32>
    %161 = arith.mulf %159, %160 : vector<8x32xf32>
    %162 = vector.broadcast %143 : vector<1x32xf32> to vector<8x32xf32>
    %163 = arith.addf %161, %162 : vector<8x32xf32>
    %c0_91 = arith.constant 0 : index
    %c0_92 = arith.constant 0 : index
    %c0_93 = arith.constant 0 : index
    %164 = vector.load %arg27[%c0_91, %c0_92, %c0_93] : memref<1x8x32xf32, #tpu.memory_space<vmem>>, vector<1x8x32xf32>
    %165 = vector.shape_cast %164 : vector<1x8x32xf32> to vector<8x32xf32>
    %166 = vector.shape_cast %163 : vector<8x32xf32> to vector<1x8x32xf32>
    tpu.vector_store %arg27[%c0_91, %c0_92, %c0_93], %166 {strides = array<i32>} : memref<1x8x32xf32, #tpu.memory_space<vmem>>, vector<1x8x32xf32>,
    return
  }
  func.func @transform_0(%arg0: i32) -> (i32, i32, i32) {
    %c0_i32 = arith.constant 0 : i32
    %c0_i32_0 = arith.constant 0 : i32
    %c0_i32_1 = arith.constant 0 : i32
    return %arg0, %c0_i32, %c0_i32_0 : i32, i32, i32
  }
  func.func @transform_1(%arg0: i32) -> (i32, i32, i32) {
    %c0_i32 = arith.constant 0 : i32
    %c0_i32_0 = arith.constant 0 : i32
    %c0_i32_1 = arith.constant 0 : i32
    return %arg0, %c0_i32, %c0_i32_0 : i32, i32, i32
  }
  func.func @transform_2(%arg0: i32) -> (i32, i32, i32) {
    %c0_i32 = arith.constant 0 : i32
    %c0_i32_0 = arith.constant 0 : i32
    %c0_i32_1 = arith.constant 0 : i32
    return %arg0, %c0_i32, %c0_i32_0 : i32, i32, i32
  }
  func.func @transform_3(%arg0: i32) -> (i32, i32) {
    %c0_i32 = arith.constant 0 : i32
    %c0_i32_0 = arith.constant 0 : i32
    %c0_i32_1 = arith.constant 0 : i32
    return %c0_i32, %c0_i32_0 : i32, i32
  }
  func.func @transform_4(%arg0: i32) -> (i32, i32) {
    %c0_i32 = arith.constant 0 : i32
    %c0_i32_0 = arith.constant 0 : i32
    %c0_i32_1 = arith.constant 0 : i32
    return %c0_i32, %c0_i32_0 : i32, i32
  }
  func.func @transform_5(%arg0: i32) -> (i32, i32) {
    %c0_i32 = arith.constant 0 : i32
    %c0_i32_0 = arith.constant 0 : i32
    %c0_i32_1 = arith.constant 0 : i32
    return %c0_i32, %c0_i32_0 : i32, i32
  }
  func.func @transform_6(%arg0: i32) -> (i32, i32) {
    %c0_i32 = arith.constant 0 : i32
    %c0_i32_0 = arith.constant 0 : i32
    %c0_i32_1 = arith.constant 0 : i32
    return %c0_i32, %c0_i32_0 : i32, i32
  }
  func.func @transform_7(%arg0: i32) -> (i32, i32) {
    %c0_i32 = arith.constant 0 : i32
    %c0_i32_0 = arith.constant 0 : i32
    %c0_i32_1 = arith.constant 0 : i32
    return %c0_i32, %c0_i32_0 : i32, i32
  }
  func.func @transform_8(%arg0: i32) -> (i32, i32) {
    %c0_i32 = arith.constant 0 : i32
    %c0_i32_0 = arith.constant 0 : i32
    %c0_i32_1 = arith.constant 0 : i32
    return %c0_i32, %c0_i32_0 : i32, i32
  }
  func.func @transform_9(%arg0: i32) -> (i32, i32) {
    %c0_i32 = arith.constant 0 : i32
    %c0_i32_0 = arith.constant 0 : i32
    %c0_i32_1 = arith.constant 0 : i32
    return %c0_i32, %c0_i32_0 : i32, i32
  }
  func.func @transform_10(%arg0: i32) -> (i32, i32) {
    %c0_i32 = arith.constant 0 : i32
    %c0_i32_0 = arith.constant 0 : i32
    %c0_i32_1 = arith.constant 0 : i32
    return %c0_i32, %c0_i32_0 : i32, i32
  }
  func.func @transform_11(%arg0: i32) -> (i32, i32) {
    %c0_i32 = arith.constant 0 : i32
    %c0_i32_0 = arith.constant 0 : i32
    %c0_i32_1 = arith.constant 0 : i32
    return %c0_i32, %c0_i32_0 : i32, i32
  }
  func.func @transform_12(%arg0: i32) -> (i32, i32) {
    %c0_i32 = arith.constant 0 : i32
    %c0_i32_0 = arith.constant 0 : i32
    %c0_i32_1 = arith.constant 0 : i32
    return %c0_i32, %c0_i32_0 : i32, i32
  }
  func.func @transform_13(%arg0: i32) -> (i32, i32) {
    %c0_i32 = arith.constant 0 : i32
    %c0_i32_0 = arith.constant 0 : i32
    %c0_i32_1 = arith.constant 0 : i32
    return %c0_i32, %c0_i32_0 : i32, i32
  }
  func.func @transform_14(%arg0: i32) -> (i32, i32) {
    %c0_i32 = arith.constant 0 : i32
    %c0_i32_0 = arith.constant 0 : i32
    %c0_i32_1 = arith.constant 0 : i32
    return %c0_i32, %c0_i32_0 : i32, i32
  }
  func.func @transform_15(%arg0: i32) -> (i32, i32) {
    %c0_i32 = arith.constant 0 : i32
    %c0_i32_0 = arith.constant 0 : i32
    %c0_i32_1 = arith.constant 0 : i32
    return %c0_i32, %c0_i32_0 : i32, i32
  }
  func.func @transform_16(%arg0: i32) -> (i32, i32) {
    %c0_i32 = arith.constant 0 : i32
    %c0_i32_0 = arith.constant 0 : i32
    %c0_i32_1 = arith.constant 0 : i32
    return %c0_i32, %c0_i32_0 : i32, i32
  }
  func.func @transform_17(%arg0: i32) -> (i32, i32) {
    %c0_i32 = arith.constant 0 : i32
    %c0_i32_0 = arith.constant 0 : i32
    %c0_i32_1 = arith.constant 0 : i32
    return %c0_i32, %c0_i32_0 : i32, i32
  }
  func.func @transform_18(%arg0: i32) -> (i32, i32) {
    %c0_i32 = arith.constant 0 : i32
    %c0_i32_0 = arith.constant 0 : i32
    %c0_i32_1 = arith.constant 0 : i32
    return %c0_i32, %c0_i32_0 : i32, i32
  }
  func.func @transform_19(%arg0: i32) -> (i32, i32) {
    %c0_i32 = arith.constant 0 : i32
    %c0_i32_0 = arith.constant 0 : i32
    %c0_i32_1 = arith.constant 0 : i32
    return %c0_i32, %c0_i32_0 : i32, i32
  }
  func.func @transform_20(%arg0: i32) -> (i32, i32) {
    %c0_i32 = arith.constant 0 : i32
    %c0_i32_0 = arith.constant 0 : i32
    %c0_i32_1 = arith.constant 0 : i32
    return %c0_i32, %c0_i32_0 : i32, i32
  }
  func.func @transform_21(%arg0: i32) -> (i32, i32) {
    %c0_i32 = arith.constant 0 : i32
    %c0_i32_0 = arith.constant 0 : i32
    %c0_i32_1 = arith.constant 0 : i32
    return %c0_i32, %c0_i32_0 : i32, i32
  }
  func.func @transform_22(%arg0: i32) -> (i32, i32) {
    %c0_i32 = arith.constant 0 : i32
    %c0_i32_0 = arith.constant 0 : i32
    %c0_i32_1 = arith.constant 0 : i32
    return %c0_i32, %c0_i32_0 : i32, i32
  }
  func.func @transform_23(%arg0: i32) -> (i32, i32) {
    %c0_i32 = arith.constant 0 : i32
    %c0_i32_0 = arith.constant 0 : i32
    %c0_i32_1 = arith.constant 0 : i32
    return %c0_i32, %c0_i32_0 : i32, i32
  }
  func.func @transform_24(%arg0: i32) -> (i32, i32) {
    %c0_i32 = arith.constant 0 : i32
    %c0_i32_0 = arith.constant 0 : i32
    %c0_i32_1 = arith.constant 0 : i32
    return %c0_i32, %c0_i32_0 : i32, i32
  }
  func.func @transform_25(%arg0: i32) -> (i32, i32) {
    %c0_i32 = arith.constant 0 : i32
    %c0_i32_0 = arith.constant 0 : i32
    %c0_i32_1 = arith.constant 0 : i32
    return %c0_i32, %c0_i32_0 : i32, i32
  }
  func.func @transform_26(%arg0: i32) -> (i32, i32, i32) {
    %c0_i32 = arith.constant 0 : i32
    %c0_i32_0 = arith.constant 0 : i32
    %c0_i32_1 = arith.constant 0 : i32
    return %arg0, %c0_i32, %c0_i32_0 : i32, i32, i32
  }
}

module attributes {stable_mosaic.version = 11 : i64} {
  func.func @_fused_layer_kernel(%arg0: i32, %arg1: memref<1x8x32xf32, #tpu.memory_space<vmem>>, %arg2: memref<1x8x16xf32, #tpu.memory_space<vmem>>, %arg3: memref<1x8x24xf32, #tpu.memory_space<vmem>>, %arg4: memref<32x32xf32, #tpu.memory_space<vmem>>, %arg5: memref<1x32xf32, #tpu.memory_space<vmem>>, %arg6: memref<16x32xf32, #tpu.memory_space<vmem>>, %arg7: memref<1x32xf32, #tpu.memory_space<vmem>>, %arg8: memref<16x32xf32, #tpu.memory_space<vmem>>, %arg9: memref<1x32xf32, #tpu.memory_space<vmem>>, %arg10: memref<32x32xf32, #tpu.memory_space<vmem>>, %arg11: memref<1x32xf32, #tpu.memory_space<vmem>>, %arg12: memref<32x32xf32, #tpu.memory_space<vmem>>, %arg13: memref<1x32xf32, #tpu.memory_space<vmem>>, %arg14: memref<24x32xf32, #tpu.memory_space<vmem>>, %arg15: memref<1x32xf32, #tpu.memory_space<vmem>>, %arg16: memref<24x32xf32, #tpu.memory_space<vmem>>, %arg17: memref<1x32xf32, #tpu.memory_space<vmem>>, %arg18: memref<32x32xf32, #tpu.memory_space<vmem>>, %arg19: memref<1x32xf32, #tpu.memory_space<vmem>>, %arg20: memref<1x32xf32, #tpu.memory_space<vmem>>, %arg21: memref<1x32xf32, #tpu.memory_space<vmem>>, %arg22: memref<32x32xf32, #tpu.memory_space<vmem>>, %arg23: memref<32x32xf32, #tpu.memory_space<vmem>>, %arg24: memref<1x32xf32, #tpu.memory_space<vmem>>, %arg25: memref<1x32xf32, #tpu.memory_space<vmem>>, %arg26: memref<1x32xf32, #tpu.memory_space<vmem>>, %arg27: memref<1x8x32xf32, #tpu.memory_space<vmem>>) attributes {dimension_semantics = [#tpu.dimension_semantics<parallel>], iteration_bounds = array<i64: 2>, scalar_prefetch = 0 : i64, scratch_operands = 0 : i64, tpu.core_type = #tpu.core_type<tc>, window_params = [{transform_indices = @transform_0, window_bounds = array<i64: 1, 8, 32>}, {transform_indices = @transform_1, window_bounds = array<i64: 1, 8, 16>}, {transform_indices = @transform_2, window_bounds = array<i64: 1, 8, 24>}, {pipeline_mode = #tpu.pipeline_mode<synchronous>, transform_indices = @transform_3, window_bounds = array<i64: 32, 32>}, {pipeline_mode = #tpu.pipeline_mode<synchronous>, transform_indices = @transform_4, window_bounds = array<i64: 1, 32>}, {pipeline_mode = #tpu.pipeline_mode<synchronous>, transform_indices = @transform_5, window_bounds = array<i64: 16, 32>}, {pipeline_mode = #tpu.pipeline_mode<synchronous>, transform_indices = @transform_6, window_bounds = array<i64: 1, 32>}, {pipeline_mode = #tpu.pipeline_mode<synchronous>, transform_indices = @transform_7, window_bounds = array<i64: 16, 32>}, {pipeline_mode = #tpu.pipeline_mode<synchronous>, transform_indices = @transform_8, window_bounds = array<i64: 1, 32>}, {pipeline_mode = #tpu.pipeline_mode<synchronous>, transform_indices = @transform_9, window_bounds = array<i64: 32, 32>}, {pipeline_mode = #tpu.pipeline_mode<synchronous>, transform_indices = @transform_10, window_bounds = array<i64: 1, 32>}, {pipeline_mode = #tpu.pipeline_mode<synchronous>, transform_indices = @transform_11, window_bounds = array<i64: 32, 32>}, {pipeline_mode = #tpu.pipeline_mode<synchronous>, transform_indices = @transform_12, window_bounds = array<i64: 1, 32>}, {pipeline_mode = #tpu.pipeline_mode<synchronous>, transform_indices = @transform_13, window_bounds = array<i64: 24, 32>}, {pipeline_mode = #tpu.pipeline_mode<synchronous>, transform_indices = @transform_14, window_bounds = array<i64: 1, 32>}, {pipeline_mode = #tpu.pipeline_mode<synchronous>, transform_indices = @transform_15, window_bounds = array<i64: 24, 32>}, {pipeline_mode = #tpu.pipeline_mode<synchronous>, transform_indices = @transform_16, window_bounds = array<i64: 1, 32>}, {pipeline_mode = #tpu.pipeline_mode<synchronous>, transform_indices = @transform_17, window_bounds = array<i64: 32, 32>}, {pipeline_mode = #tpu.pipeline_mode<synchronous>, transform_indices = @transform_18, window_bounds = array<i64: 1, 32>}, {pipeline_mode = #tpu.pipeline_mode<synchronous>, transform_indices = @transform_19, window_bounds = array<i64: 1, 32>}, {pipeline_mode = #tpu.pipeline_mode<synchronous>, transform_indices = @transform_20, window_bounds = array<i64: 1, 32>}, {pipeline_mode = #tpu.pipeline_mode<synchronous>, transform_indices = @transform_21, window_bounds = array<i64: 32, 32>}, {pipeline_mode = #tpu.pipeline_mode<synchronous>, transform_indices = @transform_22, window_bounds = array<i64: 32, 32>}, {pipeline_mode = #tpu.pipeline_mode<synchronous>, transform_indices = @transform_23, window_bounds = array<i64: 1, 32>}, {pipeline_mode = #tpu.pipeline_mode<synchronous>, transform_indices = @transform_24, window_bounds = array<i64: 1, 32>}, {pipeline_mode = #tpu.pipeline_mode<synchronous>, transform_indices = @transform_25, window_bounds = array<i64: 1, 32>}, {transform_indices = @transform_26, window_bounds = array<i64: 1, 8, 32>}]} {
    %c0 = arith.constant 0 : index
    %c0_0 = arith.constant 0 : index
    %c0_1 = arith.constant 0 : index
    %0 = vector.load %arg1[%c0, %c0_0, %c0_1] : memref<1x8x32xf32, #tpu.memory_space<vmem>>, vector<1x8x32xf32>
    %1 = vector.shape_cast %0 : vector<1x8x32xf32> to vector<8x32xf32>
    %c0_2 = arith.constant 0 : index
    %c0_3 = arith.constant 0 : index
    %c0_4 = arith.constant 0 : index
    %2 = vector.load %arg2[%c0_2, %c0_3, %c0_4] : memref<1x8x16xf32, #tpu.memory_space<vmem>>, vector<1x8x16xf32>
    %3 = vector.shape_cast %2 : vector<1x8x16xf32> to vector<8x16xf32>
    %c0_5 = arith.constant 0 : index
    %c0_6 = arith.constant 0 : index
    %c0_7 = arith.constant 0 : index
    %4 = vector.load %arg3[%c0_5, %c0_6, %c0_7] : memref<1x8x24xf32, #tpu.memory_space<vmem>>, vector<1x8x24xf32>
    %5 = vector.shape_cast %4 : vector<1x8x24xf32> to vector<8x24xf32>
    %c0_8 = arith.constant 0 : index
    %c0_9 = arith.constant 0 : index
    %6 = vector.load %arg4[%c0_8, %c0_9] : memref<32x32xf32, #tpu.memory_space<vmem>>, vector<32x32xf32>
    %c0_10 = arith.constant 0 : index
    %c0_11 = arith.constant 0 : index
    %7 = vector.load %arg5[%c0_10, %c0_11] : memref<1x32xf32, #tpu.memory_space<vmem>>, vector<1x32xf32>
    %c0_12 = arith.constant 0 : index
    %c0_13 = arith.constant 0 : index
    %8 = vector.load %arg6[%c0_12, %c0_13] : memref<16x32xf32, #tpu.memory_space<vmem>>, vector<16x32xf32>
    %c0_14 = arith.constant 0 : index
    %c0_15 = arith.constant 0 : index
    %9 = vector.load %arg7[%c0_14, %c0_15] : memref<1x32xf32, #tpu.memory_space<vmem>>, vector<1x32xf32>
    %c0_16 = arith.constant 0 : index
    %c0_17 = arith.constant 0 : index
    %10 = vector.load %arg8[%c0_16, %c0_17] : memref<16x32xf32, #tpu.memory_space<vmem>>, vector<16x32xf32>
    %c0_18 = arith.constant 0 : index
    %c0_19 = arith.constant 0 : index
    %11 = vector.load %arg9[%c0_18, %c0_19] : memref<1x32xf32, #tpu.memory_space<vmem>>, vector<1x32xf32>
    %c0_20 = arith.constant 0 : index
    %c0_21 = arith.constant 0 : index
    %12 = vector.load %arg10[%c0_20, %c0_21] : memref<32x32xf32, #tpu.memory_space<vmem>>, vector<32x32xf32>
    %c0_22 = arith.constant 0 : index
    %c0_23 = arith.constant 0 : index
    %13 = vector.load %arg11[%c0_22, %c0_23] : memref<1x32xf32, #tpu.memory_space<vmem>>, vector<1x32xf32>
    %cst = arith.constant dense<0.000000e+00> : vector<8x32xf32>
    %14 = tpu.matmul %1, %6, %cst {dimension_numbers = #tpu.dot_dimension_numbers<[1], [0], [0], [1], [0, 0, 1, 1], [], []>} : vector<8x32xf32>, vector<32x32xf32>, vector<8x32xf32> -> vector<8x32xf32>
    %15 = vector.broadcast %7 : vector<1x32xf32> to vector<8x32xf32>
    %16 = arith.addf %14, %15 : vector<8x32xf32>
    %cst_24 = arith.constant dense<0.000000e+00> : vector<8x32xf32>
    %17 = tpu.matmul %3, %8, %cst_24 {dimension_numbers = #tpu.dot_dimension_numbers<[1], [0], [0], [1], [0, 0, 1, 1], [], []>} : vector<8x16xf32>, vector<16x32xf32>, vector<8x32xf32> -> vector<8x32xf32>
    %18 = vector.broadcast %9 : vector<1x32xf32> to vector<8x32xf32>
    %19 = arith.addf %17, %18 : vector<8x32xf32>
    %cst_25 = arith.constant dense<0.000000e+00> : vector<8x32xf32>
    %20 = tpu.matmul %3, %10, %cst_25 {dimension_numbers = #tpu.dot_dimension_numbers<[1], [0], [0], [1], [0, 0, 1, 1], [], []>} : vector<8x16xf32>, vector<16x32xf32>, vector<8x32xf32> -> vector<8x32xf32>
    %21 = vector.broadcast %11 : vector<1x32xf32> to vector<8x32xf32>
    %22 = arith.addf %20, %21 : vector<8x32xf32>
    %23 = vector.shape_cast %16 : vector<8x32xf32> to vector<8x8x4xf32>
    %24 = tpu.transpose %23, [1, 0, 2] : vector<8x8x4xf32> -> vector<8x8x4xf32>
    %25 = vector.shape_cast %19 : vector<8x32xf32> to vector<8x8x4xf32>
    %26 = tpu.transpose %25, [1, 0, 2] : vector<8x8x4xf32> -> vector<8x8x4xf32>
    %27 = vector.shape_cast %22 : vector<8x32xf32> to vector<8x8x4xf32>
    %28 = tpu.transpose %27, [1, 0, 2] : vector<8x8x4xf32> -> vector<8x8x4xf32>
    "tpu.trace_start"() <{level = 10 : i32, message = "hqd,hkd->hqk"}> : () -> ()
    %cst_26 = arith.constant dense<0.000000e+00> : vector<8x8x8xf32>
    %29 = tpu.matmul %24, %26, %cst_26 {dimension_numbers = #tpu.dot_dimension_numbers<[2], [2], [1], [1], [0, 0, 0, 1, 1, 1], [0], [0]>} : vector<8x8x4xf32>, vector<8x8x4xf32>, vector<8x8x8xf32> -> vector<8x8x8xf32>
    "tpu.trace_stop"() : () -> ()
    %cst_27 = arith.constant dense<0xFF800000> : vector<8x8xf32>
    %30 = vector.multi_reduction <maximumf>, %29, %cst_27 [2] : vector<8x8x8xf32> to vector<8x8xf32>
    %31 = vector.shape_cast %30 : vector<8x8xf32> to vector<8x8x1xf32>
    %32 = vector.broadcast %31 : vector<8x8x1xf32> to vector<8x8x8xf32>
    %33 = arith.subf %29, %32 : vector<8x8x8xf32>
    %34 = math.exp %33 : vector<8x8x8xf32>
    %cst_28 = arith.constant dense<0.000000e+00> : vector<8x8xf32>
    %35 = vector.multi_reduction <add>, %34, %cst_28 [2] : vector<8x8x8xf32> to vector<8x8xf32>
    %36 = vector.shape_cast %35 : vector<8x8xf32> to vector<8x8x1xf32>
    %37 = tpu.reciprocal %36 {approx = true} : vector<8x8x1xf32> -> vector<8x8x1xf32>
    %38 = vector.broadcast %37 : vector<8x8x1xf32> to vector<8x8x8xf32>
    %39 = arith.mulf %34, %38 : vector<8x8x8xf32>
    "tpu.trace_start"() <{level = 10 : i32, message = "hqk,hkd->hqd"}> : () -> ()
    %cst_29 = arith.constant dense<0.000000e+00> : vector<8x8x4xf32>
    %40 = tpu.matmul %39, %28, %cst_29 {dimension_numbers = #tpu.dot_dimension_numbers<[2], [1], [1], [2], [0, 0, 0, 1, 1, 2], [0], [0]>} : vector<8x8x8xf32>, vector<8x8x4xf32>, vector<8x8x4xf32> -> vector<8x8x4xf32>
    "tpu.trace_stop"() : () -> ()
    %41 = tpu.transpose %40, [1, 0, 2] : vector<8x8x4xf32> -> vector<8x8x4xf32>
    %42 = vector.shape_cast %41 : vector<8x8x4xf32> to vector<8x32xf32>
    %cst_30 = arith.constant dense<0.000000e+00> : vector<8x32xf32>
    %43 = tpu.matmul %42, %12, %cst_30 {dimension_numbers = #tpu.dot_dimension_numbers<[1], [0], [0], [1], [0, 0, 1, 1], [], []>} : vector<8x32xf32>, vector<32x32xf32>, vector<8x32xf32> -> vector<8x32xf32>
    %44 = vector.broadcast %13 : vector<1x32xf32> to vector<8x32xf32>
    %45 = arith.addf %43, %44 : vector<8x32xf32>
    %c0_31 = arith.constant 0 : index
    %c0_32 = arith.constant 0 : index
    %46 = vector.load %arg12[%c0_31, %c0_32] : memref<32x32xf32, #tpu.memory_space<vmem>>, vector<32x32xf32>
    %c0_33 = arith.constant 0 : index
    %c0_34 = arith.constant 0 : index
    %47 = vector.load %arg13[%c0_33, %c0_34] : memref<1x32xf32, #tpu.memory_space<vmem>>, vector<1x32xf32>
    %c0_35 = arith.constant 0 : index
    %c0_36 = arith.constant 0 : index
    %48 = vector.load %arg14[%c0_35, %c0_36] : memref<24x32xf32, #tpu.memory_space<vmem>>, vector<24x32xf32>
    %c0_37 = arith.constant 0 : index
    %c0_38 = arith.constant 0 : index
    %49 = vector.load %arg15[%c0_37, %c0_38] : memref<1x32xf32, #tpu.memory_space<vmem>>, vector<1x32xf32>
    %c0_39 = arith.constant 0 : index
    %c0_40 = arith.constant 0 : index
    %50 = vector.load %arg16[%c0_39, %c0_40] : memref<24x32xf32, #tpu.memory_space<vmem>>, vector<24x32xf32>
    %c0_41 = arith.constant 0 : index
    %c0_42 = arith.constant 0 : index
    %51 = vector.load %arg17[%c0_41, %c0_42] : memref<1x32xf32, #tpu.memory_space<vmem>>, vector<1x32xf32>
    %c0_43 = arith.constant 0 : index
    %c0_44 = arith.constant 0 : index
    %52 = vector.load %arg18[%c0_43, %c0_44] : memref<32x32xf32, #tpu.memory_space<vmem>>, vector<32x32xf32>
    %c0_45 = arith.constant 0 : index
    %c0_46 = arith.constant 0 : index
    %53 = vector.load %arg19[%c0_45, %c0_46] : memref<1x32xf32, #tpu.memory_space<vmem>>, vector<1x32xf32>
    %cst_47 = arith.constant dense<0.000000e+00> : vector<8x32xf32>
    %54 = tpu.matmul %1, %46, %cst_47 {dimension_numbers = #tpu.dot_dimension_numbers<[1], [0], [0], [1], [0, 0, 1, 1], [], []>} : vector<8x32xf32>, vector<32x32xf32>, vector<8x32xf32> -> vector<8x32xf32>
    %55 = vector.broadcast %47 : vector<1x32xf32> to vector<8x32xf32>
    %56 = arith.addf %54, %55 : vector<8x32xf32>
    %cst_48 = arith.constant dense<0.000000e+00> : vector<8x32xf32>
    %57 = tpu.matmul %5, %48, %cst_48 {dimension_numbers = #tpu.dot_dimension_numbers<[1], [0], [0], [1], [0, 0, 1, 1], [], []>} : vector<8x24xf32>, vector<24x32xf32>, vector<8x32xf32> -> vector<8x32xf32>
    %58 = vector.broadcast %49 : vector<1x32xf32> to vector<8x32xf32>
    %59 = arith.addf %57, %58 : vector<8x32xf32>
    %cst_49 = arith.constant dense<0.000000e+00> : vector<8x32xf32>
    %60 = tpu.matmul %5, %50, %cst_49 {dimension_numbers = #tpu.dot_dimension_numbers<[1], [0], [0], [1], [0, 0, 1, 1], [], []>} : vector<8x24xf32>, vector<24x32xf32>, vector<8x32xf32> -> vector<8x32xf32>
    %61 = vector.broadcast %51 : vector<1x32xf32> to vector<8x32xf32>
    %62 = arith.addf %60, %61 : vector<8x32xf32>
    %63 = vector.shape_cast %56 : vector<8x32xf32> to vector<8x8x4xf32>
    %64 = tpu.transpose %63, [1, 0, 2] : vector<8x8x4xf32> -> vector<8x8x4xf32>
    %65 = vector.shape_cast %59 : vector<8x32xf32> to vector<8x8x4xf32>
    %66 = tpu.transpose %65, [1, 0, 2] : vector<8x8x4xf32> -> vector<8x8x4xf32>
    %67 = vector.shape_cast %62 : vector<8x32xf32> to vector<8x8x4xf32>
    %68 = tpu.transpose %67, [1, 0, 2] : vector<8x8x4xf32> -> vector<8x8x4xf32>
    "tpu.trace_start"() <{level = 10 : i32, message = "hqd,hkd->hqk"}> : () -> ()
    %cst_50 = arith.constant dense<0.000000e+00> : vector<8x8x8xf32>
    %69 = tpu.matmul %64, %66, %cst_50 {dimension_numbers = #tpu.dot_dimension_numbers<[2], [2], [1], [1], [0, 0, 0, 1, 1, 1], [0], [0]>} : vector<8x8x4xf32>, vector<8x8x4xf32>, vector<8x8x8xf32> -> vector<8x8x8xf32>
    "tpu.trace_stop"() : () -> ()
    %cst_51 = arith.constant dense<0xFF800000> : vector<8x8xf32>
    %70 = vector.multi_reduction <maximumf>, %69, %cst_51 [2] : vector<8x8x8xf32> to vector<8x8xf32>
    %71 = vector.shape_cast %70 : vector<8x8xf32> to vector<8x8x1xf32>
    %72 = vector.broadcast %71 : vector<8x8x1xf32> to vector<8x8x8xf32>
    %73 = arith.subf %69, %72 : vector<8x8x8xf32>
    %74 = math.exp %73 : vector<8x8x8xf32>
    %cst_52 = arith.constant dense<0.000000e+00> : vector<8x8xf32>
    %75 = vector.multi_reduction <add>, %74, %cst_52 [2] : vector<8x8x8xf32> to vector<8x8xf32>
    %76 = vector.shape_cast %75 : vector<8x8xf32> to vector<8x8x1xf32>
    %77 = tpu.reciprocal %76 {approx = true} : vector<8x8x1xf32> -> vector<8x8x1xf32>
    %78 = vector.broadcast %77 : vector<8x8x1xf32> to vector<8x8x8xf32>
    %79 = arith.mulf %74, %78 : vector<8x8x8xf32>
    "tpu.trace_start"() <{level = 10 : i32, message = "hqk,hkd->hqd"}> : () -> ()
    %cst_53 = arith.constant dense<0.000000e+00> : vector<8x8x4xf32>
    %80 = tpu.matmul %79, %68, %cst_53 {dimension_numbers = #tpu.dot_dimension_numbers<[2], [1], [1], [2], [0, 0, 0, 1, 1, 2], [0], [0]>} : vector<8x8x8xf32>, vector<8x8x4xf32>, vector<8x8x4xf32> -> vector<8x8x4xf32>
    "tpu.trace_stop"() : () -> ()
    %81 = tpu.transpose %80, [1, 0, 2] : vector<8x8x4xf32> -> vector<8x8x4xf32>
    %82 = vector.shape_cast %81 : vector<8x8x4xf32> to vector<8x32xf32>
    %cst_54 = arith.constant dense<0.000000e+00> : vector<8x32xf32>
    %83 = tpu.matmul %82, %52, %cst_54 {dimension_numbers = #tpu.dot_dimension_numbers<[1], [0], [0], [1], [0, 0, 1, 1], [], []>} : vector<8x32xf32>, vector<32x32xf32>, vector<8x32xf32> -> vector<8x32xf32>
    %84 = vector.broadcast %53 : vector<1x32xf32> to vector<8x32xf32>
    %85 = arith.addf %83, %84 : vector<8x32xf32>
    %86 = arith.addf %45, %1 : vector<8x32xf32>
    %c0_55 = arith.constant 0 : index
    %c0_56 = arith.constant 0 : index
    %87 = vector.load %arg20[%c0_55, %c0_56] : memref<1x32xf32, #tpu.memory_space<vmem>>, vector<1x32xf32>
    %c0_57 = arith.constant 0 : index
    %c0_58 = arith.constant 0 : index
    %88 = vector.load %arg21[%c0_57, %c0_58] : memref<1x32xf32, #tpu.memory_space<vmem>>, vector<1x32xf32>
    %cst_59 = arith.constant dense<0.000000e+00> : vector<8xf32>
    %89 = vector.multi_reduction <add>, %86, %cst_59 [1] : vector<8x32xf32> to vector<8xf32>
    %90 = vector.shape_cast %89 : vector<8xf32> to vector<8x1xf32>
    %cst_60 = arith.constant 3.200000e+01 : f32
    %91 = vector.broadcast %cst_60 : f32 to vector<8x1xf32>
    %92 = arith.divf %90, %91 : vector<8x1xf32>
    %93 = vector.broadcast %92 : vector<8x1xf32> to vector<8x32xf32>
    %94 = arith.subf %86, %93 : vector<8x32xf32>
    %95 = arith.mulf %94, %94 : vector<8x32xf32>
    %cst_61 = arith.constant dense<0.000000e+00> : vector<8xf32>
    %96 = vector.multi_reduction <add>, %95, %cst_61 [1] : vector<8x32xf32> to vector<8xf32>
    %97 = vector.shape_cast %96 : vector<8xf32> to vector<8x1xf32>
    %cst_62 = arith.constant 3.200000e+01 : f32
    %98 = vector.broadcast %cst_62 : f32 to vector<8x1xf32>
    %99 = arith.divf %97, %98 : vector<8x1xf32>
    %cst_63 = arith.constant 9.99999974E-6 : f32
    %100 = vector.broadcast %cst_63 : f32 to vector<8x1xf32>
    %101 = arith.addf %99, %100 : vector<8x1xf32>
    %102 = math.rsqrt %101 : vector<8x1xf32>
    %103 = vector.broadcast %102 : vector<8x1xf32> to vector<8x32xf32>
    %104 = arith.mulf %94, %103 : vector<8x32xf32>
    %105 = vector.broadcast %87 : vector<1x32xf32> to vector<8x32xf32>
    %106 = arith.mulf %104, %105 : vector<8x32xf32>
    %107 = vector.broadcast %88 : vector<1x32xf32> to vector<8x32xf32>
    %108 = arith.addf %106, %107 : vector<8x32xf32>
    %109 = arith.addf %85, %1 : vector<8x32xf32>
    %c0_64 = arith.constant 0 : index
    %c0_65 = arith.constant 0 : index
    %110 = vector.load %arg20[%c0_64, %c0_65] : memref<1x32xf32, #tpu.memory_space<vmem>>, vector<1x32xf32>
    %c0_66 = arith.constant 0 : index
    %c0_67 = arith.constant 0 : index
    %111 = vector.load %arg21[%c0_66, %c0_67] : memref<1x32xf32, #tpu.memory_space<vmem>>, vector<1x32xf32>
    %cst_68 = arith.constant dense<0.000000e+00> : vector<8xf32>
    %112 = vector.multi_reduction <add>, %109, %cst_68 [1] : vector<8x32xf32> to vector<8xf32>
    %113 = vector.shape_cast %112 : vector<8xf32> to vector<8x1xf32>
    %cst_69 = arith.constant 3.200000e+01 : f32
    %114 = vector.broadcast %cst_69 : f32 to vector<8x1xf32>
    %115 = arith.divf %113, %114 : vector<8x1xf32>
    %116 = vector.broadcast %115 : vector<8x1xf32> to vector<8x32xf32>
    %117 = arith.subf %109, %116 : vector<8x32xf32>
    %118 = arith.mulf %117, %117 : vector<8x32xf32>
    %cst_70 = arith.constant dense<0.000000e+00> : vector<8xf32>
    %119 = vector.multi_reduction <add>, %118, %cst_70 [1] : vector<8x32xf32> to vector<8xf32>
    %120 = vector.shape_cast %119 : vector<8xf32> to vector<8x1xf32>
    %cst_71 = arith.constant 3.200000e+01 : f32
    %121 = vector.broadcast %cst_71 : f32 to vector<8x1xf32>
    %122 = arith.divf %120, %121 : vector<8x1xf32>
    %cst_72 = arith.constant 9.99999974E-6 : f32
    %123 = vector.broadcast %cst_72 : f32 to vector<8x1xf32>
    %124 = arith.addf %122, %123 : vector<8x1xf32>
    %125 = math.rsqrt %124 : vector<8x1xf32>
    %126 = vector.broadcast %125 : vector<8x1xf32> to vector<8x32xf32>
    %127 = arith.mulf %117, %126 : vector<8x32xf32>
    %128 = vector.broadcast %110 : vector<1x32xf32> to vector<8x32xf32>
    %129 = arith.mulf %127, %128 : vector<8x32xf32>
    %130 = vector.broadcast %111 : vector<1x32xf32> to vector<8x32xf32>
    %131 = arith.addf %129, %130 : vector<8x32xf32>
    %c0_73 = arith.constant 0 : index
    %c0_74 = arith.constant 0 : index
    %132 = vector.load %arg22[%c0_73, %c0_74] : memref<32x32xf32, #tpu.memory_space<vmem>>, vector<32x32xf32>
    %cst_75 = arith.constant dense<0.000000e+00> : vector<8x32xf32>
    %133 = tpu.matmul %108, %132, %cst_75 {dimension_numbers = #tpu.dot_dimension_numbers<[1], [0], [0], [1], [0, 0, 1, 1], [], []>} : vector<8x32xf32>, vector<32x32xf32>, vector<8x32xf32> -> vector<8x32xf32>
    %c0_76 = arith.constant 0 : index
    %c0_77 = arith.constant 0 : index
    %134 = vector.load %arg23[%c0_76, %c0_77] : memref<32x32xf32, #tpu.memory_space<vmem>>, vector<32x32xf32>
    %cst_78 = arith.constant dense<0.000000e+00> : vector<8x32xf32>
    %135 = tpu.matmul %131, %134, %cst_78 {dimension_numbers = #tpu.dot_dimension_numbers<[1], [0], [0], [1], [0, 0, 1, 1], [], []>} : vector<8x32xf32>, vector<32x32xf32>, vector<8x32xf32> -> vector<8x32xf32>
    %136 = arith.addf %133, %135 : vector<8x32xf32>
    %c0_79 = arith.constant 0 : index
    %c0_80 = arith.constant 0 : index
    %137 = vector.load %arg24[%c0_79, %c0_80] : memref<1x32xf32, #tpu.memory_space<vmem>>, vector<1x32xf32>
    %138 = vector.broadcast %137 : vector<1x32xf32> to vector<8x32xf32>
    %139 = arith.addf %136, %138 : vector<8x32xf32>
    %cst_81 = arith.constant 0.000000e+00 : f32
    %140 = vector.broadcast %cst_81 : f32 to vector<8x32xf32>
    %141 = arith.maximumf %139, %140 : vector<8x32xf32>
    %c0_82 = arith.constant 0 : index
    %c0_83 = arith.constant 0 : index
    %142 = vector.load %arg25[%c0_82, %c0_83] : memref<1x32xf32, #tpu.memory_space<vmem>>, vector<1x32xf32>
    %c0_84 = arith.constant 0 : index
    %c0_85 = arith.constant 0 : index
    %143 = vector.load %arg26[%c0_84, %c0_85] : memref<1x32xf32, #tpu.memory_space<vmem>>, vector<1x32xf32>
    %cst_86 = arith.constant dense<0.000000e+00> : vector<8xf32>
    %144 = vector.multi_reduction <add>, %141, %cst_86 [1] : vector<8x32xf32> to vector<8xf32>
    %145 = vector.shape_cast %144 : vector<8xf32> to vector<8x1xf32>
    %cst_87 = arith.constant 3.200000e+01 : f32
    %146 = vector.broadcast %cst_87 : f32 to vector<8x1xf32>
    %147 = arith.divf %145, %146 : vector<8x1xf32>
    %148 = vector.broadcast %147 : vector<8x1xf32> to vector<8x32xf32>
    %149 = arith.subf %141, %148 : vector<8x32xf32>
    %150 = arith.mulf %149, %149 : vector<8x32xf32>
    %cst_88 = arith.constant dense<0.000000e+00> : vector<8xf32>
    %151 = vector.multi_reduction <add>, %150, %cst_88 [1] : vector<8x32xf32> to vector<8xf32>
    %152 = vector.shape_cast %151 : vector<8xf32> to vector<8x1xf32>
    %cst_89 = arith.constant 3.200000e+01 : f32
    %153 = vector.broadcast %cst_89 : f32 to vector<8x1xf32>
    %154 = arith.divf %152, %153 : vector<8x1xf32>
    %cst_90 = arith.constant 9.99999974E-6 : f32
    %155 = vector.broadcast %cst_90 : f32 to vector<8x1xf32>
    %156 = arith.addf %154, %155 : vector<8x1xf32>
    %157 = math.rsqrt %156 : vector<8x1xf32>
    %158 = vector.broadcast %157 : vector<8x1xf32> to vector<8x32xf32>
    %159 = arith.mulf %149, %158 : vector<8x32xf32>
    %160 = vector.broadcast %142 : vector<1x32xf32> to vector<8x32xf32>
    %161 = arith.mulf %159, %160 : vector<8x32xf32>
    %162 = vector.broadcast %143 : vector<1x32xf32> to vector<8x32xf32>
    %163 = arith.addf %161, %162 : vector<8x32xf32>
    %c0_91 = arith.constant 0 : index
    %c0_92 = arith.constant 0 : index
    %c0_93 = arith.constant 0 : index
    %164 = vector.load %arg27[%c0_91, %c0_92, %c0_93] : memref<1x8x32xf32, #tpu.memory_space<vmem>>, vector<1x8x32xf32>
    %165 = vector.shape_cast %164 : vector<1x8x32xf32> to vector<8x32xf32>
    %166 = vector.shape_cast %163 : vector<8x32xf32> to vector<1x8x32xf32>
    tpu.vector_store %arg27[%c0_91, %c0_92, %c0_93], %166 {strides = array<i32>} : memref<1x8x32xf32, #tpu.memory_space<vmem>>, vector<1x8x32xf32>,
    return
  }
  func.func @transform_0(%arg0: i32) -> (i32, i32, i32) {
    %c0_i32 = arith.constant 0 : i32
    %c0_i32_0 = arith.constant 0 : i32
    %c0_i32_1 = arith.constant 0 : i32
    return %arg0, %c0_i32, %c0_i32_0 : i32, i32, i32
  }
  func.func @transform_1(%arg0: i32) -> (i32, i32, i32) {
    %c0_i32 = arith.constant 0 : i32
    %c0_i32_0 = arith.constant 0 : i32
    %c0_i32_1 = arith.constant 0 : i32
    return %arg0, %c0_i32, %c0_i32_0 : i32, i32, i32
  }
  func.func @transform_2(%arg0: i32) -> (i32, i32, i32) {
    %c0_i32 = arith.constant 0 : i32
    %c0_i32_0 = arith.constant 0 : i32
    %c0_i32_1 = arith.constant 0 : i32
    return %arg0, %c0_i32, %c0_i32_0 : i32, i32, i32
  }
  func.func @transform_3(%arg0: i32) -> (i32, i32) {
    %c0_i32 = arith.constant 0 : i32
    %c0_i32_0 = arith.constant 0 : i32
    %c0_i32_1 = arith.constant 0 : i32
    return %c0_i32, %c0_i32_0 : i32, i32
  }
  func.func @transform_4(%arg0: i32) -> (i32, i32) {
    %c0_i32 = arith.constant 0 : i32
    %c0_i32_0 = arith.constant 0 : i32
    %c0_i32_1 = arith.constant 0 : i32
    return %c0_i32, %c0_i32_0 : i32, i32
  }
  func.func @transform_5(%arg0: i32) -> (i32, i32) {
    %c0_i32 = arith.constant 0 : i32
    %c0_i32_0 = arith.constant 0 : i32
    %c0_i32_1 = arith.constant 0 : i32
    return %c0_i32, %c0_i32_0 : i32, i32
  }
  func.func @transform_6(%arg0: i32) -> (i32, i32) {
    %c0_i32 = arith.constant 0 : i32
    %c0_i32_0 = arith.constant 0 : i32
    %c0_i32_1 = arith.constant 0 : i32
    return %c0_i32, %c0_i32_0 : i32, i32
  }
  func.func @transform_7(%arg0: i32) -> (i32, i32) {
    %c0_i32 = arith.constant 0 : i32
    %c0_i32_0 = arith.constant 0 : i32
    %c0_i32_1 = arith.constant 0 : i32
    return %c0_i32, %c0_i32_0 : i32, i32
  }
  func.func @transform_8(%arg0: i32) -> (i32, i32) {
    %c0_i32 = arith.constant 0 : i32
    %c0_i32_0 = arith.constant 0 : i32
    %c0_i32_1 = arith.constant 0 : i32
    return %c0_i32, %c0_i32_0 : i32, i32
  }
  func.func @transform_9(%arg0: i32) -> (i32, i32) {
    %c0_i32 = arith.constant 0 : i32
    %c0_i32_0 = arith.constant 0 : i32
    %c0_i32_1 = arith.constant 0 : i32
    return %c0_i32, %c0_i32_0 : i32, i32
  }
  func.func @transform_10(%arg0: i32) -> (i32, i32) {
    %c0_i32 = arith.constant 0 : i32
    %c0_i32_0 = arith.constant 0 : i32
    %c0_i32_1 = arith.constant 0 : i32
    return %c0_i32, %c0_i32_0 : i32, i32
  }
  func.func @transform_11(%arg0: i32) -> (i32, i32) {
    %c0_i32 = arith.constant 0 : i32
    %c0_i32_0 = arith.constant 0 : i32
    %c0_i32_1 = arith.constant 0 : i32
    return %c0_i32, %c0_i32_0 : i32, i32
  }
  func.func @transform_12(%arg0: i32) -> (i32, i32) {
    %c0_i32 = arith.constant 0 : i32
    %c0_i32_0 = arith.constant 0 : i32
    %c0_i32_1 = arith.constant 0 : i32
    return %c0_i32, %c0_i32_0 : i32, i32
  }
  func.func @transform_13(%arg0: i32) -> (i32, i32) {
    %c0_i32 = arith.constant 0 : i32
    %c0_i32_0 = arith.constant 0 : i32
    %c0_i32_1 = arith.constant 0 : i32
    return %c0_i32, %c0_i32_0 : i32, i32
  }
  func.func @transform_14(%arg0: i32) -> (i32, i32) {
    %c0_i32 = arith.constant 0 : i32
    %c0_i32_0 = arith.constant 0 : i32
    %c0_i32_1 = arith.constant 0 : i32
    return %c0_i32, %c0_i32_0 : i32, i32
  }
  func.func @transform_15(%arg0: i32) -> (i32, i32) {
    %c0_i32 = arith.constant 0 : i32
    %c0_i32_0 = arith.constant 0 : i32
    %c0_i32_1 = arith.constant 0 : i32
    return %c0_i32, %c0_i32_0 : i32, i32
  }
  func.func @transform_16(%arg0: i32) -> (i32, i32) {
    %c0_i32 = arith.constant 0 : i32
    %c0_i32_0 = arith.constant 0 : i32
    %c0_i32_1 = arith.constant 0 : i32
    return %c0_i32, %c0_i32_0 : i32, i32
  }
  func.func @transform_17(%arg0: i32) -> (i32, i32) {
    %c0_i32 = arith.constant 0 : i32
    %c0_i32_0 = arith.constant 0 : i32
    %c0_i32_1 = arith.constant 0 : i32
    return %c0_i32, %c0_i32_0 : i32, i32
  }
  func.func @transform_18(%arg0: i32) -> (i32, i32) {
    %c0_i32 = arith.constant 0 : i32
    %c0_i32_0 = arith.constant 0 : i32
    %c0_i32_1 = arith.constant 0 : i32
    return %c0_i32, %c0_i32_0 : i32, i32
  }
  func.func @transform_19(%arg0: i32) -> (i32, i32) {
    %c0_i32 = arith.constant 0 : i32
    %c0_i32_0 = arith.constant 0 : i32
    %c0_i32_1 = arith.constant 0 : i32
    return %c0_i32, %c0_i32_0 : i32, i32
  }
  func.func @transform_20(%arg0: i32) -> (i32, i32) {
    %c0_i32 = arith.constant 0 : i32
    %c0_i32_0 = arith.constant 0 : i32
    %c0_i32_1 = arith.constant 0 : i32
    return %c0_i32, %c0_i32_0 : i32, i32
  }
  func.func @transform_21(%arg0: i32) -> (i32, i32) {
    %c0_i32 = arith.constant 0 : i32
    %c0_i32_0 = arith.constant 0 : i32
    %c0_i32_1 = arith.constant 0 : i32
    return %c0_i32, %c0_i32_0 : i32, i32
  }
  func.func @transform_22(%arg0: i32) -> (i32, i32) {
    %c0_i32 = arith.constant 0 : i32
    %c0_i32_0 = arith.constant 0 : i32
    %c0_i32_1 = arith.constant 0 : i32
    return %c0_i32, %c0_i32_0 : i32, i32
  }
  func.func @transform_23(%arg0: i32) -> (i32, i32) {
    %c0_i32 = arith.constant 0 : i32
    %c0_i32_0 = arith.constant 0 : i32
    %c0_i32_1 = arith.constant 0 : i32
    return %c0_i32, %c0_i32_0 : i32, i32
  }
  func.func @transform_24(%arg0: i32) -> (i32, i32) {
    %c0_i32 = arith.constant 0 : i32
    %c0_i32_0 = arith.constant 0 : i32
    %c0_i32_1 = arith.constant 0 : i32
    return %c0_i32, %c0_i32_0 : i32, i32
  }
  func.func @transform_25(%arg0: i32) -> (i32, i32) {
    %c0_i32 = arith.constant 0 : i32
    %c0_i32_0 = arith.constant 0 : i32
    %c0_i32_1 = arith.constant 0 : i32
    return %c0_i32, %c0_i32_0 : i32, i32
  }
  func.func @transform_26(%arg0: i32) -> (i32, i32, i32) {
    %c0_i32 = arith.constant 0 : i32
    %c0_i32_0 = arith.constant 0 : i32
    %c0_i32_1 = arith.constant 0 : i32
    return %arg0, %c0_i32, %c0_i32_0 : i32, i32, i32
  }
}

</mosaic_0001>

<bundles_post_ra>
// kernel: module_forward.2
= control target key start
LH: loop header
LB: loop body
LE: loop exit
PB: predicated region body
PF: predicated region fallthrough
CT: control target
= control target key end

     0   :  { %s9981_s0 = inlined_call_operand.hbm [shape: f32[2,8,32], index: 0, kind: input, shape index: {}]   ;;  %s9982_s1 = inlined_call_operand.vmem [shape: f32[2,8,16], index: 1, kind: input, shape index: {}]   ;;  %s9983_s2 = inlined_call_operand.vmem [shape: f32[2,8,24], index: 2, kind: input, shape index: {}]   ;;  %s9984_s3 = inlined_call_operand.hbm [shape: f32[32,32], index: 3, kind: input, shape index: {}]   ;;  %s9985_s4 = inlined_call_operand.hbm [shape: f32[1,32], index: 4, kind: input, shape index: {}]   ;;  %s9986_s5 = inlined_call_operand.hbm [shape: f32[16,32], index: 5, kind: input, shape index: {}]   ;;  %s9987_s6 = inlined_call_operand.hbm [shape: f32[1,32], index: 6, kind: input, shape index: {}]   ;;  %s9988_s7 = inlined_call_operand.hbm [shape: f32[16,32], index: 7, kind: input, shape index: {}]   ;;  %s9989_s8 = inlined_call_operand.hbm [shape: f32[1,32], index: 8, kind: input, shape index: {}]   ;;  %s9990_s9 = inlined_call_operand.hbm [shape: f32[32,32], index: 9, kind: input, shape index: {}]   ;;  %s9991_s10 = inlined_call_operand.hbm [shape: f32[1,32], index: 10, kind: input, shape index: {}]   ;;  %s9992_s11 = inlined_call_operand.hbm [shape: f32[32,32], index: 11, kind: input, shape index: {}]   ;;  %s9993_s12 = inlined_call_operand.hbm [shape: f32[1,32], index: 12, kind: input, shape index: {}]   ;;  %s9994_s13 = inlined_call_operand.hbm [shape: f32[24,32], index: 13, kind: input, shape index: {}]   ;;  %s9995_s14 = inlined_call_operand.hbm [shape: f32[1,32], index: 14, kind: input, shape index: {}]   ;;  %s9996_s15 = inlined_call_operand.hbm [shape: f32[24,32], index: 15, kind: input, shape index: {}]   ;;  %s9997_s16 = inlined_call_operand.hbm [shape: f32[1,32], index: 16, kind: input, shape index: {}]   ;;  %s9998_s17 = inlined_call_operand.hbm [shape: f32[32,32], index: 17, kind: input, shape index: {}]   ;;  %s9999_s18 = inlined_call_operand.hbm [shape: f32[1,32], index: 18, kind: input, shape index: {}]   ;;  %s10000_s19 = inlined_call_operand.vmem [shape: f32[1,32], index: 19, kind: input, shape index: {}]   ;;  %s10001_s20 = inlined_call_operand.vmem [shape: f32[1,32], index: 20, kind: input, shape index: {}]   ;;  %s10002_s21 = inlined_call_operand.hbm [shape: f32[32,32], index: 21, kind: input, shape index: {}]   ;;  %s10003_s22 = inlined_call_operand.hbm [shape: f32[32,32], index: 22, kind: input, shape index: {}]   ;;  %s10004_s23 = inlined_call_operand.hbm [shape: f32[1,32], index: 23, kind: input, shape index: {}]   ;;  %s10005_s24 = inlined_call_operand.vmem [shape: f32[1,32], index: 24, kind: input, shape index: {}]   ;;  %s10006_s25 = inlined_call_operand.vmem [shape: f32[1,32], index: 25, kind: input, shape index: {}]   ;;  %s10007_s26 = inlined_call_operand.vmem [shape: f32[2,8,32], index: 26, kind: output, shape index: {}]  }
   0x1   :  { %10018 = sst [smem:[#allocation44_spill]] %s9981_s0 }
   0x2   :  { %10019 = sst [smem:[#allocation45_spill]] %s9982_s1 }
   0x3   :  { %10020 = sst [smem:[#allocation46_spill]] %s9983_s2 }
   0x4   :  { %10021 = sst [smem:[#allocation47_spill]] %s9984_s3 }
   0x5   :  { %10022 = sst [smem:[#allocation48_spill]] %s9985_s4 }
   0x6   :  { %10023 = sst [smem:[#allocation49_spill]] %s9986_s5 }
   0x7   :  { %10024 = sst [smem:[#allocation50_spill]] %s9987_s6 }
   0x8   :  { %10025 = sst [smem:[#allocation51_spill]] %s9988_s7 }
   0x9   :  { %10026 = sst [smem:[#allocation52_spill]] %s9989_s8 }
   0xa   :  { %10027 = sst [smem:[#allocation53_spill]] %s9990_s9 }
   0xb   :  { %10028 = sst [smem:[#allocation54_spill]] %s9991_s10 }
   0xc   :  { %10029 = sst [smem:[#allocation55_spill]] %s9992_s11 }
   0xd   :  { %10030 = sst [smem:[#allocation56_spill]] %s9993_s12 }
   0xe   :  { %10031 = sst [smem:[#allocation57_spill]] %s9994_s13 }
   0xf   :  { %10032 = sst [smem:[#allocation58_spill]] %s10001_s20 }
  0x10   :  { %10033 = sst [smem:[#allocation59_spill]] %s10005_s24 }
  0x11   :  { %10034 = sst [smem:[#allocation60_spill]] %s10006_s25 }
  0x12   :  { %10035 = sst [smem:[#allocation61_spill]] %s10007_s26 }
  0x13   :  { %31 = vsyncpa [#allocation3], 0 }
  0x14   :  { %33 = vsyncpa [#allocation3 + $0x1], 0 }
  0x15   :  { %34 = vsyncpa [#allocation5], 0 }
  0x16   :  { %35 = vsyncpa [#allocation8], 0 }
  0x17   :  { %36 = vsyncpa [#allocation11], 0 }
  0x18   :  { %37 = vsyncpa [#allocation14], 0 }
  0x19   :  { %38 = vsyncpa [#allocation17], 0 }
  0x1a   :  { %39 = vsyncpa [#allocation20], 0 }
  0x1b   :  { %40 = vsyncpa [#allocation23], 0 }
  0x1c   :  { %41 = vsyncpa [#allocation26], 0 }
  0x1d   :  { %42 = vsyncpa [#allocation29], 0 }
  0x1e   :  { %43 = vsyncpa [#allocation32], 0  ;;  %s8860_s27 = smov 0   ;;  %s8862_s3 = smov 0  }
  0x1f   :  { %s8864_s7 = smov 0   ;;  %s8866_s28 = smov 0  }
  0x20 LB: > { %s8685_s8 = smov [#allocation4]   ;;  %s8881_s29 = sadd.s32 4294967295, %s8683_s28   ;;  %s8683_s28 = sphi %s8866_s28, %s10090_s28   ;;  %s8679_s7 = sphi %s8864_s7, %s10089_s7   ;;  %s8675_s3 = sphi %s8862_s3, %s10088_s3   ;;  %s8671_s27 = sphi %s8860_s27, %s10087_s27  }
  0x21   : > { %s653_s4 = sshll.u32 %s8685_s8, 4  ;;  %p7216_p0 = scmp.ge.s32.totalorder %s8683_s28, 1  ;;  %s654_s4 = int_to_ptr.vmem [resolvable:$true] %s653_s4 }
  0x22   : > { %p10009_p1 = scmp.eq.s32.totalorder %s8881_s29, 0  ;;  %p641_p2 = scmp.lt.s32.totalorder %s8683_s28, 3 }
  0x23   : > { %s8686_s9 = smov [#allocation7]   ;;  %s8687_s5 = smov [#allocation10]  }
  0x24   : > { %p8886_p3 = pnand %p7216_p0, %p641_p2  ;;  %s677_s30 = sshll.u32 %s8686_s9, 4  ;;  %s8898_s30 = int_to_ptr.vmem [resolvable:$true] %s677_s30 }
  0x25   : > { %s701_s10 = sshll.u32 %s8687_s5, 4  ;;  %s8098_s1 = scalar_lea.vmem %s654_s4, 512  ;;  %s8900_s10 = int_to_ptr.vmem [resolvable:$true] %s701_s10 }
  0x26   : > { %s10036_s0 = scalar_select %p8886_p3, 1, 0 }
  0x27   : > { %p7844_p4 = pneg %p8886_p3  ;;  %p8099_p7 = scmp.ne.s32.totalorder %s654_s4, %s8098_s1 }
  0x28   : > { %p8106_p10 = scmp.lt.s32.totalorder %s654_s4, %s654_s4  ;;  %p8107_p11 = scmp.lt.s32.totalorder %s8098_s1, %s8098_s1 }
  0x29   : > { %p8894_p5 = pnand %p7844_p4, %p10009_p1 }
  0x2a   : > { %p8108_p12 = por %p8107_p11, %p8106_p10 }
  0x2b   : > { %p8904_p6 = pneg %p8894_p5 }
  0x2d   : > { %p8101_p8 = pnand %p8099_p7, %p8904_p6 }
  0x2f   : > { %p8102_p9 = pneg %p8101_p8 }
  0x31   : > { %p8109_p13 = pnand %p8108_p12, %p8102_p9 }
  0x33   : > { %8112 = shalt.err (!%p8109_p13)
}
  0x34   : > { %s10010_s8 = smov 128   ;;  %s10011_s9 = smov 8  }
  0x35   : > { %s10039_s25 = sld [smem:[#allocation47_spill]]  ;;  %s8124_s24 = scalar_lea.vmem %s8898_s30, 256 }
  0x36   : > { %p8125_p0 = scmp.ne.s32.totalorder %s8898_s30, %s8124_s24  ;;  %p8132_p7 = scmp.lt.s32.totalorder %s8898_s30, %s8898_s30 }
  0x37   : > { %p8133_p8 = scmp.lt.s32.totalorder %s8124_s24, %s8124_s24 }
  0x38   : > { %p8127_p2 = pnand %p8125_p0, %p8904_p6 }
  0x39   : > { %p8134_p9 = por %p8133_p8, %p8132_p7 }
  0x3a   : > { %p8128_p4 = pneg %p8127_p2 }
  0x3b   : > { %7847 = dma.hbm_to_vmem [thread:$0]  (!%p8894_p5), %s10039_s25, 512, %s654_s4, [#allocation5], %s10010_s8, %s10010_s8, %s10011_s9  }
  0x3c   : > { %p8135_p10 = pnand %p8134_p9, %p8128_p4 }
  0x3e   : > { %8138 = shalt.err (!%p8135_p10)
}
  0x3f   : > { %s10040_s25 = sld [smem:[#allocation49_spill]]  ;;  %s8150_s4 = scalar_lea.vmem %s8900_s10, 256 }
  0x40   : > { %p8151_p11 = scmp.ne.s32.totalorder %s8900_s10, %s8150_s4  ;;  %p8158_p0 = scmp.lt.s32.totalorder %s8900_s10, %s8900_s10 }
  0x41   : > { %p8159_p2 = scmp.lt.s32.totalorder %s8150_s4, %s8150_s4 }
  0x42   : > { %p8153_p12 = pnand %p8151_p11, %p8904_p6 }
  0x43   : > { %p8160_p4 = por %p8159_p2, %p8158_p0 }
  0x44   : > { %p8154_p13 = pneg %p8153_p12 }
  0x45   : > { %7853 = dma.hbm_to_vmem [thread:$0]  (!%p8894_p5), %s10040_s25, 256, %s8898_s30, [#allocation8], %s10010_s8, %s10010_s8, %s10011_s9  }
  0x46   : > { %p8161_p7 = pnand %p8160_p4, %p8154_p13 }
  0x48   : > { %8164 = shalt.err (!%p8161_p7)
}
  0x49   : > { %s10041_s30 = sld [smem:[#allocation51_spill]]  ;;  %s8690_s1 = smov [#allocation13]  }
  0x4a   : > { %s725_s26 = sshll.u32 %s8690_s1, 4  ;;  %s8691_s25 = smov [#allocation16]   ;;  %s726_s26 = int_to_ptr.vmem [resolvable:$true] %s725_s26 }
  0x4b   : > { %s749_s20 = sshll.u32 %s8691_s25, 4  ;;  %s8176_s4 = scalar_lea.vmem %s726_s26, 512  ;;  %s750_s20 = int_to_ptr.vmem [resolvable:$true] %s749_s20 }
  0x4c   : > { %p8177_p8 = scmp.ne.s32.totalorder %s726_s26, %s8176_s4  ;;  %p8184_p11 = scmp.lt.s32.totalorder %s726_s26, %s726_s26 }
  0x4d   : > { %p8185_p12 = scmp.lt.s32.totalorder %s8176_s4, %s8176_s4 }
  0x4e   : > { %p8179_p9 = pnand %p8177_p8, %p8904_p6 }
  0x4f   : > { %7859 = dma.hbm_to_vmem [thread:$0]  (!%p8894_p5), %s10041_s30, 256, %s8900_s10, [#allocation11], %s10010_s8, %s10010_s8, %s10011_s9  }
  0x50   : > { %p8180_p10 = pneg %p8179_p9  ;;  %p8186_p13 = por %p8185_p12, %p8184_p11 }
  0x52   : > { %p8187_p0 = pnand %p8186_p13, %p8180_p10 }
  0x54   : > { %8190 = shalt.err (!%p8187_p0)
}
  0x55   : > { %s10042_s5 = sld [smem:[#allocation53_spill]]  ;;  %s8202_s30 = scalar_lea.vmem %s750_s20, 512 }
  0x56   : > { %p8203_p2 = scmp.ne.s32.totalorder %s750_s20, %s8202_s30  ;;  %p8210_p8 = scmp.lt.s32.totalorder %s750_s20, %s750_s20 }
  0x57   : > { %p8211_p9 = scmp.lt.s32.totalorder %s8202_s30, %s8202_s30 }
  0x58   : > { %p8205_p4 = pnand %p8203_p2, %p8904_p6 }
  0x59   : > { %p8212_p10 = por %p8211_p9, %p8210_p8 }
  0x5a   : > { %p8206_p7 = pneg %p8205_p4 }
  0x5b   : > { %7865 = dma.hbm_to_vmem [thread:$0]  (!%p8894_p5), %s10042_s5, 512, %s726_s26, [#allocation14], %s10010_s8, %s10010_s8, %s10011_s9  }
  0x5c   : > { %p8213_p11 = pnand %p8212_p10, %p8206_p7 }
  0x5e   : > { %8216 = shalt.err (!%p8213_p11)
}
  0x5f   : > { %s10043_s11 = sld [smem:[#allocation55_spill]]  ;;  %s8692_s26 = smov [#allocation19]  }
  0x60   : > { %s773_s4 = sshll.u32 %s8692_s26, 4  ;;  %s8693_s10 = smov [#allocation22]   ;;  %s774_s4 = int_to_ptr.vmem [resolvable:$true] %s773_s4 }
  0x61   : > { %s797_s24 = sshll.u32 %s8693_s10, 4  ;;  %s8228_s5 = scalar_lea.vmem %s774_s4, 384  ;;  %s798_s24 = int_to_ptr.vmem [resolvable:$true] %s797_s24 }
  0x62   : > { %p8229_p12 = scmp.ne.s32.totalorder %s774_s4, %s8228_s5  ;;  %p8236_p2 = scmp.lt.s32.totalorder %s774_s4, %s774_s4 }
  0x63   : > { %p8237_p4 = scmp.lt.s32.totalorder %s8228_s5, %s8228_s5 }
  0x64   : > { %p8231_p13 = pnand %p8229_p12, %p8904_p6 }
  0x65   : > { %7871 = dma.hbm_to_vmem [thread:$0]  (!%p8894_p5), %s10043_s11, 512, %s750_s20, [#allocation17], %s10010_s8, %s10010_s8, %s10011_s9  }
  0x66   : > { %p8232_p0 = pneg %p8231_p13  ;;  %p8238_p7 = por %p8237_p4, %p8236_p2 }
  0x68   : > { %p8239_p8 = pnand %p8238_p7, %p8232_p0 }
  0x6a   : > { %8242 = shalt.err (!%p8239_p8)
}
  0x6b   : > { %s10044_s13 = sld [smem:[#allocation57_spill]]  ;;  %s8254_s1 = scalar_lea.vmem %s798_s24, 384 }
  0x6c   : > { %p8255_p9 = scmp.ne.s32.totalorder %s798_s24, %s8254_s1  ;;  %p8262_p12 = scmp.lt.s32.totalorder %s798_s24, %s798_s24 }
  0x6d   : > { %p8263_p13 = scmp.lt.s32.totalorder %s8254_s1, %s8254_s1 }
  0x6e   : > { %p8257_p10 = pnand %p8255_p9, %p8904_p6 }
  0x6f   : > { %p8264_p0 = por %p8263_p13, %p8262_p12 }
  0x70   : > { %p8258_p11 = pneg %p8257_p10 }
  0x71   : > { %7877 = dma.hbm_to_vmem [thread:$0]  (!%p8894_p5), %s10044_s13, 384, %s774_s4, [#allocation20], %s10010_s8, %s10010_s8, %s10011_s9  }
  0x72   : > { %p8265_p2 = pnand %p8264_p0, %p8258_p11 }
  0x74   : > { %8268 = shalt.err (!%p8265_p2)
}
  0x75   : > { %7883 = dma.hbm_to_vmem [thread:$0]  (!%p8894_p5), %s9996_s15, 384, %s798_s24, [#allocation23], %s10010_s8, %s10010_s8, %s10011_s9  }
  0x76   : > { %s8694_s4 = smov [#allocation25]   ;;  %s8695_s5 = smov [#allocation28]  }
  0x77   : > { %s821_s10 = sshll.u32 %s8694_s4, 4  ;;  %s851_s20 = sshll.u32 %s8695_s5, 4  ;;  %s822_s10 = int_to_ptr.vmem [resolvable:$true] %s821_s10  ;;  %s852_s20 = int_to_ptr.vmem [resolvable:$true] %s851_s20 }
  0x78   : > { %s8280_s30 = scalar_lea.vmem %s822_s10, 512  ;;  %p8288_p9 = scmp.lt.s32.totalorder %s822_s10, %s822_s10 }
  0x79   : > { %p8281_p4 = scmp.ne.s32.totalorder %s822_s10, %s8280_s30  ;;  %p8289_p10 = scmp.lt.s32.totalorder %s8280_s30, %s8280_s30 }
  0x7b   : > { %p8283_p7 = pnand %p8281_p4, %p8904_p6  ;;  %p8290_p11 = por %p8289_p10, %p8288_p9 }
  0x7d   : > { %p8284_p8 = pneg %p8283_p7 }
  0x7f   : > { %p8291_p12 = pnand %p8290_p11, %p8284_p8 }
  0x81   : > { %8294 = shalt.err (!%p8291_p12)
}
  0x82   : > { %7889 = dma.hbm_to_vmem [thread:$0]  (!%p8894_p5), %s9998_s17, 512, %s822_s10, [#allocation26], %s10010_s8, %s10010_s8, %s10011_s9  }
  0x83   : > { %s8306_s25 = scalar_lea.vmem %s852_s20, 512  ;;  %p8314_p4 = scmp.lt.s32.totalorder %s852_s20, %s852_s20 }
  0x84   : > { %p8307_p13 = scmp.ne.s32.totalorder %s852_s20, %s8306_s25  ;;  %p8315_p7 = scmp.lt.s32.totalorder %s8306_s25, %s8306_s25 }
  0x86   : > { %p8309_p0 = pnand %p8307_p13, %p8904_p6  ;;  %p8316_p8 = por %p8315_p7, %p8314_p4 }
  0x88   : > { %p8310_p2 = pneg %p8309_p0 }
  0x8a   : > { %p8317_p9 = pnand %p8316_p8, %p8310_p2 }
  0x8c   : > { %8320 = shalt.err (!%p8317_p9)
}
  0x8d   : > { %7895 = dma.hbm_to_vmem [thread:$0]  (!%p8894_p5), %s10002_s21, 512, %s852_s20, [#allocation29], %s10010_s8, %s10010_s8, %s10011_s9  }
  0x8e   : > { %s8696_s10 = smov [#allocation6]   ;;  %s8697_s30 = smov [#allocation9]  }
  0x8f   : > { %s667_s5 = sshll.u32 %s8696_s10, 4  ;;  %s691_s24 = sshll.u32 %s8697_s30, 4  ;;  %s668_s5 = int_to_ptr.vmem [resolvable:$true] %s667_s5  ;;  %s692_s24 = int_to_ptr.vmem [resolvable:$true] %s691_s24 }
  0x90   : > { %s8332_s1 = scalar_lea.vmem %s668_s5, 16  ;;  %s8339_s25 = scalar_lea.vmem %s668_s5, 32 }
  0x91   : > { %p8333_p10 = scmp.ne.s32.totalorder %s668_s5, %s8332_s1  ;;  %p8340_p13 = scmp.lt.s32.totalorder %s668_s5, %s668_s5 }
  0x92   : > { %p8341_p0 = scmp.lt.s32.totalorder %s8339_s25, %s8332_s1 }
  0x93   : > { %p8335_p11 = pnand %p8333_p10, %p8904_p6 }
  0x94   : > { %p8342_p2 = por %p8341_p0, %p8340_p13 }
  0x95   : > { %p8336_p12 = pneg %p8335_p11 }
  0x97   : > { %p8343_p4 = pnand %p8342_p2, %p8336_p12 }
  0x99   : > { %8346 = shalt.err (!%p8343_p4)
}
  0x9a   : > { %s10045_s4 = sld [smem:[#allocation48_spill]]  ;;  %s8358_s10 = scalar_lea.vmem %s692_s24, 16 }
  0x9b   : > { %p8359_p7 = scmp.ne.s32.totalorder %s692_s24, %s8358_s10  ;;  %s8365_s30 = scalar_lea.vmem %s692_s24, 32 }
  0x9c   : > { %p8366_p10 = scmp.lt.s32.totalorder %s692_s24, %s692_s24  ;;  %p8367_p11 = scmp.lt.s32.totalorder %s8365_s30, %s8358_s10 }
  0x9d   : > { %p8361_p8 = pnand %p8359_p7, %p8904_p6 }
  0x9e   : > { %p8368_p1 = por %p8367_p11, %p8366_p10 }
  0x9f   : > { %p8362_p9 = pneg %p8361_p8 }
  0xa0   : > { %7850 = dma.hbm_to_vmem [thread:$0]  (!%p8894_p5), %s10045_s4, 16, %s668_s5, [#allocation5]  }
  0xa1   : > { %p8369_p13 = pnand %p8368_p1, %p8362_p9 }
  0xa3   : > { %8372 = shalt.err (!%p8369_p13)
}
  0xa4   : > { %s10046_s8 = sld [smem:[#allocation50_spill]]  ;;  %s8698_s5 = smov [#allocation12]  }
  0xa5   : > { %s715_s26 = sshll.u32 %s8698_s5, 4  ;;  %s8699_s20 = smov [#allocation15]   ;;  %s716_s26 = int_to_ptr.vmem [resolvable:$true] %s715_s26 }
  0xa6   : > { %s739_s4 = sshll.u32 %s8699_s20, 4  ;;  %s8384_s9 = scalar_lea.vmem %s716_s26, 16  ;;  %s740_s4 = int_to_ptr.vmem [resolvable:$true] %s739_s4 }
  0xa7   : > { %p8385_p12 = scmp.ne.s32.totalorder %s716_s26, %s8384_s9  ;;  %s8391_s10 = scalar_lea.vmem %s716_s26, 32 }
  0xa8   : > { %p8392_p1 = scmp.lt.s32.totalorder %s716_s26, %s716_s26  ;;  %p8393_p4 = scmp.lt.s32.totalorder %s8391_s10, %s8384_s9 }
  0xa9   : > { %p8387_p0 = pnand %p8385_p12, %p8904_p6 }
  0xaa   : > { %7856 = dma.hbm_to_vmem [thread:$0]  (!%p8894_p5), %s10046_s8, 16, %s692_s24, [#allocation8]  }
  0xab   : > { %p8388_p2 = pneg %p8387_p0  ;;  %p8394_p7 = por %p8393_p4, %p8392_p1 }
  0xad   : > { %p8395_p8 = pnand %p8394_p7, %p8388_p2 }
  0xaf   : > { %8398 = shalt.err (!%p8395_p8)
}
  0xb0   : > { %s10047_s24 = sld [smem:[#allocation52_spill]]  ;;  %s8410_s1 = scalar_lea.vmem %s740_s4, 16 }
  0xb1   : > { %p8411_p9 = scmp.ne.s32.totalorder %s740_s4, %s8410_s1  ;;  %s8417_s25 = scalar_lea.vmem %s740_s4, 32 }
  0xb2   : > { %p8418_p13 = scmp.lt.s32.totalorder %s740_s4, %s740_s4  ;;  %p8419_p12 = scmp.lt.s32.totalorder %s8417_s25, %s8410_s1 }
  0xb3   : > { %p8413_p10 = pnand %p8411_p9, %p8904_p6 }
  0xb4   : > { %p8420_p0 = por %p8419_p12, %p8418_p13 }
  0xb5   : > { %p8414_p11 = pneg %p8413_p10 }
  0xb6   : > { %7862 = dma.hbm_to_vmem [thread:$0]  (!%p8894_p5), %s10047_s24, 16, %s716_s26, [#allocation11]  }
  0xb7   : > { %p8421_p1 = pnand %p8420_p0, %p8414_p11 }
  0xb9   : > { %8424 = shalt.err (!%p8421_p1)
}
  0xba   : > { %s10048_s20 = sld [smem:[#allocation54_spill]]  ;;  %s8700_s26 = smov [#allocation18]  }
  0xbb   : > { %s763_s10 = sshll.u32 %s8700_s26, 4  ;;  %s8701_s30 = smov [#allocation21]   ;;  %s764_s10 = int_to_ptr.vmem [resolvable:$true] %s763_s10 }
  0xbc   : > { %s787_s8 = sshll.u32 %s8701_s30, 4  ;;  %s8436_s24 = scalar_lea.vmem %s764_s10, 16  ;;  %s788_s8 = int_to_ptr.vmem [resolvable:$true] %s787_s8 }
  0xbd   : > { %p8437_p2 = scmp.ne.s32.totalorder %s764_s10, %s8436_s24  ;;  %s8443_s1 = scalar_lea.vmem %s764_s10, 32 }
  0xbe   : > { %p8444_p8 = scmp.lt.s32.totalorder %s764_s10, %s764_s10  ;;  %p8445_p9 = scmp.lt.s32.totalorder %s8443_s1, %s8436_s24 }
  0xbf   : > { %p8439_p4 = pnand %p8437_p2, %p8904_p6 }
  0xc0   : > { %7868 = dma.hbm_to_vmem [thread:$0]  (!%p8894_p5), %s10048_s20, 16, %s740_s4, [#allocation14]  }
  0xc1   : > { %p8440_p7 = pneg %p8439_p4  ;;  %p8446_p10 = por %p8445_p9, %p8444_p8 }
  0xc3   : > { %p8447_p11 = pnand %p8446_p10, %p8440_p7 }
  0xc5   : > { %8450 = shalt.err (!%p8447_p11)
}
  0xc6   : > { %s10049_s12 = sld [smem:[#allocation56_spill]]  ;;  %s8462_s9 = scalar_lea.vmem %s788_s8, 16 }
  0xc7   : > { %p8463_p13 = scmp.ne.s32.totalorder %s788_s8, %s8462_s9  ;;  %s8469_s5 = scalar_lea.vmem %s788_s8, 32 }
  0xc8   : > { %p8470_p1 = scmp.lt.s32.totalorder %s788_s8, %s788_s8  ;;  %p8471_p2 = scmp.lt.s32.totalorder %s8469_s5, %s8462_s9 }
  0xc9   : > { %p8465_p12 = pnand %p8463_p13, %p8904_p6 }
  0xca   : > { %p8472_p4 = por %p8471_p2, %p8470_p1 }
  0xcb   : > { %p8466_p0 = pneg %p8465_p12 }
  0xcc   : > { %7874 = dma.hbm_to_vmem [thread:$0]  (!%p8894_p5), %s10049_s12, 16, %s764_s10, [#allocation17]  }
  0xcd   : > { %p8473_p8 = pnand %p8472_p4, %p8466_p0 }
  0xcf   : > { %8476 = shalt.err (!%p8473_p8)
}
  0xd0   : > { %7880 = dma.hbm_to_vmem [thread:$0]  (!%p8894_p5), %s9995_s14, 16, %s788_s8, [#allocation20]  }
  0xd1   : > { %s8702_s10 = smov [#allocation24]   ;;  %s8703_s24 = smov [#allocation27]  }
  0xd2   : > { %s811_s30 = sshll.u32 %s8702_s10, 4  ;;  %s835_s1 = sshll.u32 %s8703_s24, 4  ;;  %s812_s30 = int_to_ptr.vmem [resolvable:$true] %s811_s30  ;;  %s836_s1 = int_to_ptr.vmem [resolvable:$true] %s835_s1 }
  0xd3   : > { %s8488_s25 = scalar_lea.vmem %s812_s30, 16  ;;  %s8495_s4 = scalar_lea.vmem %s812_s30, 32 }
  0xd4   : > { %p8489_p7 = scmp.ne.s32.totalorder %s812_s30, %s8488_s25  ;;  %p8496_p11 = scmp.lt.s32.totalorder %s812_s30, %s812_s30 }
  0xd5   : > { %p8497_p13 = scmp.lt.s32.totalorder %s8495_s4, %s8488_s25 }
  0xd6   : > { %p8491_p9 = pnand %p8489_p7, %p8904_p6 }
  0xd7   : > { %p8498_p12 = por %p8497_p13, %p8496_p11 }
  0xd8   : > { %p8492_p10 = pneg %p8491_p9 }
  0xda   : > { %p8499_p0 = pnand %p8498_p12, %p8492_p10 }
  0xdc   : > { %8502 = shalt.err (!%p8499_p0)
}
  0xdd   : > { %7886 = dma.hbm_to_vmem [thread:$0]  (!%p8894_p5), %s9997_s16, 16, %s812_s30, [#allocation23]  }
  0xde   : > { %s8514_s5 = scalar_lea.vmem %s836_s1, 16  ;;  %s8521_s20 = scalar_lea.vmem %s836_s1, 32 }
  0xdf   : > { %p8515_p1 = scmp.ne.s32.totalorder %s836_s1, %s8514_s5  ;;  %p8522_p8 = scmp.lt.s32.totalorder %s836_s1, %s836_s1 }
  0xe0   : > { %p8523_p7 = scmp.lt.s32.totalorder %s8521_s20, %s8514_s5 }
  0xe1   : > { %p8517_p2 = pnand %p8515_p1, %p8904_p6 }
  0xe2   : > { %p8524_p9 = por %p8523_p7, %p8522_p8 }
  0xe3   : > { %p8518_p4 = pneg %p8517_p2 }
  0xe5   : > { %p8525_p11 = pnand %p8524_p9, %p8518_p4 }
  0xe7   : > { %8528 = shalt.err (!%p8525_p11)
}
  0xe8   : > { %7892 = dma.hbm_to_vmem [thread:$0]  (!%p8894_p5), %s9999_s18, 16, %s836_s1, [#allocation26]  }
  0xe9   : > { %s8704_s30 = smov [#allocation30]   ;;  %s8705_s25 = smov [#allocation31]  }
  0xea   : > { %s864_s24 = sshll.u32 %s8704_s30, 4  ;;  %s878_s4 = sshll.u32 %s8705_s25, 4  ;;  %s865_s24 = int_to_ptr.vmem [resolvable:$true] %s864_s24  ;;  %s879_s4 = int_to_ptr.vmem [resolvable:$true] %s878_s4 }
  0xeb   : > { %s8540_s9 = scalar_lea.vmem %s865_s24, 512  ;;  %p8548_p0 = scmp.lt.s32.totalorder %s865_s24, %s865_s24 }
  0xec   : > { %p8541_p10 = scmp.ne.s32.totalorder %s865_s24, %s8540_s9  ;;  %p8549_p1 = scmp.lt.s32.totalorder %s8540_s9, %s8540_s9 }
  0xee   : > { %p8543_p13 = pnand %p8541_p10, %p8904_p6  ;;  %p8550_p2 = por %p8549_p1, %p8548_p0 }
  0xf0   : > { %p8544_p12 = pneg %p8543_p13 }
  0xf2   : > { %p8551_p4 = pnand %p8550_p2, %p8544_p12 }
  0xf4   : > { %8554 = shalt.err (!%p8551_p4)
}
  0xf5   : > { %s10050_s8 = smov 8   ;;  %s10051_s5 = smov 128  }
  0xf6   : > { %7898 = dma.hbm_to_vmem [thread:$0]  (!%p8894_p5), %s10003_s22, 512, %s865_s24, [#allocation29], %s10051_s5, %s10051_s5, %s10050_s8  }
  0xf7   : > { %s8566_s26 = scalar_lea.vmem %s879_s4, 16  ;;  %s8573_s10 = scalar_lea.vmem %s879_s4, 32 }
  0xf8   : > { %p8567_p8 = scmp.ne.s32.totalorder %s879_s4, %s8566_s26  ;;  %p8574_p11 = scmp.lt.s32.totalorder %s879_s4, %s879_s4 }
  0xf9   : > { %p8575_p10 = scmp.lt.s32.totalorder %s8573_s10, %s8566_s26 }
  0xfa   : > { %p8569_p7 = pnand %p8567_p8, %p8904_p6 }
  0xfb   : > { %p8576_p13 = por %p8575_p10, %p8574_p11 }
  0xfc   : > { %p8570_p9 = pneg %p8569_p7 }
  0xfe   : > { %p8577_p12 = pnand %p8576_p13, %p8570_p9 }
 0x100   : > { %8580 = shalt.err (!%p8577_p12)
}
 0x101   : > { %7901 = dma.hbm_to_vmem [thread:$0]  (!%p8894_p5), %s10004_s23, 16, %s879_s4, [#allocation32]  }
 0x102   : > { %s9082_s6 = sadd.s32 1, %s8683_s28   ;;  %s56_s24 = sadd.s32 1, %s8679_s7 }
 0x103   : > { %s53_s2 = ssub.s32 %s8683_s28, %s9082_s6  ;;  %p63_p0 = scmp.ne.s32.totalorder %s8679_s7, %s8675_s3 }
 0x104   : > { %p54_p6 = scmp.eq.s32.totalorder %s53_s2, 0  ;;  %p64_p1 = scmp.eq.s32.totalorder %s8683_s28, 0 }
 0x105   : > { %p69_p2 = scmp.ne.s32.totalorder %s8675_s3, %s8671_s27  ;;  %p10052_p8 = scmp.eq.s32.totalorder %s8881_s29, 0 }
 0x106   : > { %s9093_s9 = scalar_select %p54_p6, %s8679_s7, %s56_s24  }
 0x107   : > { %p65_p4 = por %p64_p1, %p63_p0  ;;  %p9097_p7 = por %p10052_p8, %p69_p2 }
 0x108   : > { %p7925_p9 = scmp.lt.s32.totalorder %s8683_s28, 2  ;;  %s895_s5 = sand.u32 1, %s8679_s7  }
 0x109   : > { %s10053_s8 = scalar_select %p9097_p7, 1, 0 }
 0x10a   : > { %s7237_s4 = sshll.u32 %s895_s5, 3  ;;  %s7238_s1 = sshll.u32 %s8683_s28, 7 }
 0x10b   : > { %s10054_s10 = sld [smem:[#allocation44_spill]]  ;;  %s899_s27 = scalar_lea.vmem [#allocation2], %s7237_s4 }
 0x10c   : > { %s906_s25 = sshll.u32 %s899_s27, 4  ;;  %p9109_p5 = pnand %p7925_p9, %p65_p4  ;;  %s907_s25 = int_to_ptr.vmem [resolvable:$true] %s906_s25 }
 0x10d   : > { %s896_s24 = scalar_lea.sflag [#allocation3], %s895_s5 }
 0x10e   : > { %p8583_p10 = pneg %p9109_p5 }
 0x111   : > { %s9107_s30 = scalar_lea.hbm %s10054_s10, %s7238_s1  ;;  %s8586_s20 = scalar_lea.hbm %s10054_s10, 256 }
 0x112   : > { %s8581_s11 = scalar_lea.hbm %s9107_s30, 128  ;;  %p8587_p6 = scmp.lt.s32.totalorder %s9107_s30, %s10054_s10 }
 0x113   : > { %p8582_p11 = scmp.ne.s32.totalorder %s9107_s30, %s8581_s11  ;;  %p8588_p0 = scmp.lt.s32.totalorder %s8586_s20, %s8581_s11 }
 0x115   : > { %p8584_p13 = pnand %p8583_p10, %p8582_p11  ;;  %p8589_p1 = por %p8588_p0, %p8587_p6 }
 0x117   : > { %p8585_p12 = pneg %p8584_p13 }
 0x119   : > { %p8590_p2 = pnand %p8589_p1, %p8585_p12 }
 0x11b   : > { %8593 = shalt.err (!%p8590_p2)
}
 0x11c   : > { %s8594_s27 = scalar_lea.vmem %s907_s25, 128  ;;  %s8706_s5 = smov [#allocation2]  }
 0x11d   : > { %p8595_p4 = scmp.ne.s32.totalorder %s907_s25, %s8594_s27  ;;  %s8599_s12 = sshll.u32 %s8706_s5, 4  ;;  %s8600_s12 = int_to_ptr.vmem [resolvable:$false] %s8599_s12 }
 0x11e   : > { %s8601_s13 = scalar_lea.vmem %s8600_s12, 256  ;;  %p8602_p11 = scmp.lt.s32.totalorder %s907_s25, %s8600_s12 }
 0x11f   : > { %p8597_p8 = pnand %p8595_p4, %p8583_p10  ;;  %p8603_p13 = scmp.lt.s32.totalorder %s8601_s13, %s8594_s27 }
 0x121   : > { %p8598_p9 = pneg %p8597_p8  ;;  %p8604_p7 = por %p8603_p13, %p8602_p11 }
 0x123   : > { %p8605_p3 = pnand %p8604_p7, %p8598_p9 }
 0x125   : > { %8608 = shalt.err (!%p8605_p3)
}
 0x126   : > { %7905 = dma.hbm_to_vmem [thread:$0]  (!%p9109_p5), %s9107_s30, 128, %s907_s25, %s896_s24  }
 0x127   : > { %p10056_p12 = scmp.ne.s32.totalorder %s10036_s0, 0 }
 0x128   : > { %s931_s11 = sand.u32 (!%p10056_p12), 1, %s8675_s3   ;;  %p10057_p10 = scmp.ne.s32.totalorder (!%p10056_p12), %s10053_s8, 0 }
 0x129   : > { %929 = sbr.rel (%p10056_p12) target bundleno = 3776 (0xec0), region = 124  ;;  %s9130_s28 = sshll.u32 (!%p10056_p12), %s931_s11, 3 }
 0x12a   : > { %s932_s1 = scalar_lea.sflag (!%p10056_p12), [#allocation3], %s931_s11  ;;  %s10014_s20 = scalar_lea.vmem (!%p10056_p12), [#allocation2], %s9130_s28 }
 0x12e   : > { %8626 = dma.done.wait (%p10057_p10), %s932_s1, 128  }
 0x12f   : > { %8628 = vsyncadd (%p10057_p10), %s932_s1, 4294967168  ;;  %p10058_p3 = scmp.eq.s32.totalorder %s8881_s29, 0 }
 0x131   : > { %8630 = dma.done.wait (%p10058_p3), [#allocation5], 528   ;;  %p10059_p7 = pmov %p10058_p3 }
 0x132   : > { %p10060_p5 = pmov %p10058_p3 }
 0x133   : > { %8632 = vsyncadd (%p10059_p7), [#allocation5], 4294966768 }
 0x134   : > { %8634 = dma.done.wait (%p10060_p5), [#allocation8], 272   ;;  %p10061_p6 = pmov %p10058_p3 }
 0x135   : > { %p10062_p0 = pmov %p10058_p3 }
 0x136   : > { %8636 = vsyncadd (%p10061_p6), [#allocation8], 4294967024 }
 0x137   : > { %8638 = dma.done.wait (%p10062_p0), [#allocation11], 272   ;;  %p10063_p1 = pmov %p10062_p0 }
 0x138   : > { %p10064_p2 = pmov %p10062_p0 }
 0x139   : > { %8640 = vsyncadd (%p10063_p1), [#allocation11], 4294967024 }
 0x13a   : > { %8642 = dma.done.wait (%p10064_p2), [#allocation14], 528   ;;  %p10065_p4 = pmov %p10062_p0 }
 0x13b   : > { %p10066_p8 = pmov %p10062_p0 }
 0x13c   : > { %8644 = vsyncadd (%p10065_p4), [#allocation14], 4294966768 }
 0x13d   : > { %8646 = dma.done.wait (%p10066_p8), [#allocation17], 528   ;;  %p10067_p9 = pmov %p10062_p0 }
 0x13e   : > { %p10068_p11 = pmov %p10062_p0 }
 0x13f   : > { %8648 = vsyncadd (%p10067_p9), [#allocation17], 4294966768 }
 0x140   : > { %8650 = dma.done.wait (%p10068_p11), [#allocation20], 400   ;;  %p10069_p13 = pmov %p10062_p0 }
 0x141   : > { %p10070_p12 = pmov %p10062_p0 }
 0x142   : > { %8652 = vsyncadd (%p10069_p13), [#allocation20], 4294966896 }
 0x143   : > { %8654 = dma.done.wait (%p10070_p12), [#allocation23], 400   ;;  %p10071_p10 = pmov %p10062_p0 }
 0x144   : > { %p10072_p3 = pmov %p10062_p0 }
 0x145   : > { %8656 = vsyncadd (%p10071_p10), [#allocation23], 4294966896 }
 0x146   : > { %8658 = dma.done.wait (%p10072_p3), [#allocation26], 528   ;;  %p10073_p7 = pmov %p10062_p0 }
 0x147   : > { %p10074_p5 = pmov %p10062_p0 }
 0x148   : > { %8660 = vsyncadd (%p10073_p7), [#allocation26], 4294966768 }
 0x149   : > { %8662 = dma.done.wait (%p10074_p5), [#allocation29], 1024   ;;  %p10075_p6 = pmov %p10062_p0 }
 0x14b   : > { %8664 = vsyncadd (%p10075_p6), [#allocation29], 4294966272 }
 0x14c   : > { %8666 = dma.done.wait (%p10062_p0), [#allocation32], 16   ;;  %p10076_p1 = pmov %p10062_p0 }
 0x14d   : > { %p1087_p2 = scmp.lt.s32.totalorder %s8881_s29, 1  ;;  %v8707_v0 = vmov 0.0   ;;  %vm8708_vm0 = vmmov 0   ;;  %s10077_s8 = sld [smem:[#allocation45_spill]]  ;;  %v1108_v1 = vld [vmem:[#allocation7 + $0x8] sm:$0xff]  ;;  %v1105_v2 = vld [vmem:[#allocation4 + $0x18] sm:$0xff]  ;;  %v1381_v25 = vlaneseq }
 0x14e   : > { %8668 = vsyncadd (%p10076_p1), [#allocation32], 4294967280  ;;  %7519 = vmatprep.subr.mxu1 %v8707_v0  ;;  %7508 = vmatprep.subr.mxu0 %v8707_v0  ;;  %v1107_v3 = vld [vmem:[#allocation7] sm:$0xff]  ;;  %vm1204_vm1 = vcmask 130048   ;;  %v1104_v5 = vld [vmem:[#allocation4 + $0x10] sm:$0xff]  ;;  %vm1124_vm2 = vcmask 261120  }
 0x14f   : > { %7523 = vmatprep.mubr.msk.f32.mxu1 %vm8708_vm0, %v8707_v0  ;;  %s10092_s29 = smov (!%p1087_p2, %s8881_s29), 1  ;;  %7516 = vmatprep.mubr.msk.f32.mxu0 %vm8708_vm0, %v8707_v0  ;;  %v1103_v6 = vld [vmem:[#allocation4 + $0x8] sm:$0xff]  ;;  %v1111_v7 = vld [vmem:[#allocation10 + $0x8] sm:$0xff]  ;;  %v1110_v10 = vld [vmem:[#allocation10] sm:$0xff]  ;;  %s8710_s25 = smov 124   ;;  %v1382_v29 = vshrl.u32 %v1381_v25, 7 }
 0x150   : > { %s9185_s12 = sshll.u32 %s10092_s29, 3  ;;  %7520 = vmatpush3.msra.mxu1 %v1108_v1  ;;  %7509 = vmatpush3.msra.mxu0 %v1105_v2  ;;  %v1102_v8 = vld [vmem:[#allocation4] sm:$0xff]  ;;  %v9197_v9 = vld [vmem:[%s10014_s20] sm:$0xff]  ;;  %s8709_s29 = smov 116   ;;  %v8716_v23 = vmov 1983009808  }
 0x151   : > { %7521 = vmatprep.subr.mxu1 %v8707_v0  ;;  %7510 = vmatprep.subr.mxu0 %v8707_v0  ;;  %v7265_v11 = vld [vmem:[#allocation9] ss:$0 sm:$0xff]  ;;  %v7263_v15 = vld [vmem:[#allocation6] ss:$0 sm:$0xff]  ;;  %s8711_s2 = smov 108   ;;  %s8712_s24 = smov 120   ;;  %v1379_v24 = vunpack.c.l.s4 %v8716_v23 }
 0x152   : > { %7522 = vmatpush3.msra.mxu1 %v1107_v3  ;;  %7511 = vmatpush3.msra.mxu0 %v1104_v5  ;;  %s8713_s26 = smov 112   ;;  %s8714_s4 = smov 104   ;;  %v7267_v19 = vld [vmem:[#allocation12] ss:$0 sm:$0xff]  ;;  %v8717_v26 = vmov 1934713408  }
 0x153   : > { %s1090_s30 = scalar_lea.vmem %s10077_s8, %s9185_s12  ;;  %7512 = vmatprep.subr.mxu0 %v8707_v0  ;;  %7526 = vmatprep.subr.mxu1 %v8707_v0  ;;  %s8715_s27 = smov 100   ;;  %v1443_v27 = vunpack.c.l.s4 %v8717_v26  ;;  %v1380_v28 = vunpack.c.0.s8 %v1379_v24  ;;  %vm2236_vm3 = vcmask 31744   ;;  %vm2845_vm4 = vcmask 64512  }
 0x154   : > { %v1100_v4 = vld [vmem:[%s1090_s30] sm:$0xff]  ;;  %7513 = vmatpush3.msra.mxu0 %v1103_v6  ;;  %s10017_s5 = smov 8   ;;  %s10016_s11 = smov 4   ;;  %vm3825_vm5 = vcmask 195584   ;;  %vm3820_vm6 = vcmask 97280   ;;  %vm3823_vm7 = vcmask 162816  }
 0x155   : > { %7524 = vmatmul.mubr.msk.f32.vlgmr.msra.gmra.mxu1 %vm1204_vm1, %v1100_v4  ;;  %7514 = vmatprep.subr.mxu0 %v8707_v0  ;;  %v1444_v32 = vunpack.c.0.s8 %v1443_v27  ;;  %v9244_v33 = vsub.s32 %v1380_v28, %v1382_v29  ;;  %s10015_s1 = smov 12   ;;  %s8721_s13 = smov 20   ;;  %vm3827_vm8 = vcmask 228352  }
 0x156   : > { %7527 = vmatpush3.msra.mxu1 %v1111_v7  ;;  %7515 = vmatpush3.msra.mxu0 %v1102_v8  ;;  %s8722_s0 = smov 16   ;;  %s10078_s20 = sld [smem:[#allocation46_spill]] }
 0x157   : > { %7528 = vmatprep.subr.mxu1 %v8707_v0  ;;  %7517 = vmatmul.mubr.msk.f32.vlgmr.msra.gmra.mxu0 %vm1124_vm2, %v9197_v9  ;;  %v9246_v40 = vsub.s32 %v1444_v32, %v1382_v29  ;;  %s10085_s8 = sld [smem:[#allocation60_spill]] }
 0x158   : > { %7529 = vmatpush3.msra.mxu1 %v1110_v10  ;;  %7530 = vmatprep.mubr.msk.f32.mxu1 %vm8708_vm0, %v8707_v0 }
 0x159   : > { %7533 = vmatprep.subr.mxu1 %v8707_v0  ;;  %7531 = vmatmul.mubr.msk.f32.vlgmr.msra.gmra.mxu1 %vm1204_vm1, %v1100_v4 }
 0x15a   : > { %7543 = vmatprep.subr.mxu0 %v8707_v0  ;;  %7535 = vmatprep.mubr.msk.f32.mxu1 %vm8708_vm0, %v8707_v0 }
 0x15b   : > { %7545 = vmatprep.mubr.msk.f32.mxu0 %vm8708_vm0, %v8707_v0 }
 0x215   : > { %v1274_v12 = vpop.f32.mrf.mxu1 }
 0x216   : > { %v1275_v13 = vadd.f32 %v7265_v11, %v1274_v12 }
 0x217   : > { %v7525_v14 = vpop.f32.mrf.mxu1  ;;  %v1194_v16 = vpop.f32.mrf.mxu0 }
 0x218   : > { %1655 = vrot.lane.b32.xlu1 %v1275_v13, %s8709_s29  ;;  %1649 = vrot.lane.b32.xlu0 %v1275_v13, %s8710_s25  ;;  %v9215_v18 = vadd.f32 %v7263_v15, %v1194_v16 }
 0x219   : > { %v7518_v17 = vpop.f32.mrf.mxu0  ;;  %v1350_v20 = vpop.f32.mrf.mxu1 }
 0x21a   : > { %v9236_v21 = vadd.f32 %v7267_v19, %v1350_v20 }
 0x21b   : > { %v7532_v22 = vpop.f32.mrf.mxu1 }
 0x21c   : > { %1661 = vrot.lane.b32.xlu1 %v1275_v13, %s8711_s2  ;;  %1652 = vrot.lane.b32.xlu0 %v1275_v13, %s8712_s24 }
 0x220   : > { %1658 = vrot.lane.b32.xlu0 %v1275_v13, %s8713_s26  ;;  %1355 = vrot.lane.b32.xlu1 %v9215_v18, %s8710_s25 }
 0x224   : > { %1358 = vrot.lane.b32.xlu0 %v9215_v18, %s8712_s24  ;;  %1361 = vrot.lane.b32.xlu1 %v9215_v18, %s8709_s29 }
 0x228   : > { %1664 = vrot.lane.b32.xlu0 %v1275_v13, %s8714_s4  ;;  %1667 = vrot.lane.b32.xlu1 %v1275_v13, %s8715_s27 }
 0x22c   : > { %1364 = vrot.lane.b32.xlu0 %v9215_v18, %s8713_s26  ;;  %1367 = vrot.lane.b32.xlu1 %v9215_v18, %s8711_s2 }
 0x230   : > { %1370 = vrot.lane.b32.xlu0 %v9215_v18, %s8714_s4  ;;  %1373 = vrot.lane.b32.xlu1 %v9215_v18, %s8715_s27 }
 0x234   : > { %1943 = vrot.lane.b32.xlu1 %v9236_v21, %s8710_s25  ;;  %1946 = vrot.lane.b32.xlu0 %v9236_v21, %s8712_s24 }
 0x238   : > { %1949 = vrot.lane.b32.xlu1 %v9236_v21, %s8709_s29 }
 0x28a   : > { %v1656_v30 = vpop.permute.xlu1 %1655  ;;  %v1650_v31 = vpop.permute.xlu0 %1649 }
 0x28b   : > { %v1686_v34 = vcombine.low %v1650_v31, %v1656_v30  ;;  %v1687_v35 = vcombine.high %v1650_v31, %v1656_v30 }
 0x28d   : > { %v1694_v41 = vrot.slane %v1686_v34, %v9244_v33  ;;  %v1701_v42 = vrot.slane %v1687_v35, %v9244_v33 }
 0x28e   : > { %v1662_v36 = vpop.permute.xlu1 %1661  ;;  %v1653_v37 = vpop.permute.xlu0 %1652 }
 0x28f   : > { %v1670_v38 = vcombine.low %v1275_v13, %v1653_v37  ;;  %v1671_v39 = vcombine.high %v1275_v13, %v1653_v37 }
 0x291   : > { %v1678_v43 = vrot.slane %v1670_v38, %v9244_v33  ;;  %v1685_v44 = vrot.slane %v1671_v39, %v9244_v33 }
 0x292   : > { %v1659_v45 = vpop.permute.xlu0 %1658  ;;  %v1356_v46 = vpop.permute.xlu1 %1355 }
 0x293   : > { %v1734_v47 = vcombine.low %v1678_v43, %v1694_v41  ;;  %v1735_v48 = vcombine.high %v1678_v43, %v1694_v41  ;;  %v1750_v49 = vcombine.low %v1685_v44, %v1701_v42  ;;  %v1751_v50 = vcombine.high %v1685_v44, %v1701_v42 }
 0x295   : > { %v1742_v51 = vrot.slane %v1734_v47, %v9246_v40  ;;  %v1749_v52 = vrot.slane %v1735_v48, %v9246_v40  ;;  %v1758_v53 = vrot.slane %v1750_v49, %v9246_v40  ;;  %v1765_v54 = vrot.slane %v1751_v50, %v9246_v40 }
 0x296   : > { %v1359_v55 = vpop.permute.xlu0 %1358  ;;  %v1362_v56 = vpop.permute.xlu1 %1361 }
 0x297   : > { %v7277_v57 = vcombine.low %v1742_v51, %v1749_v52  ;;  %v7279_v58 = vcombine.high %v1742_v51, %v1749_v52  ;;  %v7281_v59 = vcombine.low %v1758_v53, %v1765_v54  ;;  %v7283_v60 = vcombine.high %v1758_v53, %v1765_v54 }
 0x298   : > { %v1376_v61 = vcombine.low %v9215_v18, %v1359_v55  ;;  %v1377_v62 = vcombine.high %v9215_v18, %v1359_v55  ;;  %v1392_v63 = vcombine.low %v1356_v46, %v1362_v56  ;;  %v1393_v1 = vcombine.high %v1356_v46, %v1362_v56 }
 0x299   : > { %v1814_v2 = vrot.slane %v7277_v57, %v9244_v33  ;;  %v1830_v3 = vrot.slane %v7279_v58, %v9244_v33  ;;  %v1846_v4 = vrot.slane %v7281_v59, %v9244_v33  ;;  %v1862_v5 = vrot.slane %v7283_v60, %v9244_v33 }
 0x29a   : > { %v1384_v6 = vrot.slane %v1376_v61, %v9244_v33  ;;  %v1391_v7 = vrot.slane %v1377_v62, %v9244_v33  ;;  %v1400_v8 = vrot.slane %v1392_v63, %v9244_v33  ;;  %v1407_v10 = vrot.slane %v1393_v1, %v9244_v33  ;;  %v1665_v11 = vpop.permute.xlu0 %1664  ;;  %v1668_v12 = vpop.permute.xlu1 %1667 }
 0x29b   : > { %v1870_v13 = vcombine.low %v1814_v2, %v1830_v3  ;;  %v1871_v14 = vcombine.high %v1814_v2, %v1830_v3  ;;  %v1902_v15 = vcombine.low %v1846_v4, %v1862_v5  ;;  %v1903_v16 = vcombine.high %v1846_v4, %v1862_v5 }
 0x29c   : > { %v1440_v17 = vcombine.low %v1384_v6, %v1400_v8  ;;  %v1441_v18 = vcombine.high %v1384_v6, %v1400_v8  ;;  %v1456_v19 = vcombine.low %v1391_v7, %v1407_v10  ;;  %v1457_v20 = vcombine.high %v1391_v7, %v1407_v10 }
 0x29d   : > { %v1702_v22 = vcombine.low %v1659_v45, %v1665_v11  ;;  %v1703_v23 = vcombine.high %v1659_v45, %v1665_v11  ;;  %v1718_v24 = vcombine.low %v1662_v36, %v1668_v12  ;;  %v1719_v25 = vcombine.high %v1662_v36, %v1668_v12 }
 0x29e   : > { %v1448_v26 = vrot.slane %v1440_v17, %v9246_v40  ;;  %v1455_v27 = vrot.slane %v1441_v18, %v9246_v40  ;;  %v1464_v28 = vrot.slane %v1456_v19, %v9246_v40  ;;  %v1471_v29 = vrot.slane %v1457_v20, %v9246_v40  ;;  %v1365_v35 = vpop.permute.xlu0 %1364  ;;  %v1368_v45 = vpop.permute.xlu1 %1367 }
 0x29f   : > { %v1710_v30 = vrot.slane %v1702_v22, %v9244_v33  ;;  %v1717_v31 = vrot.slane %v1703_v23, %v9244_v33  ;;  %v1726_v32 = vrot.slane %v1718_v24, %v9244_v33  ;;  %v1733_v34 = vrot.slane %v1719_v25, %v9244_v33 }
 0x2a0   : > { %v7269_v37 = vcombine.low %v1448_v26, %v1455_v27  ;;  %v7271_v36 = vcombine.high %v1448_v26, %v1455_v27  ;;  %v7273_v38 = vcombine.low %v1464_v28, %v1471_v29  ;;  %v7275_v39 = vcombine.high %v1464_v28, %v1471_v29 }
 0x2a1   : > { %v1766_v41 = vcombine.low %v1710_v30, %v1726_v32  ;;  %v1767_v42 = vcombine.high %v1710_v30, %v1726_v32  ;;  %v1782_v43 = vcombine.low %v1717_v31, %v1733_v34  ;;  %v1783_v44 = vcombine.high %v1717_v31, %v1733_v34 }
 0x2a2   : > { %v1520_v46 = vrot.slane %v7269_v37, %v9244_v33  ;;  %v1536_v47 = vrot.slane %v7271_v36, %v9244_v33  ;;  %v1552_v48 = vrot.slane %v7273_v38, %v9244_v33  ;;  %v1568_v49 = vrot.slane %v7275_v39, %v9244_v33  ;;  %v1371_v62 = vpop.permute.xlu0 %1370  ;;  %v1374_v8 = vpop.permute.xlu1 %1373 }
 0x2a3   : > { %v1774_v50 = vrot.slane %v1766_v41, %v9246_v40  ;;  %v1781_v51 = vrot.slane %v1767_v42, %v9246_v40  ;;  %v1790_v52 = vrot.slane %v1782_v43, %v9246_v40  ;;  %v1797_v53 = vrot.slane %v1783_v44, %v9246_v40 }
 0x2a4   : > { %v1576_v54 = vcombine.low %v1520_v46, %v1536_v47  ;;  %v1577_v55 = vcombine.high %v1520_v46, %v1536_v47  ;;  %v1608_v56 = vcombine.low %v1552_v48, %v1568_v49  ;;  %v1609_v57 = vcombine.high %v1552_v48, %v1568_v49 }
 0x2a5   : > { %v7278_v58 = vcombine.low %v1774_v50, %v1781_v51  ;;  %v7280_v59 = vcombine.high %v1774_v50, %v1781_v51  ;;  %v7282_v60 = vcombine.low %v1790_v52, %v1797_v53  ;;  %v7284_v61 = vcombine.high %v1790_v52, %v1797_v53 }
 0x2a6   : > { %v1878_v63 = vrot.slane %v1870_v13, %v9246_v40  ;;  %v1910_v1 = vrot.slane %v1902_v15, %v9246_v40  ;;  %v1885_v2 = vrot.slane %v1871_v14, %v9246_v40  ;;  %v1917_v3 = vrot.slane %v1903_v16, %v9246_v40 }
 0x2a7   : > { %v9287_v4 = vrot.slane %v7278_v58, %v9244_v33  ;;  %v9290_v5 = vrot.slane %v7280_v59, %v9244_v33  ;;  %v9293_v6 = vrot.slane %v7282_v60, %v9244_v33  ;;  %v9296_v7 = vrot.slane %v7284_v61, %v9244_v33  ;;  %v1944_v60 = vpop.permute.xlu1 %1943  ;;  %v1947_v61 = vpop.permute.xlu0 %1946 }
 0x2a8   : > { %v1934_v10 = vcombine.low %v1878_v63, %v1910_v1  ;;  %v1936_v11 = vcombine.low %v1885_v2, %v1917_v3  ;;  %v1408_v12 = vcombine.low %v1365_v35, %v1371_v62  ;;  %v1409_v13 = vcombine.high %v1365_v35, %v1371_v62 }
 0x2a9   : > { %v1886_v14 = vcombine.low %v9287_v4, %v9290_v5  ;;  %v1918_v15 = vcombine.low %v9293_v6, %v9296_v7  ;;  %v1424_v17 = vcombine.low %v1368_v45, %v1374_v8  ;;  %v1425_v19 = vcombine.high %v1368_v45, %v1374_v8 }
 0x2aa   : > { %7534 = vmatpush3.xpose.msk.msra.mxu1 %vm2236_vm3, %v1934_v10  ;;  %7544 = vmatpush3.xpose.msk.msra.mxu0 %vm2236_vm3, %v1936_v11  ;;  %v1416_v16 = vrot.slane %v1408_v12, %v9244_v33  ;;  %v1423_v18 = vrot.slane %v1409_v13, %v9244_v33  ;;  %v1584_v20 = vrot.slane %v1576_v54, %v9246_v40 }
 0x2ab   : > { %7538 = vmatprep.subr.mxu1 %v8707_v0  ;;  %v1616_v22 = vrot.slane %v1608_v56, %v9246_v40  ;;  %v1432_v23 = vrot.slane %v1424_v17, %v9244_v33  ;;  %v1591_v24 = vrot.slane %v1577_v55, %v9246_v40  ;;  %v1623_v25 = vrot.slane %v1609_v57, %v9246_v40  ;;  %v1950_v8 = vpop.permute.xlu1 %1949 }
 0x2ac   : > { %7553 = vmatprep.subr.mxu0 %v8707_v0  ;;  %v1439_v26 = vrot.slane %v1425_v19, %v9244_v33  ;;  %v1935_v28 = vcombine.high %v1878_v63, %v1910_v1  ;;  %v1894_v29 = vrot.slane %v1886_v14, %v9246_v40  ;;  %v1926_v34 = vrot.slane %v1918_v15, %v9246_v40 }
 0x2ad   : > { %v1640_v27 = vcombine.low %v1584_v20, %v1616_v22  ;;  %v1472_v30 = vcombine.low %v1416_v16, %v1432_v23  ;;  %v1473_v31 = vcombine.high %v1416_v16, %v1432_v23  ;;  %v1642_v32 = vcombine.low %v1591_v24, %v1623_v25 }
 0x2ae   : > { %v1887_v35 = vcombine.high %v9287_v4, %v9290_v5  ;;  %v1919_v37 = vcombine.high %v9293_v6, %v9296_v7  ;;  %v1488_v36 = vcombine.low %v1423_v18, %v1439_v26  ;;  %v1489_v38 = vcombine.high %v1423_v18, %v1439_v26 }
 0x2af   : > { %7536 = vmatmul.mubr.msk.f32.vlgmr.msra.gmra.mxu1 %vm2236_vm3, %v1640_v27  ;;  %v1480_v39 = vrot.slane %v1472_v30, %v9246_v40  ;;  %v1487_v41 = vrot.slane %v1473_v31, %v9246_v40  ;;  %7546 = vmatmul.mubr.msk.f32.vlgmr.msra.gmra.mxu0 %vm2236_vm3, %v1642_v32  ;;  %v1938_v42 = vcombine.low %v1894_v29, %v1926_v34 }
 0x2b0   : > { %7539 = vmatpush3.xpose.msk.msra.mxu1 %vm2236_vm3, %v1935_v28  ;;  %v1496_v43 = vrot.slane %v1488_v36, %v9246_v40  ;;  %v1503_v44 = vrot.slane %v1489_v38, %v9246_v40  ;;  %7540 = vmatprep.mubr.msk.f32.mxu1 %vm8708_vm0, %v8707_v0  ;;  %v1641_v45 = vcombine.high %v1584_v20, %v1616_v22 }
 0x2b1   : > { %7548 = vmatprep.subr.mxu1 %v8707_v0  ;;  %v7270_v46 = vcombine.low %v1480_v39, %v1487_v41  ;;  %v7272_v47 = vcombine.high %v1480_v39, %v1487_v41  ;;  %v1937_v48 = vcombine.high %v1885_v2, %v1917_v3  ;;  %7554 = vmatpush3.xpose.msk.msra.mxu0 %vm2236_vm3, %v1938_v42 }
 0x2b2   : > { %7555 = vmatprep.mubr.msk.f32.mxu0 %vm8708_vm0, %v8707_v0  ;;  %v7274_v49 = vcombine.low %v1496_v43, %v1503_v44  ;;  %v7276_v50 = vcombine.high %v1496_v43, %v1503_v44  ;;  %7563 = vmatprep.subr.mxu0 %v8707_v0  ;;  %v1643_v55 = vcombine.high %v1591_v24, %v1623_v25 }
 0x2b3   : > { %7541 = vmatmul.mubr.msk.f32.vlgmr.msra.gmra.mxu1 %vm2236_vm3, %v1641_v45  ;;  %v1527_v51 = vrot.slane %v7270_v46, %v9244_v33  ;;  %v1543_v52 = vrot.slane %v7272_v47, %v9244_v33  ;;  %v1939_v57 = vcombine.high %v1894_v29, %v1926_v34  ;;  %v1901_v58 = vrot.slane %v1887_v35, %v9246_v40 }
 0x2b4   : > { %7549 = vmatpush3.xpose.msk.msra.mxu1 %vm2236_vm3, %v1937_v48  ;;  %7550 = vmatprep.mubr.msk.f32.mxu1 %vm8708_vm0, %v8707_v0  ;;  %v1559_v53 = vrot.slane %v7274_v49, %v9244_v33  ;;  %v1575_v54 = vrot.slane %v7276_v50, %v9244_v33  ;;  %v1933_v59 = vrot.slane %v1919_v37, %v9246_v40 }
 0x2b5   : > { %7558 = vmatprep.subr.mxu1 %v8707_v0  ;;  %v1592_v56 = vcombine.low %v1527_v51, %v1543_v52  ;;  %v1593_v62 = vcombine.high %v1527_v51, %v1543_v52  ;;  %v1964_v3 = vcombine.low %v9236_v21, %v1947_v61  ;;  %v1965_v4 = vcombine.high %v9236_v21, %v1947_v61 }
 0x2b6   : > { %v1624_v63 = vcombine.low %v1559_v53, %v1575_v54  ;;  %v1625_v1 = vcombine.high %v1559_v53, %v1575_v54  ;;  %v1940_v6 = vcombine.low %v1901_v58, %v1933_v59  ;;  %v1941_v7 = vcombine.high %v1901_v58, %v1933_v59 }
 0x2b7   : > { %7551 = vmatmul.mubr.msk.f32.vlgmr.msra.gmra.mxu1 %vm2236_vm3, %v1643_v55  ;;  %v1600_v2 = vrot.slane %v1592_v56, %v9246_v40  ;;  %v1607_v12 = vrot.slane %v1593_v62, %v9246_v40  ;;  %v1972_v14 = vrot.slane %v1964_v3, %v9244_v33  ;;  %v1979_v15 = vrot.slane %v1965_v4, %v9244_v33 }
 0x2b8   : > { %7559 = vmatpush3.xpose.msk.msra.mxu1 %vm2236_vm3, %v1939_v57  ;;  %7560 = vmatprep.mubr.msk.f32.mxu1 %vm8708_vm0, %v8707_v0  ;;  %v1632_v5 = vrot.slane %v1624_v63, %v9246_v40  ;;  %v1639_v13 = vrot.slane %v1625_v1, %v9246_v40  ;;  %v1980_v16 = vcombine.low %v1944_v60, %v1950_v8 }
 0x2b9   : > { %7568 = vmatprep.subr.mxu1 %v8707_v0  ;;  %v1981_v17 = vcombine.high %v1944_v60, %v1950_v8 }
 0x2ba   : > { %v1644_v10 = vcombine.low %v1600_v2, %v1632_v5  ;;  %v1645_v11 = vcombine.high %v1600_v2, %v1632_v5  ;;  %v1988_v18 = vrot.slane %v1980_v16, %v9244_v33  ;;  %v1646_v20 = vcombine.low %v1607_v12, %v1639_v13 }
 0x2bb   : > { %v1995_v19 = vrot.slane %v1981_v17, %v9244_v33  ;;  %v1647_v22 = vcombine.high %v1607_v12, %v1639_v13 }
 0x2bc   : > { %7556 = vmatmul.mubr.msk.f32.vlgmr.msra.gmra.mxu0 %vm2236_vm3, %v1644_v10  ;;  %7561 = vmatmul.mubr.msk.f32.vlgmr.msra.gmra.mxu1 %vm2236_vm3, %v1645_v11  ;;  %v2028_v23 = vcombine.low %v1972_v14, %v1988_v18  ;;  %v2029_v24 = vcombine.high %v1972_v14, %v1988_v18 }
 0x2bd   : > { %7564 = vmatpush3.xpose.msk.msra.mxu0 %vm2236_vm3, %v1940_v6  ;;  %7569 = vmatpush3.xpose.msk.msra.mxu1 %vm2236_vm3, %v1941_v7  ;;  %v2044_v25 = vcombine.low %v1979_v15, %v1995_v19  ;;  %v2045_v26 = vcombine.high %v1979_v15, %v1995_v19 }
 0x2be   : > { %7565 = vmatprep.mubr.msk.f32.mxu0 %vm8708_vm0, %v8707_v0  ;;  %7570 = vmatprep.mubr.msk.f32.mxu1 %vm8708_vm0, %v8707_v0  ;;  %v2036_v27 = vrot.slane %v2028_v23, %v9246_v40  ;;  %v2043_v28 = vrot.slane %v2029_v24, %v9246_v40 }
 0x2bf   : > { %7573 = vmatprep.subr.mxu0 %v8707_v0  ;;  %v2052_v29 = vrot.slane %v2044_v25, %v9246_v40  ;;  %v2059_v30 = vrot.slane %v2045_v26, %v9246_v40  ;;  %7578 = vmatprep.subr.mxu1 %v8707_v0 }
 0x2c0   : > { %7566 = vmatmul.mubr.msk.f32.vlgmr.msra.gmra.mxu0 %vm2236_vm3, %v1646_v20  ;;  %7571 = vmatmul.mubr.msk.f32.vlgmr.msra.gmra.mxu1 %vm2236_vm3, %v1647_v22  ;;  %v7285_v31 = vcombine.low %v2036_v27, %v2043_v28  ;;  %v7287_v32 = vcombine.high %v2036_v27, %v2043_v28 }
 0x2c1   : > { %7575 = vmatprep.mubr.msk.f32.mxu0 %vm8708_vm0, %v8707_v0  ;;  %7580 = vmatprep.mubr.msk.f32.mxu1 %vm8708_vm0, %v8707_v0  ;;  %v7289_v34 = vcombine.low %v2052_v29, %v2059_v30  ;;  %v7291_v35 = vcombine.high %v2052_v29, %v2059_v30 }
 0x2c2   : > { %v2108_v37 = vrot.slane %v7285_v31, %v9244_v33  ;;  %v2124_v36 = vrot.slane %v7287_v32, %v9244_v33 }
 0x2c3   : > { %v2140_v38 = vrot.slane %v7289_v34, %v9244_v33  ;;  %v2156_v39 = vrot.slane %v7291_v35, %v9244_v33 }
 0x2c4   : > { %v2164_v41 = vcombine.low %v2108_v37, %v2124_v36  ;;  %v2165_v47 = vcombine.high %v2108_v37, %v2124_v36 }
 0x2c5   : > { %v2196_v42 = vcombine.low %v2140_v38, %v2156_v39  ;;  %v2197_v48 = vcombine.high %v2140_v38, %v2156_v39 }
 0x2c6   : > { %v2172_v43 = vrot.slane %v2164_v41, %v9246_v40  ;;  %v9389_v49 = vrot.slane %v2165_v47, %v9246_v40 }
 0x2c7   : > { %v2204_v44 = vrot.slane %v2196_v42, %v9246_v40  ;;  %v9392_v50 = vrot.slane %v2197_v48, %v9246_v40 }
 0x2c9   : > { %v2228_v45 = vcombine.low %v2172_v43, %v2204_v44  ;;  %v2229_v46 = vcombine.high %v2172_v43, %v2204_v44  ;;  %v2230_v51 = vcombine.low %v9389_v49, %v9392_v50  ;;  %v2231_v52 = vcombine.high %v9389_v49, %v9392_v50 }
 0x2cb   : > { %7574 = vmatpush3.msra.mxu0 %v2228_v45  ;;  %7579 = vmatpush3.msra.mxu1 %v2229_v46 }
 0x2cc   : > { %7583 = vmatprep.subr.mxu0 %v8707_v0  ;;  %7588 = vmatprep.subr.mxu1 %v8707_v0 }
 0x36f   : > { %v2309_v53 = vpop.f32.mrf.mxu1  ;;  %v2461_v54 = vpop.f32.mrf.mxu0 }
 0x370   : > { %v2846_v55 = vsel %vm2845_vm4, %v2309_v53, -inf  ;;  %v2852_v60 = vsel %vm2845_vm4, %v2461_v54, -inf }
 0x371   : > { %2847 = vmax.xlane.f32.xlu0 %v2846_v55  ;;  %v7537_v56 = vpop.f32.mrf.mxu1  ;;  %v7547_v57 = vpop.f32.mrf.mxu0 }
 0x373   : > { %v2385_v58 = vpop.f32.mrf.mxu1 }
 0x374   : > { %v2849_v59 = vsel %vm2845_vm4, %v2385_v58, -inf }
 0x375   : > { %2850 = vmax.xlane.f32.xlu1 %v2849_v59  ;;  %v7542_v61 = vpop.f32.mrf.mxu1  ;;  %2853 = vmax.xlane.f32.xlu0 %v2852_v60 }
 0x377   : > { %v2537_v62 = vpop.f32.mrf.mxu1 }
 0x378   : > { %v2855_v63 = vsel %vm2845_vm4, %v2537_v62, -inf }
 0x379   : > { %v7552_v1 = vpop.f32.mrf.mxu1  ;;  %2856 = vmax.xlane.f32.xlu0 %v2855_v63 }
 0x37c   : > { %v2613_v2 = vpop.f32.mrf.mxu0  ;;  %v2689_v3 = vpop.f32.mrf.mxu1 }
 0x37d   : > { %v2861_v4 = vsel %vm2845_vm4, %v2689_v3, -inf  ;;  %v2858_v5 = vsel %vm2845_vm4, %v2613_v2, -inf }
 0x37e   : > { %v7562_v6 = vpop.f32.mrf.mxu1  ;;  %2862 = vmax.xlane.f32.xlu0 %v2861_v4  ;;  %2859 = vmax.xlane.f32.xlu1 %v2858_v5  ;;  %v7557_v7 = vpop.f32.mrf.mxu0 }
 0x380   : > { %v2765_v8 = vpop.f32.mrf.mxu0  ;;  %v2841_v10 = vpop.f32.mrf.mxu1 }
 0x381   : > { %v2867_v11 = vsel %vm2845_vm4, %v2841_v10, -inf  ;;  %v2864_v12 = vsel %vm2845_vm4, %v2765_v8, -inf }
 0x382   : > { %v7572_v13 = vpop.f32.mrf.mxu1  ;;  %2868 = vmax.xlane.f32.xlu0 %v2867_v11  ;;  %2865 = vmax.xlane.f32.xlu1 %v2864_v12  ;;  %v7567_v14 = vpop.f32.mrf.mxu0 }
 0x393   : > { %1955 = vrot.lane.b32.xlu1 %v9236_v21, %s8711_s2 }
 0x398   : > { %1952 = vrot.lane.b32.xlu0 %v9236_v21, %s8713_s26 }
 0x3fa   : > { %v2848_v15 = vpop.xlane.xlu0 %2847 }
 0x3fb   : > { %v2870_v16 = vsub.f32 %v2309_v53, %v2848_v15 }
 0x3fd   : > { %v2878_v17 = vmul.f32 1.442695, %v2870_v16 }
 0x3fe   : > { %v2851_v18 = vpop.xlane.xlu1 %2850  ;;  %v2854_v19 = vpop.xlane.xlu0 %2853 }
 0x3ff   : > { %8016 = vpow2.f32 %v2878_v17  ;;  %v2871_v20 = vsub.f32 %v2385_v58, %v2851_v18  ;;  %v2872_v22 = vsub.f32 %v2461_v54, %v2854_v19 }
 0x401   : > { %v2880_v23 = vmul.f32 1.442695, %v2871_v20  ;;  %v2882_v24 = vmul.f32 1.442695, %v2872_v22 }
 0x402   : > { %v2857_v25 = vpop.xlane.xlu0 %2856 }
 0x403   : > { %8018 = vpow2.f32 %v2880_v23  ;;  %v2873_v26 = vsub.f32 %v2537_v62, %v2857_v25 }
 0x404   : > { %8020 = vpow2.f32 %v2882_v24 }
 0x405   : > { %v2884_v27 = vmul.f32 1.442695, %v2873_v26 }
 0x407   : > { %8022 = vpow2.f32 %v2884_v27  ;;  %v2863_v28 = vpop.xlane.xlu0 %2862  ;;  %v2860_v29 = vpop.xlane.xlu1 %2859 }
 0x408   : > { %v2875_v30 = vsub.f32 %v2689_v3, %v2863_v28  ;;  %v2874_v31 = vsub.f32 %v2613_v2, %v2860_v29 }
 0x40a   : > { %v2888_v32 = vmul.f32 1.442695, %v2875_v30  ;;  %v2886_v34 = vmul.f32 1.442695, %v2874_v31 }
 0x40b   : > { %v2869_v37 = vpop.xlane.xlu0 %2868  ;;  %v2866_v36 = vpop.xlane.xlu1 %2865 }
 0x40c   : > { %v8017_v35 = vpop.eup %8016  ;;  %8024 = vpow2.f32 %v2888_v32  ;;  %v2877_v38 = vsub.f32 %v2841_v10, %v2869_v37  ;;  %v2876_v39 = vsub.f32 %v2765_v8, %v2866_v36 }
 0x40d   : > { %v2894_v41 = vsel %vm2845_vm4, %v8017_v35, 0.0  ;;  %8026 = vpow2.f32 %v2886_v34 }
 0x40e   : > { %2895 = vadd.xlane.f32.xlu1 %v2894_v41  ;;  %v2892_v42 = vmul.f32 1.442695, %v2877_v38  ;;  %v2890_v43 = vmul.f32 1.442695, %v2876_v39 }
 0x40f   : > { %v1956_v62 = vpop.permute.xlu1 %1955  ;;  %v1953_v63 = vpop.permute.xlu0 %1952 }
 0x410   : > { %v8019_v44 = vpop.eup %8018  ;;  %8028 = vpow2.f32 %v2892_v42 }
 0x411   : > { %v8021_v45 = vpop.eup %8020  ;;  %v2897_v46 = vsel %vm2845_vm4, %v8019_v44, 0.0  ;;  %8030 = vpow2.f32 %v2890_v43 }
 0x412   : > { %2898 = vadd.xlane.f32.xlu0 %v2897_v46  ;;  %v2900_v47 = vsel %vm2845_vm4, %v8021_v45, 0.0 }
 0x413   : > { %2901 = vadd.xlane.f32.xlu1 %v2900_v47 }
 0x414   : > { %v8023_v48 = vpop.eup %8022 }
 0x415   : > { %v2903_v53 = vsel %vm2845_vm4, %v8023_v48, 0.0 }
 0x416   : > { %2904 = vadd.xlane.f32.xlu0 %v2903_v53 }
 0x419   : > { %v9414_v54 = vpop.eup %8024 }
 0x41a   : > { %v9416_v55 = vpop.eup %8026  ;;  %v2909_v56 = vsel %vm2845_vm4, %v9414_v54, 0.0 }
 0x41b   : > { %2910 = vadd.xlane.f32.xlu0 %v2909_v56  ;;  %v2906_v57 = vsel %vm2845_vm4, %v9416_v55, 0.0 }
 0x41c   : > { %2907 = vadd.xlane.f32.xlu1 %v2906_v57 }
 0x41d   : > { %v9422_v58 = vpop.eup %8028 }
 0x41e   : > { %v9424_v59 = vpop.eup %8030  ;;  %v2915_v60 = vsel %vm2845_vm4, %v9422_v58, 0.0 }
 0x41f   : > { %2916 = vadd.xlane.f32.xlu0 %v2915_v60  ;;  %v2912_v61 = vsel %vm2845_vm4, %v9424_v59, 0.0 }
 0x420   : > { %2913 = vadd.xlane.f32.xlu1 %v2912_v61 }
 0x431   : > { %1958 = vrot.lane.b32.xlu1 %v9236_v21, %s8714_s4 }
 0x435   : > { %1961 = vrot.lane.b32.xlu0 %v9236_v21, %s8715_s27 }
 0x497   : > { %v2896_v1 = vpop.xlane.xlu1 %2895 }
 0x498   : > { %8032 = vrcp.f32 %v2896_v1 }
 0x49b   : > { %v2899_v2 = vpop.xlane.xlu0 %2898 }
 0x49c   : > { %8034 = vrcp.f32 %v2899_v2  ;;  %v2902_v3 = vpop.xlane.xlu1 %2901 }
 0x49d   : > { %8036 = vrcp.f32 %v2902_v3 }
 0x49f   : > { %v2905_v4 = vpop.xlane.xlu0 %2904 }
 0x4a0   : > { %8038 = vrcp.f32 %v2905_v4 }
 0x4a4   : > { %v2911_v6 = vpop.xlane.xlu0 %2910 }
 0x4a5   : > { %v8033_v5 = vpop.eup %8032  ;;  %v2908_v7 = vpop.xlane.xlu1 %2907  ;;  %8040 = vrcp.f32 %v2911_v6  ;;  %v3908_v6 = vld [vmem:[#allocation16] sm:$0xff] }
 0x4a6   : > { %v2926_v8 = vmul.f32 %v8033_v5, %v8017_v35  ;;  %8042 = vrcp.f32 %v2908_v7 }
 0x4a8   : > { %7576 = vmatmul.mubr.msk.f32.vlgmr.msra.gmra.mxu0 %vm2845_vm4, %v2926_v8  ;;  %v2917_v11 = vpop.xlane.xlu0 %2916 }
 0x4a9   : > { %v8035_v10 = vpop.eup %8034  ;;  %7584 = vmatpush3.msra.mxu0 %v2230_v51  ;;  %7585 = vmatprep.mubr.msk.f32.mxu0 %vm8708_vm0, %v8707_v0  ;;  %v2914_v12 = vpop.xlane.xlu1 %2913  ;;  %8044 = vrcp.f32 %v2917_v11 }
 0x4aa   : > { %v8037_v21 = vpop.eup %8036  ;;  %v2927_v13 = vmul.f32 %v8035_v10, %v8019_v44  ;;  %7593 = vmatprep.subr.mxu0 %v8707_v0  ;;  %8046 = vrcp.f32 %v2914_v12 }
 0x4ab   : > { %v2928_v14 = vmul.f32 %v8037_v21, %v8021_v45 }
 0x4ac   : > { %7581 = vmatmul.mubr.msk.f32.vlgmr.msra.gmra.mxu1 %vm2845_vm4, %v2927_v13  ;;  %v1962_v16 = vpop.permute.xlu0 %1961 }
 0x4ad   : > { %v8039_v15 = vpop.eup %8038  ;;  %7586 = vmatmul.mubr.msk.f32.vlgmr.msra.gmra.mxu0 %vm2845_vm4, %v2928_v14  ;;  %7589 = vmatpush3.msra.mxu1 %v2231_v52  ;;  %v2012_v51 = vcombine.low %v1956_v62, %v1962_v16  ;;  %v2013_v17 = vcombine.high %v1956_v62, %v1962_v16  ;;  %v1959_v18 = vpop.permute.xlu1 %1958 }
 0x4ae   : > { %7590 = vmatprep.mubr.msk.f32.mxu1 %vm8708_vm0, %v8707_v0  ;;  %v2929_v19 = vmul.f32 %v8039_v15, %v8023_v48  ;;  %7598 = vmatprep.subr.mxu1 %v8707_v0  ;;  %v1996_v20 = vcombine.low %v1953_v63, %v1959_v18  ;;  %v1997_v22 = vcombine.high %v1953_v63, %v1959_v18 }
 0x4af   : > { %7595 = vmatprep.mubr.msk.f32.mxu0 %vm8708_vm0, %v8707_v0  ;;  %v2020_v23 = vrot.slane %v2012_v51, %v9244_v33  ;;  %v2027_v49 = vrot.slane %v2013_v17, %v9244_v33 }
 0x4b0   : > { %7591 = vmatmul.mubr.msk.f32.vlgmr.msra.gmra.mxu1 %vm2845_vm4, %v2929_v19  ;;  %v2004_v50 = vrot.slane %v1996_v20, %v9244_v33  ;;  %v2011_v52 = vrot.slane %v1997_v22, %v9244_v33 }
 0x4b1   : > { %7600 = vmatprep.mubr.msk.f32.mxu1 %vm8708_vm0, %v8707_v0 }
 0x4b2   : > { %v2060_v24 = vcombine.low %v2004_v50, %v2020_v23  ;;  %v2061_v25 = vcombine.high %v2004_v50, %v2020_v23  ;;  %v2076_v26 = vcombine.low %v2011_v52, %v2027_v49  ;;  %v2077_v27 = vcombine.high %v2011_v52, %v2027_v49  ;;  %v8041_v46 = vpop.eup %8040 }
 0x4b3   : > { %v8043_v47 = vpop.eup %8042  ;;  %v2931_v1 = vmul.f32 %v8041_v46, %v9414_v54  ;;  %v3911_v54 = vld [vmem:[#allocation16 + $0x18] sm:$0xff] }
 0x4b4   : > { %v2068_v28 = vrot.slane %v2060_v24, %v9246_v40  ;;  %v2075_v29 = vrot.slane %v2061_v25, %v9246_v40  ;;  %v2084_v30 = vrot.slane %v2076_v26, %v9246_v40  ;;  %v2091_v31 = vrot.slane %v2077_v27, %v9246_v40 }
 0x4b5   : > { %v2930_v63 = vmul.f32 %v8043_v47, %v9416_v55 }
 0x4b6   : > { %v7286_v32 = vcombine.low %v2068_v28, %v2075_v29  ;;  %v7288_v34 = vcombine.high %v2068_v28, %v2075_v29  ;;  %v7290_v35 = vcombine.low %v2084_v30, %v2091_v31  ;;  %v7292_v37 = vcombine.high %v2084_v30, %v2091_v31  ;;  %v8045_v60 = vpop.eup %8044  ;;  %v1116_v31 = vld [vmem:[#allocation13 + $0x18] sm:$0xff] }
 0x4b7   : > { %v8047_v2 = vpop.eup %8046  ;;  %v2933_v55 = vmul.f32 %v8045_v60, %v9422_v58  ;;  %v3910_v58 = vld [vmem:[#allocation16 + $0x10] sm:$0xff] }
 0x4b8   : > { %v2115_v36 = vrot.slane %v7286_v32, %v9244_v33  ;;  %v2131_v38 = vrot.slane %v7288_v34, %v9244_v33  ;;  %v2147_v39 = vrot.slane %v7290_v35, %v9244_v33  ;;  %v2163_v41 = vrot.slane %v7292_v37, %v9244_v33 }
 0x4b9   : > { %v2932_v5 = vmul.f32 %v8047_v2, %v9424_v59  ;;  %v3909_v59 = vld [vmem:[#allocation16 + $0x8] sm:$0xff] }
 0x4ba   : > { %v2180_v42 = vcombine.low %v2115_v36, %v2131_v38  ;;  %v2212_v43 = vcombine.low %v2147_v39, %v2163_v41  ;;  %v2181_v44 = vcombine.high %v2115_v36, %v2131_v38  ;;  %v2213_v45 = vcombine.high %v2147_v39, %v2163_v41 }
 0x4bc   : > { %v2188_v48 = vrot.slane %v2180_v42, %v9246_v40  ;;  %v2220_v53 = vrot.slane %v2212_v43, %v9246_v40  ;;  %v2195_v56 = vrot.slane %v2181_v44, %v9246_v40  ;;  %v2227_v57 = vrot.slane %v2213_v45, %v9246_v40 }
 0x4be   : > { %v2232_v61 = vcombine.low %v2188_v48, %v2220_v53  ;;  %v2233_v62 = vcombine.high %v2188_v48, %v2220_v53  ;;  %v2234_v3 = vcombine.low %v2195_v56, %v2227_v57  ;;  %v2235_v4 = vcombine.high %v2195_v56, %v2227_v57 }
 0x4c0   : > { %7594 = vmatpush3.msra.mxu0 %v2232_v61  ;;  %7599 = vmatpush3.msra.mxu1 %v2233_v62 }
 0x4c1   : > { %7596 = vmatmul.mubr.msk.f32.vlgmr.msra.gmra.mxu0 %vm2845_vm4, %v2930_v63  ;;  %7601 = vmatmul.mubr.msk.f32.vlgmr.msra.gmra.mxu1 %vm2845_vm4, %v2931_v1 }
 0x4c2   : > { %7603 = vmatprep.subr.mxu0 %v8707_v0  ;;  %7608 = vmatprep.subr.mxu1 %v8707_v0 }
 0x4c3   : > { %7604 = vmatpush3.msra.mxu0 %v2234_v3  ;;  %7609 = vmatpush3.msra.mxu1 %v2235_v4 }
 0x4c4   : > { %7605 = vmatprep.mubr.msk.f32.mxu0 %vm8708_vm0, %v8707_v0  ;;  %7610 = vmatprep.mubr.msk.f32.mxu1 %vm8708_vm0, %v8707_v0 }
 0x4c5   : > { %7606 = vmatmul.mubr.msk.f32.vlgmr.msra.gmra.mxu0 %vm2845_vm4, %v2932_v5  ;;  %7611 = vmatmul.mubr.msk.f32.vlgmr.msra.gmra.mxu1 %vm2845_vm4, %v2933_v55 }
 0x4c6   : > { %7624 = vmatprep.subr.mxu1 %v8707_v0  ;;  %7632 = vmatprep.mubr.msk.f32.mxu1 %vm8708_vm0, %v8707_v0 }
 0x4c7   : > { %7613 = vmatprep.subr.mxu0 %v8707_v0  ;;  %7621 = vmatprep.mubr.msk.f32.mxu0 %vm8708_vm0, %v8707_v0 }
 0x4c8   : > { %7625 = vmatpush3.msra.mxu1 %v3911_v54  ;;  %7614 = vmatpush3.msra.mxu0 %v1116_v31 }
 0x4c9   : > { %7626 = vmatprep.subr.mxu1 %v8707_v0  ;;  %7615 = vmatprep.subr.mxu0 %v8707_v0 }
 0x4ca   : > { %7627 = vmatpush3.msra.mxu1 %v3910_v58 }
 0x4cb   : > { %7628 = vmatprep.subr.mxu1 %v8707_v0 }
 0x4cc   : > { %7629 = vmatpush3.msra.mxu1 %v3909_v59 }
 0x4cd   : > { %7630 = vmatprep.subr.mxu1 %v8707_v0 }
 0x4ce   : > { %7631 = vmatpush3.msra.mxu1 %v3908_v6 }
 0x4cf   : > { %7633 = vmatmul.mubr.msk.f32.vlgmr.msra.gmra.mxu1 %vm1124_vm2, %v9197_v9  ;;  %7644 = vmatprep.subr.mxu1 %v8707_v0 }
 0x4d0   : > { %7650 = vmatprep.mubr.msk.f32.mxu1 %vm8708_vm0, %v8707_v0 }
 0x568   : > { %v3003_v7 = vpop.f32.mrf.mxu0 }
 0x56a   : > { %v7577_v8 = vpop.f32.mrf.mxu0 }
 0x56c   : > { %v3076_v10 = vpop.f32.mrf.mxu1 }
 0x56d   : > { %v3149_v11 = vpop.f32.mrf.mxu0 }
 0x56e   : > { %v7582_v21 = vpop.f32.mrf.mxu1  ;;  %v3518_v12 = vcombine.low %v3003_v7, %v3149_v11  ;;  %v3519_v13 = vcombine.high %v3003_v7, %v3149_v11 }
 0x56f   : > { %v7587_v14 = vpop.f32.mrf.mxu0  ;;  %v1115_v21 = vld [vmem:[#allocation13 + $0x10] sm:$0xff] }
 0x570   : > { %v3222_v15 = vpop.f32.mrf.mxu1  ;;  %v3526_v18 = vrot.slane %v3518_v12, %v9244_v33  ;;  %v3533_v9 = vrot.slane %v3519_v13, %v9244_v33  ;;  %v1114_v12 = vld [vmem:[#allocation13 + $0x8] sm:$0xff]  ;;  %7616 = vmatpush3.msra.mxu0 %v1115_v21 }
 0x571   : > { %v3534_v16 = vcombine.low %v3076_v10, %v3222_v15  ;;  %v3535_v51 = vcombine.high %v3076_v10, %v3222_v15  ;;  %7617 = vmatprep.subr.mxu0 %v8707_v0 }
 0x572   : > { %v7592_v17 = vpop.f32.mrf.mxu1  ;;  %7618 = vmatpush3.msra.mxu0 %v1114_v12 }
 0x573   : > { %v3542_v19 = vrot.slane %v3534_v16, %v9244_v33  ;;  %v3549_v20 = vrot.slane %v3535_v51, %v9244_v33  ;;  %7619 = vmatprep.subr.mxu0 %v8707_v0 }
 0x575   : > { %v3582_v22 = vcombine.low %v3526_v18, %v3542_v19  ;;  %v3583_v23 = vcombine.high %v3526_v18, %v3542_v19  ;;  %v3598_v49 = vcombine.low %v3533_v9, %v3549_v20  ;;  %v3599_v50 = vcombine.high %v3533_v9, %v3549_v20 }
 0x577   : > { %v3590_v52 = vrot.slane %v3582_v22, %v9246_v40  ;;  %v3597_v24 = vrot.slane %v3583_v23, %v9246_v40  ;;  %v3606_v25 = vrot.slane %v3598_v49, %v9246_v40  ;;  %v3613_v26 = vrot.slane %v3599_v50, %v9246_v40  ;;  %v1113_v49 = vld [vmem:[#allocation13] sm:$0xff] }
 0x578   : > { %7620 = vmatpush3.msra.mxu0 %v1113_v49 }
 0x579   : > { %v7317_v27 = vcombine.low %v3590_v52, %v3597_v24  ;;  %v7319_v28 = vcombine.high %v3590_v52, %v3597_v24  ;;  %v7321_v29 = vcombine.low %v3606_v25, %v3613_v26  ;;  %v7323_v30 = vcombine.high %v3606_v25, %v3613_v26  ;;  %7635 = vmatprep.subr.mxu0 %v8707_v0 }
 0x57b   : > { %v3662_v32 = vrot.slane %v7317_v27, %v9244_v33  ;;  %v3678_v34 = vrot.slane %v7319_v28, %v9244_v33  ;;  %v3694_v35 = vrot.slane %v7321_v29, %v9244_v33  ;;  %v3710_v37 = vrot.slane %v7323_v30, %v9244_v33 }
 0x57d   : > { %v3719_v36 = vcombine.high %v3662_v32, %v3678_v34  ;;  %v3751_v38 = vcombine.high %v3694_v35, %v3710_v37  ;;  %v3718_v39 = vcombine.low %v3662_v32, %v3678_v34  ;;  %v3750_v41 = vcombine.low %v3694_v35, %v3710_v37  ;;  %v3919_v32 = vld [vmem:[#allocation22 + $0x10] sm:$0xff]  ;;  %v3918_v34 = vld [vmem:[#allocation22 + $0x8] sm:$0xff] }
 0x57e   : > { %7645 = vmatpush3.msra.mxu1 %v3919_v32 }
 0x57f   : > { %v3733_v42 = vrot.slane %v3719_v36, %v9246_v40  ;;  %v3765_v43 = vrot.slane %v3751_v38, %v9246_v40  ;;  %v9514_v44 = vrot.slane %v3718_v39, %v9246_v40  ;;  %v9517_v45 = vrot.slane %v3750_v41, %v9246_v40  ;;  %7646 = vmatprep.subr.mxu1 %v8707_v0  ;;  %v3917_v36 = vld [vmem:[#allocation22] sm:$0xff] }
 0x580   : > { %7647 = vmatpush3.msra.mxu1 %v3918_v34  ;;  %v7327_v39 = vld [vmem:[#allocation18] ss:$0 sm:$0xff] }
 0x581   : > { %v3784_v46 = vcombine.low %v3733_v42, %v3765_v43  ;;  %v3783_v47 = vcombine.high %v9514_v44, %v9517_v45  ;;  %v3782_v48 = vcombine.low %v9514_v44, %v9517_v45  ;;  %v3295_v53 = vpop.f32.mrf.mxu0  ;;  %v3368_v56 = vpop.f32.mrf.mxu1  ;;  %v3785_v61 = vcombine.high %v3733_v42, %v3765_v43  ;;  %7648 = vmatprep.subr.mxu1 %v8707_v0  ;;  %v3915_v45 = vld [vmem:[#allocation19 + $0x10] sm:$0xff] }
 0x582   : > { %7649 = vmatpush3.msra.mxu1 %v3917_v36 }
 0x583   : > { %3795 = vrot.lane.b32.xlu0 %v3784_v46, %s10017_s5  ;;  %3791 = vrot.lane.b32.xlu1 %v3783_v47, %s10016_s11  ;;  %v7597_v57 = vpop.f32.mrf.mxu0  ;;  %v7602_v60 = vpop.f32.mrf.mxu1  ;;  %s8723_s11 = smov 28   ;;  %s8724_s5 = smov 24  }
 0x584   : > { %7658 = vmatprep.subr.mxu1 %v8707_v0 }
 0x585   : > { %v3514_v62 = vpop.f32.mrf.mxu1  ;;  %v3441_v63 = vpop.f32.mrf.mxu0 }
 0x586   : > { %v3566_v1 = vcombine.low %v3368_v56, %v3514_v62  ;;  %v3567_v2 = vcombine.high %v3368_v56, %v3514_v62  ;;  %v3550_v3 = vcombine.low %v3295_v53, %v3441_v63  ;;  %v3551_v4 = vcombine.high %v3295_v53, %v3441_v63 }
 0x587   : > { %3799 = vrot.lane.b32.xlu1 %v3785_v61, %s10015_s1  ;;  %v7607_v5 = vpop.f32.mrf.mxu0  ;;  %v7612_v55 = vpop.f32.mrf.mxu1  ;;  %s1094_s1 = scalar_lea.vmem %s10078_s20, %s9185_s12  ;;  %s10079_s20 = smov 8  }
 0x588   : > { %v3574_v54 = vrot.slane %v3566_v1, %v9244_v33  ;;  %v3581_v58 = vrot.slane %v3567_v2, %v9244_v33  ;;  %v3558_v59 = vrot.slane %v3550_v3, %v9244_v33  ;;  %v3565_v6 = vrot.slane %v3551_v4, %v9244_v33  ;;  %v1101_v38 = vld [vmem:[%s1094_s1] sm:$0xff]  ;;  %s10084_s1 = sld [smem:[#allocation59_spill]] }
 0x589   : > { %7651 = vmatmul.mubr.msk.f32.vlgmr.msra.gmra.mxu1 %vm3825_vm5, %v1101_v38  ;;  %v3914_v4 = vld [vmem:[#allocation19 + $0x8] sm:$0xff]  ;;  %v3913_v5 = vld [vmem:[#allocation19] sm:$0xff] }
 0x58a   : > { %v3614_v7 = vcombine.low %v3558_v59, %v3574_v54  ;;  %v3615_v8 = vcombine.high %v3558_v59, %v3574_v54  ;;  %v3630_v10 = vcombine.low %v3565_v6, %v3581_v58  ;;  %v3631_v11 = vcombine.high %v3565_v6, %v3581_v58  ;;  %7660 = vmatprep.mubr.msk.f32.mxu1 %vm8708_vm0, %v8707_v0  ;;  %v7329_v58 = vld [vmem:[#allocation21] ss:$0 sm:$0xff] }
 0x58c   : > { %v3622_v13 = vrot.slane %v3614_v7, %v9246_v40  ;;  %v3629_v14 = vrot.slane %v3615_v8, %v9246_v40  ;;  %v3638_v15 = vrot.slane %v3630_v10, %v9246_v40  ;;  %v3645_v16 = vrot.slane %v3631_v11, %v9246_v40  ;;  %v7331_v8 = vld [vmem:[#allocation24] ss:$0 sm:$0xff] }
 0x58e   : > { %v7318_v51 = vcombine.low %v3622_v13, %v3629_v14  ;;  %v7320_v17 = vcombine.high %v3622_v13, %v3629_v14  ;;  %v7322_v18 = vcombine.low %v3638_v15, %v3645_v16  ;;  %v7324_v9 = vcombine.high %v3638_v15, %v3645_v16 }
 0x58f   : > { %v3998_v41 = vpop.f32.mrf.mxu1 }
 0x590   : > { %v3669_v19 = vrot.slane %v7318_v51, %v9244_v33  ;;  %v3685_v20 = vrot.slane %v7320_v17, %v9244_v33  ;;  %v3701_v22 = vrot.slane %v7322_v18, %v9244_v33  ;;  %v3717_v23 = vrot.slane %v7324_v9, %v9244_v33 }
 0x591   : > { %v9559_v42 = vadd.f32 %v7327_v39, %v3998_v41  ;;  %v7634_v43 = vpop.f32.mrf.mxu1 }
 0x592   : > { %v3734_v50 = vcombine.low %v3669_v19, %v3685_v20  ;;  %v3766_v52 = vcombine.low %v3701_v22, %v3717_v23  ;;  %v3735_v24 = vcombine.high %v3669_v19, %v3685_v20  ;;  %v3767_v25 = vcombine.high %v3701_v22, %v3717_v23 }
 0x594   : > { %v3742_v26 = vrot.slane %v3734_v50, %v9246_v40  ;;  %v3774_v27 = vrot.slane %v3766_v52, %v9246_v40  ;;  %v3749_v30 = vrot.slane %v3735_v24, %v9246_v40  ;;  %v3781_v31 = vrot.slane %v3767_v25, %v9246_v40 }
 0x596   : > { %v3787_v28 = vcombine.high %v3742_v26, %v3774_v27  ;;  %v3786_v29 = vcombine.low %v3742_v26, %v3774_v27  ;;  %v3789_v35 = vcombine.high %v3749_v30, %v3781_v31  ;;  %v3788_v37 = vcombine.low %v3749_v30, %v3781_v31 }
 0x598   : > { %3807 = vrot.lane.b32.xlu1 %v3787_v28, %s8721_s13  ;;  %3803 = vrot.lane.b32.xlu0 %v3786_v29, %s8722_s0 }
 0x59c   : > { %3815 = vrot.lane.b32.xlu1 %v3789_v35, %s8723_s11  ;;  %3811 = vrot.lane.b32.xlu0 %v3788_v37, %s8724_s5 }
 0x5a0   : > { %4158 = vrot.lane.b32.xlu1 %v9559_v42, %s8710_s25  ;;  %4161 = vrot.lane.b32.xlu0 %v9559_v42, %s8712_s24 }
 0x5a4   : > { %4164 = vrot.lane.b32.xlu1 %v9559_v42, %s8709_s29  ;;  %4167 = vrot.lane.b32.xlu0 %v9559_v42, %s8713_s26 }
 0x5a8   : > { %4170 = vrot.lane.b32.xlu1 %v9559_v42, %s8711_s2 }
 0x5f5   : > { %v3792_v46 = vpop.permute.xlu1 %3791  ;;  %v3796_v47 = vpop.permute.xlu0 %3795 }
 0x5f6   : > { %v3818_v53 = vsel %vm2236_vm3, %v3782_v48, %v3792_v46 }
 0x5f7   : > { %v3819_v57 = vsel %vm2845_vm4, %v3818_v53, %v3796_v47 }
 0x5f9   : > { %v3800_v56 = vpop.permute.xlu1 %3799 }
 0x5fa   : > { %v3821_v60 = vsel %vm3820_vm6, %v3819_v57, %v3800_v56 }
 0x60a   : > { %v3808_v61 = vpop.permute.xlu1 %3807  ;;  %v3804_v62 = vpop.permute.xlu0 %3803 }
 0x60b   : > { %v3822_v63 = vsel %vm1204_vm1, %v3821_v60, %v3804_v62 }
 0x60c   : > { %v3824_v2 = vsel %vm3823_vm7, %v3822_v63, %v3808_v61 }
 0x60e   : > { %v3816_v1 = vpop.permute.xlu1 %3815  ;;  %v3812_v3 = vpop.permute.xlu0 %3811 }
 0x60f   : > { %v3826_v44 = vsel %vm3825_vm5, %v3824_v2, %v3812_v3 }
 0x610   : > { %v3828_v48 = vsel %vm3827_vm8, %v3826_v44, %v3816_v1 }
 0x611   : > { %7622 = vmatmul.mubr.msk.f32.vlgmr.msra.gmra.mxu0 %vm1124_vm2, %v3828_v48 }
 0x612   : > { %7636 = vmatpush3.msra.mxu0 %v3915_v45  ;;  %7641 = vmatprep.mubr.msk.f32.mxu0 %vm8708_vm0, %v8707_v0  ;;  %v4159_v12 = vpop.permute.xlu1 %4158  ;;  %v4162_v14 = vpop.permute.xlu0 %4161 }
 0x613   : > { %7637 = vmatprep.subr.mxu0 %v8707_v0  ;;  %v4179_v51 = vcombine.low %v9559_v42, %v4162_v14  ;;  %v4180_v17 = vcombine.high %v9559_v42, %v4162_v14 }
 0x614   : > { %7638 = vmatpush3.msra.mxu0 %v3914_v4 }
 0x615   : > { %7639 = vmatprep.subr.mxu0 %v8707_v0  ;;  %v4187_v19 = vrot.slane %v4179_v51, %v9244_v33  ;;  %v4194_v20 = vrot.slane %v4180_v17, %v9244_v33 }
 0x616   : > { %7640 = vmatpush3.msra.mxu0 %v3913_v5  ;;  %v4165_v13 = vpop.permute.xlu1 %4164  ;;  %v9621_v32 = vpop.permute.xlu0 %4167 }
 0x617   : > { %7642 = vmatmul.mubr.msk.f32.vlgmr.msra.gmra.mxu0 %vm3825_vm5, %v1101_v38  ;;  %7653 = vmatprep.subr.mxu0 %v8707_v0  ;;  %v4195_v15 = vcombine.low %v4159_v12, %v4165_v13  ;;  %v4196_v16 = vcombine.high %v4159_v12, %v4165_v13 }
 0x618   : > { %7655 = vmatprep.mubr.msk.f32.mxu0 %vm8708_vm0, %v8707_v0 }
 0x619   : > { %v4203_v18 = vrot.slane %v4195_v15, %v9244_v33  ;;  %v4210_v9 = vrot.slane %v4196_v16, %v9244_v33 }
 0x61a   : > { %v4171_v31 = vpop.permute.xlu1 %4170 }
 0x61b   : > { %v4243_v22 = vcombine.low %v4187_v19, %v4203_v18  ;;  %v4244_v23 = vcombine.high %v4187_v19, %v4203_v18  ;;  %v4259_v49 = vcombine.low %v4194_v20, %v4210_v9  ;;  %v4260_v50 = vcombine.high %v4194_v20, %v4210_v9 }
 0x61d   : > { %v4251_v52 = vrot.slane %v4243_v22, %v9246_v40  ;;  %v4258_v24 = vrot.slane %v4244_v23, %v9246_v40  ;;  %v4267_v25 = vrot.slane %v4259_v49, %v9246_v40  ;;  %v4274_v26 = vrot.slane %v4260_v50, %v9246_v40 }
 0x61f   : > { %v7333_v27 = vcombine.low %v4251_v52, %v4258_v24  ;;  %v7335_v28 = vcombine.high %v4251_v52, %v4258_v24  ;;  %v7337_v29 = vcombine.low %v4267_v25, %v4274_v26  ;;  %v7339_v30 = vcombine.high %v4267_v25, %v4274_v26 }
 0x621   : > { %v4323_v34 = vrot.slane %v7333_v27, %v9244_v33  ;;  %v4339_v35 = vrot.slane %v7335_v28, %v9244_v33  ;;  %v9626_v37 = vrot.slane %v7337_v29, %v9244_v33  ;;  %v9629_v36 = vrot.slane %v7339_v30, %v9244_v33 }
 0x623   : > { %v4379_v41 = vcombine.low %v4323_v34, %v4339_v35  ;;  %v4380_v3 = vcombine.high %v4323_v34, %v4339_v35 }
 0x625   : > { %v9634_v60 = vrot.slane %v4379_v41, %v9246_v40  ;;  %v9656_v17 = vrot.slane %v4380_v3, %v9246_v40 }
 0x649   : > { %v4153_v10 = vpop.f32.mrf.mxu1 }
 0x64a   : > { %v9603_v11 = vadd.f32 %v7331_v8, %v4153_v10 }
 0x64b   : > { %v7652_v21 = vpop.f32.mrf.mxu1 }
 0x6d1   : > { %v9590_v55 = vpop.f32.mrf.mxu0 }
 0x6d3   : > { %v7623_v54 = vpop.f32.mrf.mxu0 }
 0x6d7   : > { %v4077_v59 = vpop.f32.mrf.mxu0 }
 0x6d8   : > { %v4078_v6 = vadd.f32 %v7329_v58, %v4077_v59  ;;  %v4412_v58 = vcombine.high %v9626_v37, %v9629_v36 }
 0x6d9   : > { %v7643_v7 = vpop.f32.mrf.mxu0 }
 0x6da   : > { %4455 = vrot.lane.b32.xlu1 %v4078_v6, %s8712_s24  ;;  %4452 = vrot.lane.b32.xlu0 %v4078_v6, %s8710_s25 }
 0x6de   : > { %4464 = vrot.lane.b32.xlu1 %v4078_v6, %s8711_s2  ;;  %4458 = vrot.lane.b32.xlu0 %v4078_v6, %s8709_s29 }
 0x6e2   : > { %4470 = vrot.lane.b32.xlu1 %v4078_v6, %s8715_s27  ;;  %4461 = vrot.lane.b32.xlu0 %v4078_v6, %s8713_s26 }
 0x6e6   : > { %4176 = vrot.lane.b32.xlu1 %v9559_v42, %s8715_s27  ;;  %4467 = vrot.lane.b32.xlu0 %v4078_v6, %s8714_s4 }
 0x6ea   : > { %4173 = vrot.lane.b32.xlu0 %v9559_v42, %s8714_s4  ;;  %4746 = vrot.lane.b32.xlu1 %v9603_v11, %s8710_s25  ;;  %v4411_v42 = vcombine.low %v9626_v37, %v9629_v36  ;;  %s10081_s25 = smov 12  }
 0x6ec   : > { %v9637_v61 = vrot.slane %v4411_v42, %v9246_v40 }
 0x6ee   : > { %4749 = vrot.lane.b32.xlu0 %v9603_v11, %s8712_s24  ;;  %4752 = vrot.lane.b32.xlu1 %v9603_v11, %s8709_s29  ;;  %v4443_v7 = vcombine.low %v9634_v60, %v9637_v61  ;;  %v4444_v51 = vcombine.high %v9634_v60, %v9637_v61  ;;  %s10080_s29 = smov 4  }
 0x74c   : > { %v4456_v38 = vpop.permute.xlu1 %4455  ;;  %v4453_v39 = vpop.permute.xlu0 %4452 }
 0x74d   : > { %v4473_v43 = vcombine.low %v4078_v6, %v4456_v38  ;;  %v4474_v46 = vcombine.high %v4078_v6, %v4456_v38 }
 0x74f   : > { %v4481_v62 = vrot.slane %v4473_v43, %v9244_v33  ;;  %v4488_v63 = vrot.slane %v4474_v46, %v9244_v33 }
 0x750   : > { %v4465_v47 = vpop.permute.xlu1 %4464  ;;  %v4459_v53 = vpop.permute.xlu0 %4458 }
 0x751   : > { %v4489_v56 = vcombine.low %v4453_v39, %v4459_v53  ;;  %v4490_v57 = vcombine.high %v4453_v39, %v4459_v53 }
 0x753   : > { %v4497_v1 = vrot.slane %v4489_v56, %v9244_v33  ;;  %v4504_v2 = vrot.slane %v4490_v57, %v9244_v33 }
 0x754   : > { %v4471_v44 = vpop.permute.xlu1 %4470  ;;  %v4462_v45 = vpop.permute.xlu0 %4461 }
 0x755   : > { %v4537_v48 = vcombine.low %v4481_v62, %v4497_v1  ;;  %v4538_v4 = vcombine.high %v4481_v62, %v4497_v1  ;;  %v4553_v5 = vcombine.low %v4488_v63, %v4504_v2  ;;  %v4554_v54 = vcombine.high %v4488_v63, %v4504_v2 }
 0x756   : > { %v4521_v59 = vcombine.low %v4465_v47, %v4471_v44  ;;  %v4522_v6 = vcombine.high %v4465_v47, %v4471_v44 }
 0x757   : > { %v4545_v8 = vrot.slane %v4537_v48, %v9246_v40  ;;  %v4552_v10 = vrot.slane %v4538_v4, %v9246_v40  ;;  %v4561_v21 = vrot.slane %v4553_v5, %v9246_v40  ;;  %v4568_v12 = vrot.slane %v4554_v54, %v9246_v40 }
 0x758   : > { %v4529_v13 = vrot.slane %v4521_v59, %v9244_v33  ;;  %v4536_v14 = vrot.slane %v4522_v6, %v9244_v33  ;;  %v4177_v15 = vpop.permute.xlu1 %4176  ;;  %v4468_v16 = vpop.permute.xlu0 %4467 }
 0x759   : > { %v7341_v18 = vcombine.low %v4545_v8, %v4552_v10  ;;  %v7343_v9 = vcombine.high %v4545_v8, %v4552_v10  ;;  %v7345_v19 = vcombine.low %v4561_v21, %v4568_v12  ;;  %v7347_v20 = vcombine.high %v4561_v21, %v4568_v12 }
 0x75a   : > { %v4227_v22 = vcombine.low %v4171_v31, %v4177_v15  ;;  %v4228_v23 = vcombine.high %v4171_v31, %v4177_v15  ;;  %v4505_v49 = vcombine.low %v4462_v45, %v4468_v16  ;;  %v4506_v50 = vcombine.high %v4462_v45, %v4468_v16 }
 0x75b   : > { %v4617_v52 = vrot.slane %v7341_v18, %v9244_v33  ;;  %v4633_v24 = vrot.slane %v7343_v9, %v9244_v33  ;;  %v4649_v25 = vrot.slane %v7345_v19, %v9244_v33  ;;  %v4665_v26 = vrot.slane %v7347_v20, %v9244_v33 }
 0x75c   : > { %v4235_v27 = vrot.slane %v4227_v22, %v9244_v33  ;;  %v4242_v28 = vrot.slane %v4228_v23, %v9244_v33  ;;  %v4513_v29 = vrot.slane %v4505_v49, %v9244_v33  ;;  %v4520_v30 = vrot.slane %v4506_v50, %v9244_v33  ;;  %v4174_v34 = vpop.permute.xlu0 %4173 }
 0x75d   : > { %v4673_v31 = vcombine.low %v4617_v52, %v4633_v24  ;;  %v4674_v35 = vcombine.high %v4617_v52, %v4633_v24  ;;  %v4705_v38 = vcombine.low %v4649_v25, %v4665_v26  ;;  %v4706_v39 = vcombine.high %v4649_v25, %v4665_v26 }
 0x75e   : > { %v4569_v41 = vcombine.low %v4513_v29, %v4529_v13  ;;  %v4570_v42 = vcombine.high %v4513_v29, %v4529_v13  ;;  %v4585_v43 = vcombine.low %v4520_v30, %v4536_v14  ;;  %v4586_v46 = vcombine.high %v4520_v30, %v4536_v14 }
 0x75f   : > { %v4211_v47 = vcombine.low %v9621_v32, %v4174_v34  ;;  %v4212_v53 = vcombine.high %v9621_v32, %v4174_v34  ;;  %v4681_v56 = vrot.slane %v4673_v31, %v9246_v40  ;;  %v4713_v57 = vrot.slane %v4705_v38, %v9246_v40 }
 0x760   : > { %v4577_v62 = vrot.slane %v4569_v41, %v9246_v40  ;;  %v4584_v63 = vrot.slane %v4570_v42, %v9246_v40  ;;  %v4593_v1 = vrot.slane %v4585_v43, %v9246_v40  ;;  %v4600_v2 = vrot.slane %v4586_v46, %v9246_v40  ;;  %v4747_v41 = vpop.permute.xlu1 %4746  ;;  %v4750_v42 = vpop.permute.xlu0 %4749 }
 0x761   : > { %v4219_v3 = vrot.slane %v4211_v47, %v9244_v33  ;;  %v4226_v44 = vrot.slane %v4212_v53, %v9244_v33  ;;  %v4737_v45 = vcombine.low %v4681_v56, %v4713_v57  ;;  %v4738_v48 = vcombine.high %v4681_v56, %v4713_v57 }
 0x762   : > { %v7342_v4 = vcombine.low %v4577_v62, %v4584_v63  ;;  %v7344_v32 = vcombine.high %v4577_v62, %v4584_v63  ;;  %v7346_v5 = vcombine.low %v4593_v1, %v4600_v2  ;;  %v7348_v54 = vcombine.high %v4593_v1, %v4600_v2 }
 0x763   : > { %v4275_v59 = vcombine.low %v4219_v3, %v4235_v27  ;;  %v4276_v6 = vcombine.high %v4219_v3, %v4235_v27  ;;  %v4291_v8 = vcombine.low %v4226_v44, %v4242_v28  ;;  %v4292_v10 = vcombine.high %v4226_v44, %v4242_v28  ;;  %7654 = vmatpush3.xpose.msk.msra.mxu0 %vm2236_vm3, %v4737_v45 }
 0x764   : > { %v4624_v21 = vrot.slane %v7342_v4, %v9244_v33  ;;  %v4640_v12 = vrot.slane %v7344_v32, %v9244_v33  ;;  %v4656_v13 = vrot.slane %v7346_v5, %v9244_v33  ;;  %v4672_v14 = vrot.slane %v7348_v54, %v9244_v33  ;;  %7659 = vmatpush3.xpose.msk.msra.mxu1 %vm2236_vm3, %v4738_v48  ;;  %v4753_v3 = vpop.permute.xlu1 %4752 }
 0x765   : > { %v4283_v15 = vrot.slane %v4275_v59, %v9246_v40  ;;  %v4290_v16 = vrot.slane %v4276_v6, %v9246_v40  ;;  %v4299_v18 = vrot.slane %v4291_v8, %v9246_v40  ;;  %v4306_v9 = vrot.slane %v4292_v10, %v9246_v40  ;;  %7663 = vmatprep.subr.mxu0 %v8707_v0 }
 0x766   : > { %v4689_v19 = vcombine.low %v4624_v21, %v4640_v12  ;;  %v4690_v20 = vcombine.high %v4624_v21, %v4640_v12  ;;  %v4721_v22 = vcombine.low %v4656_v13, %v4672_v14  ;;  %7656 = vmatmul.mubr.msk.f32.vlgmr.msra.gmra.mxu0 %vm2236_vm3, %v4443_v7  ;;  %v4426_v23 = vrot.slane %v4412_v58, %v9246_v40 }
 0x767   : > { %v7334_v49 = vcombine.low %v4283_v15, %v4290_v16  ;;  %v7336_v50 = vcombine.high %v4283_v15, %v4290_v16  ;;  %v7338_v52 = vcombine.low %v4299_v18, %v4306_v9  ;;  %v7340_v24 = vcombine.high %v4299_v18, %v4306_v9  ;;  %7661 = vmatmul.mubr.msk.f32.vlgmr.msra.gmra.mxu1 %vm2236_vm3, %v4444_v51 }
 0x768   : > { %7668 = vmatprep.subr.mxu1 %v8707_v0  ;;  %v4688_v25 = vrot.slane %v4674_v35, %v9246_v40  ;;  %v4720_v7 = vrot.slane %v4706_v39, %v9246_v40  ;;  %7665 = vmatprep.mubr.msk.f32.mxu0 %vm8708_vm0, %v8707_v0  ;;  %v4697_v37 = vrot.slane %v4689_v19, %v9246_v40 }
 0x769   : > { %v4330_v36 = vrot.slane %v7334_v49, %v9244_v33  ;;  %v4346_v58 = vrot.slane %v7336_v50, %v9244_v33  ;;  %v4362_v26 = vrot.slane %v7338_v52, %v9244_v33  ;;  %v4378_v60 = vrot.slane %v7340_v24, %v9244_v33  ;;  %7670 = vmatprep.mubr.msk.f32.mxu1 %vm8708_vm0, %v8707_v0 }
 0x76a   : > { %v4722_v61 = vcombine.high %v4656_v13, %v4672_v14  ;;  %v4739_v51 = vcombine.low %v4688_v25, %v4720_v7  ;;  %v4740_v27 = vcombine.high %v4688_v25, %v4720_v7  ;;  %v4729_v28 = vrot.slane %v4721_v22, %v9246_v40 }
 0x76b   : > { %v4395_v29 = vcombine.low %v4330_v36, %v4346_v58  ;;  %v4396_v30 = vcombine.high %v4330_v36, %v4346_v58  ;;  %v4427_v34 = vcombine.low %v4362_v26, %v4378_v60  ;;  %v4445_v31 = vcombine.low %v9656_v17, %v4426_v23 }
 0x76c   : > { %v4428_v35 = vcombine.high %v4362_v26, %v4378_v60  ;;  %7664 = vmatpush3.xpose.msk.msra.mxu0 %vm2236_vm3, %v4739_v51  ;;  %7669 = vmatpush3.xpose.msk.msra.mxu1 %vm2236_vm3, %v4740_v27  ;;  %v4741_v38 = vcombine.low %v4697_v37, %v4729_v28  ;;  %v4742_v39 = vcombine.high %v4697_v37, %v4729_v28 }
 0x76d   : > { %v4446_v43 = vcombine.high %v9656_v17, %v4426_v23  ;;  %7673 = vmatprep.subr.mxu0 %v8707_v0  ;;  %7678 = vmatprep.subr.mxu1 %v8707_v0  ;;  %v4403_v46 = vrot.slane %v4395_v29, %v9246_v40  ;;  %v4435_v47 = vrot.slane %v4427_v34, %v9246_v40 }
 0x76e   : > { %v4704_v53 = vrot.slane %v4690_v20, %v9246_v40  ;;  %v4736_v56 = vrot.slane %v4722_v61, %v9246_v40  ;;  %v4767_v57 = vcombine.low %v9603_v11, %v4750_v42  ;;  %v4768_v63 = vcombine.high %v9603_v11, %v4750_v42 }
 0x76f   : > { %7666 = vmatmul.mubr.msk.f32.vlgmr.msra.gmra.mxu0 %vm2236_vm3, %v4445_v31  ;;  %7671 = vmatmul.mubr.msk.f32.vlgmr.msra.gmra.mxu1 %vm2236_vm3, %v4446_v43  ;;  %v4447_v62 = vcombine.low %v4403_v46, %v4435_v47  ;;  %v4448_v17 = vcombine.high %v4403_v46, %v4435_v47  ;;  %v4410_v1 = vrot.slane %v4396_v30, %v9246_v40 }
 0x770   : > { %7674 = vmatpush3.xpose.msk.msra.mxu0 %vm2236_vm3, %v4741_v38  ;;  %7679 = vmatpush3.xpose.msk.msra.mxu1 %vm2236_vm3, %v4742_v39  ;;  %v4442_v2 = vrot.slane %v4428_v35, %v9246_v40  ;;  %v4775_v44 = vrot.slane %v4767_v57, %v9244_v33  ;;  %v4783_v45 = vcombine.low %v4747_v41, %v4753_v3 }
 0x771   : > { %7675 = vmatprep.mubr.msk.f32.mxu0 %vm8708_vm0, %v8707_v0  ;;  %7680 = vmatprep.mubr.msk.f32.mxu1 %vm8708_vm0, %v8707_v0  ;;  %v4784_v48 = vcombine.high %v4747_v41, %v4753_v3  ;;  %v4782_v4 = vrot.slane %v4768_v63, %v9244_v33  ;;  %v4743_v32 = vcombine.low %v4704_v53, %v4736_v56 }
 0x772   : > { %7683 = vmatprep.subr.mxu0 %v8707_v0  ;;  %7688 = vmatprep.subr.mxu1 %v8707_v0  ;;  %v4744_v5 = vcombine.high %v4704_v53, %v4736_v56  ;;  %v4791_v54 = vrot.slane %v4783_v45, %v9244_v33  ;;  %v4449_v6 = vcombine.low %v4410_v1, %v4442_v2 }
 0x773   : > { %7676 = vmatmul.mubr.msk.f32.vlgmr.msra.gmra.mxu0 %vm2236_vm3, %v4447_v62  ;;  %7681 = vmatmul.mubr.msk.f32.vlgmr.msra.gmra.mxu1 %vm2236_vm3, %v4448_v17  ;;  %v4798_v59 = vrot.slane %v4784_v48, %v9244_v33  ;;  %v4450_v8 = vcombine.high %v4410_v1, %v4442_v2 }
 0x774   : > { %7684 = vmatpush3.xpose.msk.msra.mxu0 %vm2236_vm3, %v4743_v32  ;;  %7689 = vmatpush3.xpose.msk.msra.mxu1 %vm2236_vm3, %v4744_v5  ;;  %v4831_v10 = vcombine.low %v4775_v44, %v4791_v54  ;;  %v4832_v21 = vcombine.high %v4775_v44, %v4791_v54 }
 0x775   : > { %7685 = vmatprep.mubr.msk.f32.mxu0 %vm8708_vm0, %v8707_v0  ;;  %7690 = vmatprep.mubr.msk.f32.mxu1 %vm8708_vm0, %v8707_v0  ;;  %v4847_v12 = vcombine.low %v4782_v4, %v4798_v59  ;;  %v4848_v13 = vcombine.high %v4782_v4, %v4798_v59 }
 0x776   : > { %7693 = vmatprep.subr.mxu0 %v8707_v0  ;;  %7698 = vmatprep.subr.mxu1 %v8707_v0  ;;  %v4839_v14 = vrot.slane %v4831_v10, %v9246_v40  ;;  %v4846_v15 = vrot.slane %v4832_v21, %v9246_v40 }
 0x777   : > { %7686 = vmatmul.mubr.msk.f32.vlgmr.msra.gmra.mxu0 %vm2236_vm3, %v4449_v6  ;;  %7691 = vmatmul.mubr.msk.f32.vlgmr.msra.gmra.mxu1 %vm2236_vm3, %v4450_v8  ;;  %v4855_v16 = vrot.slane %v4847_v12, %v9246_v40  ;;  %v4862_v18 = vrot.slane %v4848_v13, %v9246_v40 }
 0x778   : > { %7695 = vmatprep.mubr.msk.f32.mxu0 %vm8708_vm0, %v8707_v0  ;;  %7700 = vmatprep.mubr.msk.f32.mxu1 %vm8708_vm0, %v8707_v0  ;;  %v7349_v9 = vcombine.low %v4839_v14, %v4846_v15  ;;  %v7351_v19 = vcombine.high %v4839_v14, %v4846_v15 }
 0x779   : > { %v7353_v20 = vcombine.low %v4855_v16, %v4862_v18  ;;  %v7355_v22 = vcombine.high %v4855_v16, %v4862_v18 }
 0x77a   : > { %v4911_v23 = vrot.slane %v7349_v9, %v9244_v33  ;;  %v4927_v49 = vrot.slane %v7351_v19, %v9244_v33 }
 0x77b   : > { %v4943_v50 = vrot.slane %v7353_v20, %v9244_v33  ;;  %v4959_v52 = vrot.slane %v7355_v22, %v9244_v33 }
 0x77c   : > { %v4967_v24 = vcombine.low %v4911_v23, %v4927_v49  ;;  %v4968_v26 = vcombine.high %v4911_v23, %v4927_v49 }
 0x77d   : > { %v4999_v25 = vcombine.low %v4943_v50, %v4959_v52  ;;  %v5000_v60 = vcombine.high %v4943_v50, %v4959_v52 }
 0x77e   : > { %v4975_v7 = vrot.slane %v4967_v24, %v9246_v40  ;;  %v9769_v61 = vrot.slane %v4968_v26, %v9246_v40 }
 0x77f   : > { %v5007_v37 = vrot.slane %v4999_v25, %v9246_v40  ;;  %v9772_v51 = vrot.slane %v5000_v60, %v9246_v40 }
 0x781   : > { %v5031_v36 = vcombine.low %v4975_v7, %v5007_v37  ;;  %v5032_v58 = vcombine.high %v4975_v7, %v5007_v37  ;;  %v5033_v27 = vcombine.low %v9769_v61, %v9772_v51  ;;  %v5034_v28 = vcombine.high %v9769_v61, %v9772_v51 }
 0x783   : > { %7694 = vmatpush3.msra.mxu0 %v5031_v36  ;;  %7699 = vmatpush3.msra.mxu1 %v5032_v58 }
 0x784   : > { %7703 = vmatprep.subr.mxu0 %v8707_v0  ;;  %7708 = vmatprep.subr.mxu1 %v8707_v0 }
 0x826   : > { %v5111_v29 = vpop.f32.mrf.mxu0 }
 0x827   : > { %v5187_v30 = vpop.f32.mrf.mxu1  ;;  %v5647_v34 = vsel %vm2845_vm4, %v5111_v29, -inf }
 0x828   : > { %v5650_v31 = vsel %vm2845_vm4, %v5187_v30, -inf  ;;  %5648 = vmax.xlane.f32.xlu0 %v5647_v34  ;;  %v7657_v35 = vpop.f32.mrf.mxu0 }
 0x829   : > { %5651 = vmax.xlane.f32.xlu1 %v5650_v31  ;;  %v7662_v38 = vpop.f32.mrf.mxu1 }
 0x82f   : > { %v5263_v39 = vpop.f32.mrf.mxu0  ;;  %v5339_v41 = vpop.f32.mrf.mxu1 }
 0x830   : > { %v5653_v42 = vsel %vm2845_vm4, %v5263_v39, -inf  ;;  %v5656_v56 = vsel %vm2845_vm4, %v5339_v41, -inf }
 0x831   : > { %v7672_v43 = vpop.f32.mrf.mxu1  ;;  %5654 = vmax.xlane.f32.xlu0 %v5653_v42  ;;  %v7667_v46 = vpop.f32.mrf.mxu0 }
 0x833   : > { %v5415_v47 = vpop.f32.mrf.mxu0  ;;  %v5491_v53 = vpop.f32.mrf.mxu1 }
 0x834   : > { %v5659_v57 = vsel %vm2845_vm4, %v5415_v47, -inf  ;;  %v5662_v2 = vsel %vm2845_vm4, %v5491_v53, -inf }
 0x835   : > { %5657 = vmax.xlane.f32.xlu0 %v5656_v56  ;;  %v7682_v62 = vpop.f32.mrf.mxu1  ;;  %5660 = vmax.xlane.f32.xlu1 %v5659_v57  ;;  %v7677_v17 = vpop.f32.mrf.mxu0 }
 0x837   : > { %v5567_v63 = vpop.f32.mrf.mxu0  ;;  %v5643_v1 = vpop.f32.mrf.mxu1 }
 0x838   : > { %v5665_v3 = vsel %vm2845_vm4, %v5567_v63, -inf  ;;  %v5668_v48 = vsel %vm2845_vm4, %v5643_v1, -inf }
 0x839   : > { %5663 = vmax.xlane.f32.xlu0 %v5662_v2  ;;  %v7692_v44 = vpop.f32.mrf.mxu1  ;;  %5666 = vmax.xlane.f32.xlu1 %v5665_v3  ;;  %v7687_v45 = vpop.f32.mrf.mxu0 }
 0x83d   : > { %5669 = vmax.xlane.f32.xlu0 %v5668_v48 }
 0x84a   : > { %4758 = vrot.lane.b32.xlu1 %v9603_v11, %s8711_s2  ;;  %s10082_s2 = scalar_lea.vmem [#allocation2], %s9130_s28 }
 0x853   : > { %4755 = vrot.lane.b32.xlu0 %v9603_v11, %s8713_s26 }
 0x8b1   : > { %v5649_v4 = vpop.xlane.xlu0 %5648 }
 0x8b2   : > { %v5652_v32 = vpop.xlane.xlu1 %5651  ;;  %v5671_v5 = vsub.f32 %v5111_v29, %v5649_v4 }
 0x8b3   : > { %v5672_v54 = vsub.f32 %v5187_v30, %v5652_v32 }
 0x8b4   : > { %v5679_v59 = vmul.f32 1.442695, %v5671_v5 }
 0x8b5   : > { %v5681_v6 = vmul.f32 1.442695, %v5672_v54 }
 0x8b6   : > { %8048 = vpow2.f32 %v5679_v59 }
 0x8b7   : > { %8050 = vpow2.f32 %v5681_v6 }
 0x8ba   : > { %v5655_v8 = vpop.xlane.xlu0 %5654 }
 0x8bb   : > { %v5673_v10 = vsub.f32 %v5263_v39, %v5655_v8 }
 0x8bd   : > { %v5683_v21 = vmul.f32 1.442695, %v5673_v10 }
 0x8be   : > { %v5658_v12 = vpop.xlane.xlu0 %5657  ;;  %v5661_v13 = vpop.xlane.xlu1 %5660 }
 0x8bf   : > { %8052 = vpow2.f32 %v5683_v21  ;;  %v5674_v14 = vsub.f32 %v5339_v41, %v5658_v12  ;;  %v5675_v15 = vsub.f32 %v5415_v47, %v5661_v13 }
 0x8c1   : > { %v5685_v16 = vmul.f32 1.442695, %v5674_v14  ;;  %v5687_v18 = vmul.f32 1.442695, %v5675_v15 }
 0x8c2   : > { %v5664_v9 = vpop.xlane.xlu0 %5663  ;;  %v5667_v19 = vpop.xlane.xlu1 %5666 }
 0x8c3   : > { %v8049_v20 = vpop.eup %8048  ;;  %8054 = vpow2.f32 %v5685_v16  ;;  %v5676_v22 = vsub.f32 %v5491_v53, %v5664_v9  ;;  %v5677_v23 = vsub.f32 %v5567_v63, %v5667_v19 }
 0x8c4   : > { %v8051_v49 = vpop.eup %8050  ;;  %8056 = vpow2.f32 %v5687_v18  ;;  %v5695_v50 = vsel %vm2845_vm4, %v8049_v20, 0.0 }
 0x8c5   : > { %v5689_v52 = vmul.f32 1.442695, %v5676_v22  ;;  %v5691_v24 = vmul.f32 1.442695, %v5677_v23  ;;  %v5698_v25 = vsel %vm2845_vm4, %v8051_v49, 0.0  ;;  %5696 = vadd.xlane.f32.xlu1 %v5695_v50 }
 0x8c6   : > { %v5670_v7 = vpop.xlane.xlu0 %5669  ;;  %5699 = vadd.xlane.f32.xlu0 %v5698_v25  ;;  %v4759_v43 = vpop.permute.xlu1 %4758 }
 0x8c7   : > { %8058 = vpow2.f32 %v5689_v52  ;;  %v5678_v37 = vsub.f32 %v5643_v1, %v5670_v7 }
 0x8c8   : > { %8060 = vpow2.f32 %v5691_v24 }
 0x8c9   : > { %v5693_v36 = vmul.f32 1.442695, %v5678_v37 }
 0x8ca   : > { %v4756_v46 = vpop.permute.xlu0 %4755 }
 0x8cb   : > { %8062 = vpow2.f32 %v5693_v36 }
 0x8cc   : > { %v8053_v58 = vpop.eup %8052 }
 0x8cd   : > { %v5701_v26 = vsel %vm2845_vm4, %v8053_v58, 0.0 }
 0x8ce   : > { %5702 = vadd.xlane.f32.xlu1 %v5701_v26 }
 0x8d0   : > { %v8055_v60 = vpop.eup %8054 }
 0x8d1   : > { %v9793_v29 = vpop.eup %8056  ;;  %v5704_v30 = vsel %vm2845_vm4, %v8055_v60, 0.0 }
 0x8d2   : > { %5705 = vadd.xlane.f32.xlu0 %v5704_v30  ;;  %v5707_v34 = vsel %vm2845_vm4, %v9793_v29, 0.0 }
 0x8d3   : > { %5708 = vadd.xlane.f32.xlu1 %v5707_v34 }
 0x8d4   : > { %v9798_v31 = vpop.eup %8058 }
 0x8d5   : > { %v9800_v35 = vpop.eup %8060  ;;  %v5710_v38 = vsel %vm2845_vm4, %v9798_v31, 0.0 }
 0x8d6   : > { %5711 = vadd.xlane.f32.xlu0 %v5710_v38  ;;  %v5713_v39 = vsel %vm2845_vm4, %v9800_v35, 0.0 }
 0x8d7   : > { %5714 = vadd.xlane.f32.xlu1 %v5713_v39 }
 0x8d8   : > { %v9806_v41 = vpop.eup %8062 }
 0x8d9   : > { %v5716_v42 = vsel %vm2845_vm4, %v9806_v41, 0.0 }
 0x8da   : > { %5717 = vadd.xlane.f32.xlu0 %v5716_v42 }
 0x8e8   : > { %4761 = vrot.lane.b32.xlu1 %v9603_v11, %s8714_s4 }
 0x8f0   : > { %4764 = vrot.lane.b32.xlu0 %v9603_v11, %s8715_s27  ;;  %s10083_s27 = sld [smem:[#allocation58_spill]] }
 0x94e   : > { %v5697_v47 = vpop.xlane.xlu1 %5696 }
 0x94f   : > { %v5700_v53 = vpop.xlane.xlu0 %5699  ;;  %8064 = vrcp.f32 %v5697_v47 }
 0x950   : > { %8066 = vrcp.f32 %v5700_v53 }
 0x957   : > { %v5703_v56 = vpop.xlane.xlu1 %5702 }
 0x958   : > { %8068 = vrcp.f32 %v5703_v56 }
 0x95b   : > { %v5706_v57 = vpop.xlane.xlu0 %5705 }
 0x95c   : > { %v8065_v62 = vpop.eup %8064  ;;  %8070 = vrcp.f32 %v5706_v57  ;;  %v5709_v17 = vpop.xlane.xlu1 %5708 }
 0x95d   : > { %v8067_v63 = vpop.eup %8066  ;;  %v5727_v1 = vmul.f32 %v8065_v62, %v8049_v20  ;;  %8072 = vrcp.f32 %v5709_v17 }
 0x95e   : > { %v5728_v2 = vmul.f32 %v8067_v63, %v8051_v49 }
 0x95f   : > { %v5712_v3 = vpop.xlane.xlu0 %5711  ;;  %7696 = vmatmul.mubr.msk.f32.vlgmr.msra.gmra.mxu0 %vm2845_vm4, %v5727_v1 }
 0x960   : > { %v5715_v44 = vpop.xlane.xlu1 %5714  ;;  %7701 = vmatmul.mubr.msk.f32.vlgmr.msra.gmra.mxu1 %vm2845_vm4, %v5728_v2  ;;  %7704 = vmatpush3.msra.mxu0 %v5033_v27  ;;  %8074 = vrcp.f32 %v5712_v3 }
 0x961   : > { %7709 = vmatpush3.msra.mxu1 %v5034_v28  ;;  %7705 = vmatprep.mubr.msk.f32.mxu0 %vm8708_vm0, %v8707_v0  ;;  %8076 = vrcp.f32 %v5715_v44 }
 0x962   : > { %7710 = vmatprep.mubr.msk.f32.mxu1 %vm8708_vm0, %v8707_v0  ;;  %7713 = vmatprep.subr.mxu0 %v8707_v0 }
 0x963   : > { %v5718_v11 = vpop.xlane.xlu0 %5717  ;;  %7718 = vmatprep.subr.mxu1 %v8707_v0 }
 0x964   : > { %v4762_v45 = vpop.permute.xlu1 %4761  ;;  %8078 = vrcp.f32 %v5718_v11 }
 0x965   : > { %v8069_v48 = vpop.eup %8068  ;;  %v4799_v4 = vcombine.low %v4756_v46, %v4762_v45  ;;  %v4800_v32 = vcombine.high %v4756_v46, %v4762_v45 }
 0x966   : > { %v5729_v27 = vmul.f32 %v8069_v48, %v8053_v58 }
 0x967   : > { %v4765_v5 = vpop.permute.xlu0 %4764  ;;  %v4807_v54 = vrot.slane %v4799_v4, %v9244_v33  ;;  %v4814_v59 = vrot.slane %v4800_v32, %v9244_v33 }
 0x968   : > { %v4815_v61 = vcombine.low %v4759_v43, %v4765_v5  ;;  %v4816_v51 = vcombine.high %v4759_v43, %v4765_v5  ;;  %7706 = vmatmul.mubr.msk.f32.vlgmr.msra.gmra.mxu0 %vm2845_vm4, %v5729_v27 }
 0x969   : > { %v8071_v28 = vpop.eup %8070  ;;  %7715 = vmatprep.mubr.msk.f32.mxu0 %vm8708_vm0, %v8707_v0 }
 0x96a   : > { %v4823_v6 = vrot.slane %v4815_v61, %v9244_v33  ;;  %v4830_v8 = vrot.slane %v4816_v51, %v9244_v33  ;;  %v5730_v10 = vmul.f32 %v8071_v28, %v8055_v60  ;;  %v8073_v58 = vpop.eup %8072 }
 0x96b   : > { %v5731_v46 = vmul.f32 %v8073_v58, %v9793_v29 }
 0x96c   : > { %v4863_v21 = vcombine.low %v4807_v54, %v4823_v6  ;;  %v4864_v12 = vcombine.high %v4807_v54, %v4823_v6  ;;  %v4879_v13 = vcombine.low %v4814_v59, %v4830_v8  ;;  %v4880_v14 = vcombine.high %v4814_v59, %v4830_v8  ;;  %7711 = vmatmul.mubr.msk.f32.vlgmr.msra.gmra.mxu1 %vm2845_vm4, %v5730_v10 }
 0x96d   : > { %7720 = vmatprep.mubr.msk.f32.mxu1 %vm8708_vm0, %v8707_v0  ;;  %v8075_v26 = vpop.eup %8074 }
 0x96e   : > { %v4871_v15 = vrot.slane %v4863_v21, %v9246_v40  ;;  %v4878_v16 = vrot.slane %v4864_v12, %v9246_v40  ;;  %v4887_v18 = vrot.slane %v4879_v13, %v9246_v40  ;;  %v4894_v9 = vrot.slane %v4880_v14, %v9246_v40  ;;  %v8077_v39 = vpop.eup %8076 }
 0x96f   : > { %v5732_v47 = vmul.f32 %v8075_v26, %v9798_v31  ;;  %v5733_v62 = vmul.f32 %v8077_v39, %v9800_v35 }
 0x970   : > { %v7350_v19 = vcombine.low %v4871_v15, %v4878_v16  ;;  %v7352_v20 = vcombine.high %v4871_v15, %v4878_v16  ;;  %v7354_v22 = vcombine.low %v4887_v18, %v4894_v9  ;;  %v7356_v23 = vcombine.high %v4887_v18, %v4894_v9  ;;  %v3924_v15 = vld [vmem:[#allocation25 + $0x18] sm:$0xff] }
 0x971   : > { %v8079_v53 = vpop.eup %8078 }
 0x972   : > { %v4918_v49 = vrot.slane %v7350_v19, %v9244_v33  ;;  %v4934_v50 = vrot.slane %v7352_v20, %v9244_v33  ;;  %v4950_v52 = vrot.slane %v7354_v22, %v9244_v33  ;;  %v4966_v24 = vrot.slane %v7356_v23, %v9244_v33 }
 0x973   : > { %v5734_v29 = vmul.f32 %v8079_v53, %v9806_v41 }
 0x974   : > { %v4983_v25 = vcombine.low %v4918_v49, %v4934_v50  ;;  %v5015_v7 = vcombine.low %v4950_v52, %v4966_v24  ;;  %v4984_v37 = vcombine.high %v4918_v49, %v4934_v50  ;;  %v5016_v36 = vcombine.high %v4950_v52, %v4966_v24 }
 0x976   : > { %v4991_v60 = vrot.slane %v4983_v25, %v9246_v40  ;;  %v5023_v30 = vrot.slane %v5015_v7, %v9246_v40  ;;  %v4998_v34 = vrot.slane %v4984_v37, %v9246_v40  ;;  %v5030_v38 = vrot.slane %v5016_v36, %v9246_v40 }
 0x978   : > { %v5035_v42 = vcombine.low %v4991_v60, %v5023_v30  ;;  %v5036_v43 = vcombine.high %v4991_v60, %v5023_v30  ;;  %v5037_v56 = vcombine.low %v4998_v34, %v5030_v38  ;;  %v5038_v57 = vcombine.high %v4998_v34, %v5030_v38 }
 0x97a   : > { %7714 = vmatpush3.msra.mxu0 %v5035_v42  ;;  %7719 = vmatpush3.msra.mxu1 %v5036_v43 }
 0x97b   : > { %7716 = vmatmul.mubr.msk.f32.vlgmr.msra.gmra.mxu0 %vm2845_vm4, %v5731_v46  ;;  %7721 = vmatmul.mubr.msk.f32.vlgmr.msra.gmra.mxu1 %vm2845_vm4, %v5732_v47 }
 0x97c   : > { %7723 = vmatprep.subr.mxu0 %v8707_v0  ;;  %7728 = vmatprep.subr.mxu1 %v8707_v0 }
 0x97d   : > { %7724 = vmatpush3.msra.mxu0 %v5037_v56  ;;  %7729 = vmatpush3.msra.mxu1 %v5038_v57 }
 0x97e   : > { %7725 = vmatprep.mubr.msk.f32.mxu0 %vm8708_vm0, %v8707_v0  ;;  %7730 = vmatprep.mubr.msk.f32.mxu1 %vm8708_vm0, %v8707_v0 }
 0x97f   : > { %7726 = vmatmul.mubr.msk.f32.vlgmr.msra.gmra.mxu0 %vm2845_vm4, %v5733_v62  ;;  %7731 = vmatmul.mubr.msk.f32.vlgmr.msra.gmra.mxu1 %vm2845_vm4, %v5734_v29 }
 0x980   : > { %7733 = vmatprep.subr.mxu0 %v8707_v0  ;;  %7741 = vmatprep.mubr.msk.f32.mxu0 %vm8708_vm0, %v8707_v0 }
 0x981   : > { %7744 = vmatprep.subr.mxu1 %v8707_v0  ;;  %7752 = vmatprep.mubr.msk.f32.mxu1 %vm8708_vm0, %v8707_v0 }
 0x982   : > { %7734 = vmatpush3.msra.mxu0 %v3924_v15 }
 0x983   : > { %7735 = vmatprep.subr.mxu0 %v8707_v0 }
 0xa1f   : > { %v5804_v31 = vpop.f32.mrf.mxu0 }
 0xa20   : > { %v5877_v35 = vpop.f32.mrf.mxu1 }
 0xa21   : > { %v7697_v41 = vpop.f32.mrf.mxu0 }
 0xa22   : > { %v7702_v17 = vpop.f32.mrf.mxu1 }
 0xa28   : > { %v5950_v63 = vpop.f32.mrf.mxu0 }
 0xa29   : > { %v6319_v2 = vcombine.low %v5804_v31, %v5950_v63  ;;  %v6320_v3 = vcombine.high %v5804_v31, %v5950_v63 }
 0xa2a   : > { %v7707_v1 = vpop.f32.mrf.mxu0 }
 0xa2b   : > { %v6327_v4 = vrot.slane %v6319_v2, %v9244_v33  ;;  %v6334_v32 = vrot.slane %v6320_v3, %v9244_v33  ;;  %v3923_v1 = vld [vmem:[#allocation25 + $0x10] sm:$0xff]  ;;  %v3922_v2 = vld [vmem:[#allocation25 + $0x8] sm:$0xff] }
 0xa2c   : > { %v6023_v44 = vpop.f32.mrf.mxu1  ;;  %7736 = vmatpush3.msra.mxu0 %v3923_v1 }
 0xa2d   : > { %v6335_v11 = vcombine.low %v5877_v35, %v6023_v44  ;;  %v6336_v45 = vcombine.high %v5877_v35, %v6023_v44  ;;  %7737 = vmatprep.subr.mxu0 %v8707_v0 }
 0xa2e   : > { %v7712_v48 = vpop.f32.mrf.mxu1  ;;  %7738 = vmatpush3.msra.mxu0 %v3922_v2 }
 0xa2f   : > { %v6343_v27 = vrot.slane %v6335_v11, %v9244_v33  ;;  %v6350_v5 = vrot.slane %v6336_v45, %v9244_v33  ;;  %7739 = vmatprep.subr.mxu0 %v8707_v0 }
 0xa31   : > { %v6383_v61 = vcombine.low %v6327_v4, %v6343_v27  ;;  %v6384_v51 = vcombine.high %v6327_v4, %v6343_v27  ;;  %v6399_v28 = vcombine.low %v6334_v32, %v6350_v5  ;;  %v6400_v54 = vcombine.high %v6334_v32, %v6350_v5 }
 0xa33   : > { %v6391_v59 = vrot.slane %v6383_v61, %v9246_v40  ;;  %v6398_v6 = vrot.slane %v6384_v51, %v9246_v40  ;;  %v6407_v8 = vrot.slane %v6399_v28, %v9246_v40  ;;  %v6414_v10 = vrot.slane %v6400_v54, %v9246_v40  ;;  %v3921_v54 = vld [vmem:[#allocation25] sm:$0xff] }
 0xa34   : > { %7740 = vmatpush3.msra.mxu0 %v3921_v54  ;;  %v6757_v54 = vld [vmem:[#allocation30 + $0x8] sm:$0xff] }
 0xa35   : > { %v7381_v21 = vcombine.low %v6391_v59, %v6398_v6  ;;  %v7383_v12 = vcombine.high %v6391_v59, %v6398_v6  ;;  %v7385_v13 = vcombine.low %v6407_v8, %v6414_v10  ;;  %v7387_v14 = vcombine.high %v6407_v8, %v6414_v10  ;;  %7755 = vmatprep.subr.mxu0 %v8707_v0 }
 0xa37   : > { %v6463_v16 = vrot.slane %v7381_v21, %v9244_v33  ;;  %v6479_v18 = vrot.slane %v7383_v12, %v9244_v33  ;;  %v6495_v9 = vrot.slane %v7385_v13, %v9244_v33  ;;  %v6511_v19 = vrot.slane %v7387_v14, %v9244_v33 }
 0xa39   : > { %v6520_v20 = vcombine.high %v6463_v16, %v6479_v18  ;;  %v6552_v22 = vcombine.high %v6495_v9, %v6511_v19  ;;  %v6519_v23 = vcombine.low %v6463_v16, %v6479_v18  ;;  %v6551_v49 = vcombine.low %v6495_v9, %v6511_v19  ;;  %v7325_v9 = vld [vmem:[#allocation15] ss:$0 sm:$0xff] }
 0xa3a   : > { %v3905_v19 = vadd.f32 %v7325_v9, %v9590_v55 }
 0xa3b   : > { %v6096_v50 = vpop.f32.mrf.mxu0  ;;  %v6169_v52 = vpop.f32.mrf.mxu1  ;;  %v6534_v24 = vrot.slane %v6520_v20, %v9246_v40  ;;  %v6566_v25 = vrot.slane %v6552_v22, %v9246_v40  ;;  %v9886_v7 = vrot.slane %v6519_v23, %v9246_v40  ;;  %v9889_v37 = vrot.slane %v6551_v49, %v9246_v40  ;;  %v8086_v20 = vld [vmem:[%s10082_s2] sm:$0xff] }
 0xa3c   : > { %v6705_v22 = vadd.f32 %v8086_v20, %v3905_v19 }
 0xa3d   : > { %v7717_v36 = vpop.f32.mrf.mxu0  ;;  %v7722_v58 = vpop.f32.mrf.mxu1  ;;  %v6585_v26 = vcombine.low %v6534_v24, %v6566_v25  ;;  %v6584_v60 = vcombine.high %v9886_v7, %v9889_v37  ;;  %v6583_v30 = vcombine.low %v9886_v7, %v9889_v37  ;;  %v6586_v56 = vcombine.high %v6534_v24, %v6566_v25 }
 0xa3e   : > { %v6708_v23 = vsel %vm1124_vm2, %v6705_v22, 0.0 }
 0xa3f   : > { %v6315_v34 = vpop.f32.mrf.mxu1  ;;  %6596 = vrot.lane.b32.xlu0 %v6585_v26, %s10079_s20  ;;  %6592 = vrot.lane.b32.xlu1 %v6584_v60, %s10080_s29  ;;  %v6242_v38 = vpop.f32.mrf.mxu0  ;;  %s10086_s29 = sld [smem:[#allocation61_spill]] }
 0xa40   : > { %v6367_v39 = vcombine.low %v6169_v52, %v6315_v34  ;;  %v6368_v42 = vcombine.high %v6169_v52, %v6315_v34  ;;  %v6351_v43 = vcombine.low %v6096_v50, %v6242_v38  ;;  %v6352_v46 = vcombine.high %v6096_v50, %v6242_v38 }
 0xa41   : > { %v7727_v47 = vpop.f32.mrf.mxu0  ;;  %v7732_v53 = vpop.f32.mrf.mxu1 }
 0xa42   : > { %v6375_v57 = vrot.slane %v6367_v39, %v9244_v33  ;;  %v6382_v62 = vrot.slane %v6368_v42, %v9244_v33  ;;  %v6359_v29 = vrot.slane %v6351_v43, %v9244_v33  ;;  %v6366_v31 = vrot.slane %v6352_v46, %v9244_v33  ;;  %v6755_v46 = vld [vmem:[#allocation28 + $0x18] sm:$0xff]  ;;  %v6754_v47 = vld [vmem:[#allocation28 + $0x10] sm:$0xff]  ;;  %v6753_v53 = vld [vmem:[#allocation28 + $0x8] sm:$0xff] }
 0xa43   : > { %6600 = vrot.lane.b32.xlu1 %v6586_v56, %s10081_s25  ;;  %v6752_v56 = vld [vmem:[#allocation28] sm:$0xff] }
 0xa44   : > { %v6415_v35 = vcombine.low %v6359_v29, %v6375_v57  ;;  %v6416_v41 = vcombine.high %v6359_v29, %v6375_v57  ;;  %v6431_v17 = vcombine.low %v6366_v31, %v6382_v62  ;;  %v6432_v63 = vcombine.high %v6366_v31, %v6382_v62  ;;  %v7389_v57 = vld [vmem:[#allocation27] ss:$0 sm:$0xff] }
 0xa45   : > { %s1098_s25 = scalar_lea.vmem %s10086_s29, %s9185_s12 }
 0xa46   : > { %v6423_v3 = vrot.slane %v6415_v35, %v9246_v40  ;;  %v6430_v44 = vrot.slane %v6416_v41, %v9246_v40  ;;  %v6439_v11 = vrot.slane %v6431_v17, %v9246_v40  ;;  %v6446_v45 = vrot.slane %v6432_v63, %v9246_v40 }
 0xa48   : > { %v7382_v48 = vcombine.low %v6423_v3, %v6430_v44  ;;  %v7384_v4 = vcombine.high %v6423_v3, %v6430_v44  ;;  %v7386_v32 = vcombine.low %v6439_v11, %v6446_v45  ;;  %v7388_v27 = vcombine.high %v6439_v11, %v6446_v45  ;;  %v7391_v3 = vld [vmem:[%s10000_s19] ss:$0 sm:$0xff] }
 0xa49   : > { %v7392_v11 = vld [vmem:[%s10083_s27] ss:$0 sm:$0xff] }
 0xa4a   : > { %v6470_v5 = vrot.slane %v7382_v48, %v9244_v33  ;;  %v6486_v61 = vrot.slane %v7384_v4, %v9244_v33  ;;  %v6502_v51 = vrot.slane %v7386_v32, %v9244_v33  ;;  %v6518_v28 = vrot.slane %v7388_v27, %v9244_v33 }
 0xa4c   : > { %v6535_v59 = vcombine.low %v6470_v5, %v6486_v61  ;;  %v6567_v6 = vcombine.low %v6502_v51, %v6518_v28  ;;  %v6536_v8 = vcombine.high %v6470_v5, %v6486_v61  ;;  %v6568_v10 = vcombine.high %v6502_v51, %v6518_v28  ;;  %v6759_v51 = vld [vmem:[#allocation30 + $0x18] sm:$0xff]  ;;  %v6758_v28 = vld [vmem:[#allocation30 + $0x10] sm:$0xff] }
 0xa4d   : > { %7745 = vmatpush3.msra.mxu1 %v6759_v51 }
 0xa4e   : > { %v6543_v21 = vrot.slane %v6535_v59, %v9246_v40  ;;  %v6575_v12 = vrot.slane %v6567_v6, %v9246_v40  ;;  %v6550_v15 = vrot.slane %v6536_v8, %v9246_v40  ;;  %v6582_v16 = vrot.slane %v6568_v10, %v9246_v40  ;;  %7746 = vmatprep.subr.mxu1 %v8707_v0  ;;  %v6756_v59 = vld [vmem:[#allocation30] sm:$0xff] }
 0xa4f   : > { %7747 = vmatpush3.msra.mxu1 %v6758_v28 }
 0xa50   : > { %v6588_v13 = vcombine.high %v6543_v21, %v6575_v12  ;;  %v6587_v14 = vcombine.low %v6543_v21, %v6575_v12  ;;  %v6590_v33 = vcombine.high %v6550_v15, %v6582_v16  ;;  %v6589_v18 = vcombine.low %v6550_v15, %v6582_v16  ;;  %7748 = vmatprep.subr.mxu1 %v8707_v0 }
 0xa51   : > { %7749 = vmatpush3.msra.mxu1 %v6757_v54 }
 0xa52   : > { %6608 = vrot.lane.b32.xlu1 %v6588_v13, %s8721_s13  ;;  %6604 = vrot.lane.b32.xlu0 %v6587_v14, %s8722_s0 }
 0xa53   : > { %7750 = vmatprep.subr.mxu1 %v8707_v0 }
 0xa54   : > { %7751 = vmatpush3.msra.mxu1 %v6756_v59 }
 0xa56   : > { %6616 = vrot.lane.b32.xlu1 %v6590_v33, %s8723_s11  ;;  %6612 = vrot.lane.b32.xlu0 %v6589_v18, %s8724_s5  ;;  %v7395_v18 = vld [vmem:[#allocation31] ss:$0 sm:$0xff] }
 0xa75   : > { %6709 = vadd.xlane.f32.xlu0 %v6708_v23 }
 0xab1   : > { %v6593_v40 = vpop.permute.xlu1 %6592  ;;  %v6597_v49 = vpop.permute.xlu0 %6596 }
 0xab2   : > { %v6619_v50 = vsel %vm2236_vm3, %v6583_v30, %v6593_v40 }
 0xab3   : > { %v6620_v24 = vsel %vm2845_vm4, %v6619_v50, %v6597_v49 }
 0xab5   : > { %v6601_v52 = vpop.permute.xlu1 %6600 }
 0xab6   : > { %v6621_v25 = vsel %vm3820_vm6, %v6620_v24, %v6601_v52 }
 0xac4   : > { %v6609_v36 = vpop.permute.xlu1 %6608  ;;  %v6605_v55 = vpop.permute.xlu0 %6604 }
 0xac5   : > { %v6622_v58 = vsel %vm1204_vm1, %v6621_v25, %v6605_v55 }
 0xac6   : > { %v6623_v60 = vsel %vm3823_vm7, %v6622_v58, %v6609_v36  ;;  %v7396_v58 = vld [vmem:[%s10084_s1] ss:$0 sm:$0xff] }
 0xac8   : > { %v6617_v26 = vpop.permute.xlu1 %6616  ;;  %v6613_v34 = vpop.permute.xlu0 %6612 }
 0xac9   : > { %v6624_v38 = vsel %vm3825_vm5, %v6623_v60, %v6613_v34  ;;  %v7397_v60 = vld [vmem:[%s10085_s8] ss:$0 sm:$0xff] }
 0xaca   : > { %v6625_v39 = vsel %vm3827_vm8, %v6624_v38, %v6617_v26 }
 0xacb   : > { %7742 = vmatmul.mubr.msk.f32.vlgmr.msra.gmra.mxu0 %vm1124_vm2, %v6625_v39 }
 0xacc   : > { %7763 = vmatprep.mubr.msk.f32.mxu0 %vm8708_vm0, %v8707_v0  ;;  %7756 = vmatpush3.msra.mxu0 %v6755_v46 }
 0xacd   : > { %7757 = vmatprep.subr.mxu0 %v8707_v0 }
 0xace   : > { %7758 = vmatpush3.msra.mxu0 %v6754_v47 }
 0xacf   : > { %7759 = vmatprep.subr.mxu0 %v8707_v0 }
 0xad0   : > { %7760 = vmatpush3.msra.mxu0 %v6753_v53 }
 0xad1   : > { %7761 = vmatprep.subr.mxu0 %v8707_v0 }
 0xad2   : > { %7762 = vmatpush3.msra.mxu0 %v6752_v56 }
 0xafe   : > { %v6710_v7 = vpop.xlane.xlu0 %6709 }
 0xaff   : > { %v6712_v37 = vmul.f32 0.03125, %v6710_v7 }
 0xb01   : > { %v6713_v30 = vsub.f32 %v6705_v22, %v6712_v37 }
 0xb03   : > { %v6714_v42 = vmul.f32 %v6713_v30, %v6713_v30 }
 0xb05   : > { %v6715_v43 = vsel %vm1124_vm2, %v6714_v42, 0.0 }
 0xb06   : > { %6716 = vadd.xlane.f32.xlu0 %v6715_v43 }
 0xb8b   : > { %v6701_v62 = vpop.f32.mrf.mxu0 }
 0xb8c   : > { %v6702_v29 = vadd.f32 %v7389_v57, %v6701_v62 }
 0xb8d   : > { %v7743_v31 = vpop.f32.mrf.mxu0 }
 0xb8e   : > { %v6736_v35 = vadd.f32 %v8086_v20, %v6702_v29 }
 0xb8f   : > { %v6717_v41 = vpop.xlane.xlu0 %6716 }
 0xb90   : > { %v6718_v17 = vmul.f32 0.03125, %v6717_v41  ;;  %v6737_v63 = vsel %vm1124_vm2, %v6736_v35, 0.0 }
 0xb91   : > { %6738 = vadd.xlane.f32.xlu1 %v6737_v63 }
 0xb92   : > { %v6719_v1 = vadd.f32 1e-05, %v6718_v17 }
 0xb94   : > { %8080 = vrsqrt.f32 %v6719_v1 }
 0xba1   : > { %v8081_v2 = vpop.eup %8080 }
 0xba2   : > { %v6721_v44 = vmul.f32 %v8081_v2, %v6713_v30 }
 0xba4   : > { %v6728_v45 = vmul.f32 %v7391_v3, %v6721_v44 }
 0xba6   : > { %v6735_v48 = vadd.f32 %v7392_v11, %v6728_v45 }
 0xba8   : > { %7764 = vmatmul.mubr.msk.f32.vlgmr.msra.gmra.mxu0 %vm1124_vm2, %v6735_v48 }
 0xc1a   : > { %v6739_v4 = vpop.xlane.xlu1 %6738 }
 0xc1b   : > { %v6740_v32 = vmul.f32 0.03125, %v6739_v4 }
 0xc1d   : > { %v6741_v27 = vsub.f32 %v6736_v35, %v6740_v32 }
 0xc1f   : > { %v6742_v5 = vmul.f32 %v6741_v27, %v6741_v27 }
 0xc21   : > { %v6743_v61 = vsel %vm1124_vm2, %v6742_v5, 0.0 }
 0xc22   : > { %6744 = vadd.xlane.f32.xlu0 %v6743_v61 }
 0xc68   : > { %v6902_v6 = vpop.f32.mrf.mxu0 }
 0xc6a   : > { %v7765_v8 = vpop.f32.mrf.mxu0 }
 0xcab   : > { %v6745_v10 = vpop.xlane.xlu0 %6744 }
 0xcac   : > { %v6746_v21 = vmul.f32 0.03125, %v6745_v10 }
 0xcae   : > { %v6747_v12 = vadd.f32 1e-05, %v6746_v21 }
 0xcb0   : > { %8082 = vrsqrt.f32 %v6747_v12 }
 0xcbd   : > { %v8083_v13 = vpop.eup %8082 }
 0xcbe   : > { %v6749_v14 = vmul.f32 %v8083_v13, %v6741_v27 }
 0xcc0   : > { %v6750_v15 = vmul.f32 %v7391_v3, %v6749_v14 }
 0xcc2   : > { %v6751_v16 = vadd.f32 %v7392_v11, %v6750_v15 }
 0xcc4   : > { %7753 = vmatmul.mubr.msk.f32.vlgmr.msra.gmra.mxu1 %vm1124_vm2, %v6751_v16 }
 0xd84   : > { %v6829_v33 = vpop.f32.mrf.mxu1 }
 0xd85   : > { %v6903_v9 = vadd.f32 %v6902_v6, %v6829_v33 }
 0xd86   : > { %v7754_v19 = vpop.f32.mrf.mxu1 }
 0xd87   : > { %v6913_v20 = vadd.f32 %v7395_v18, %v6903_v9 }
 0xd89   : > { %v6914_v22 = vmax.f32 %v6913_v20, 0.0 }
 0xd8b   : > { %v6917_v0 = vsel %vm1124_vm2, %v6914_v22, 0.0 }
 0xd8c   : > { %6918 = vadd.xlane.f32.xlu1 %v6917_v0 }
 0xe15   : > { %v6919_v23 = vpop.xlane.xlu1 %6918 }
 0xe16   : > { %v6920_v40 = vmul.f32 0.03125, %v6919_v23 }
 0xe18   : > { %v6921_v49 = vsub.f32 %v6914_v22, %v6920_v40 }
 0xe1a   : > { %v6922_v50 = vmul.f32 %v6921_v49, %v6921_v49 }
 0xe1c   : > { %v6923_v52 = vsel %vm1124_vm2, %v6922_v50, 0.0 }
 0xe1d   : > { %6924 = vadd.xlane.f32.xlu0 %v6923_v52 }
 0xea6   : > { %v6925_v24 = vpop.xlane.xlu0 %6924 }
 0xea7   : > { %v6926_v25 = vmul.f32 0.03125, %v6925_v24 }
 0xea9   : > { %v6927_v36 = vadd.f32 1e-05, %v6926_v25 }
 0xeab   : > { %8084 = vrsqrt.f32 %v6927_v36 }
 0xeb8   : > { %v8085_v55 = vpop.eup %8084 }
 0xeb9   : > { %v6929_v26 = vmul.f32 %v8085_v55, %v6921_v49 }
 0xebb   : > { %v6936_v34 = vmul.f32 %v7396_v58, %v6929_v26 }
 0xebd   : > { %v6943_v38 = vadd.f32 %v7397_v60, %v6936_v34 }
 0xebf   : > { %6944 = vst.msk [vmem:[%s1098_s25] sm:$0xff] %vm1124_vm2, %v6943_v38 }
 0xec0 PF: > { %p46_p4 = scmp.ge.s32.totalorder %s9082_s6, 4   ;;  %s10087_s27 = smov %s8675_s3 }
 0xec1   : > { %s10088_s3 = smov %s8679_s7  ;;  %s10089_s7 = smov %s9093_s9 }
 0xec2   : > { %s10090_s28 = smov %s9082_s6  ;;  %48 = sbr.rel (!%p46_p4) target bundleno = 32 (0x20), region = 246 }
 0xec7   :  { %6964 = vsyncpa [#allocation3], 1 }
 0xec8   :  { %6966 = vsyncpa [#allocation3 + $0x1], 1 }
 0xec9   :  { %6967 = vsyncpa [#allocation5], 1 }
 0xeca   :  { %6968 = vsyncpa [#allocation8], 1 }
 0xecb   :  { %6969 = vsyncpa [#allocation11], 1 }
 0xecc   :  { %6970 = vsyncpa [#allocation14], 1 }
 0xecd   :  { %6971 = vsyncpa [#allocation17], 1 }
 0xece   :  { %6972 = vsyncpa [#allocation20], 1 }
 0xecf   :  { %6973 = vsyncpa [#allocation23], 1 }
 0xed0   :  { %6974 = vsyncpa [#allocation26], 1 }
 0xed1   :  { %6975 = vsyncpa [#allocation29], 1 }
 0xed2   :  { %6976 = vsyncpa [#allocation32], 1 }

// kernel: module_forward.3
= control target key start
LH: loop header
LB: loop body
LE: loop exit
PB: predicated region body
PF: predicated region fallthrough
CT: control target
= control target key end

     0   :  { %s8623_s0 = inlined_call_operand.vmem [shape: f32[2,8,32], index: 0, kind: input, shape index: {}]   ;;  %s8624_s1 = inlined_call_operand.vmem [shape: f32[2,8,16], index: 1, kind: input, shape index: {}]   ;;  %s8625_s2 = inlined_call_operand.vmem [shape: f32[2,8,24], index: 2, kind: input, shape index: {}]   ;;  %s8626_s3 = inlined_call_operand.vmem [shape: f32[32,32], index: 3, kind: input, shape index: {}]   ;;  %s8627_s4 = inlined_call_operand.vmem [shape: f32[1,32], index: 4, kind: input, shape index: {}]   ;;  %s8628_s5 = inlined_call_operand.vmem [shape: f32[16,32], index: 5, kind: input, shape index: {}]   ;;  %s8629_s6 = inlined_call_operand.vmem [shape: f32[1,32], index: 6, kind: input, shape index: {}]   ;;  %s8630_s7 = inlined_call_operand.vmem [shape: f32[16,32], index: 7, kind: input, shape index: {}]   ;;  %s8631_s8 = inlined_call_operand.vmem [shape: f32[1,32], index: 8, kind: input, shape index: {}]   ;;  %s8632_s9 = inlined_call_operand.vmem [shape: f32[32,32], index: 9, kind: input, shape index: {}]   ;;  %s8633_s10 = inlined_call_operand.vmem [shape: f32[1,32], index: 10, kind: input, shape index: {}]   ;;  %s8634_s11 = inlined_call_operand.vmem [shape: f32[32,32], index: 11, kind: input, shape index: {}]   ;;  %s8635_s12 = inlined_call_operand.vmem [shape: f32[1,32], index: 12, kind: input, shape index: {}]   ;;  %s8636_s13 = inlined_call_operand.vmem [shape: f32[24,32], index: 13, kind: input, shape index: {}]   ;;  %s8637_s14 = inlined_call_operand.vmem [shape: f32[1,32], index: 14, kind: input, shape index: {}]   ;;  %s8638_s15 = inlined_call_operand.vmem [shape: f32[24,32], index: 15, kind: input, shape index: {}]   ;;  %s8639_s16 = inlined_call_operand.vmem [shape: f32[1,32], index: 16, kind: input, shape index: {}]   ;;  %s8640_s17 = inlined_call_operand.vmem [shape: f32[32,32], index: 17, kind: input, shape index: {}]   ;;  %s8641_s18 = inlined_call_operand.vmem [shape: f32[1,32], index: 18, kind: input, shape index: {}]   ;;  %s8642_s19 = inlined_call_operand.vmem [shape: f32[1,32], index: 19, kind: input, shape index: {}]   ;;  %s8643_s20 = inlined_call_operand.vmem [shape: f32[1,32], index: 20, kind: input, shape index: {}]   ;;  %s8644_s21 = inlined_call_operand.vmem [shape: f32[32,32], index: 21, kind: input, shape index: {}]   ;;  %s8645_s22 = inlined_call_operand.vmem [shape: f32[32,32], index: 22, kind: input, shape index: {}]   ;;  %s8646_s23 = inlined_call_operand.vmem [shape: f32[1,32], index: 23, kind: input, shape index: {}]   ;;  %s8647_s24 = inlined_call_operand.vmem [shape: f32[1,32], index: 24, kind: input, shape index: {}]   ;;  %s8648_s25 = inlined_call_operand.vmem [shape: f32[1,32], index: 25, kind: input, shape index: {}]   ;;  %s8649_s26 = inlined_call_operand.hbm [shape: f32[2,8,32], index: 26, kind: output, shape index: {}]  }
   0x1   :  { %8684 = sst [smem:[#allocation11_spill]] %s8623_s0 }
   0x2   :  { %8685 = sst [smem:[#allocation12_spill]] %s8624_s1 }
   0x3   :  { %8686 = sst [smem:[#allocation13_spill]] %s8625_s2 }
   0x4   :  { %8687 = sst [smem:[#allocation14_spill]] %s8626_s3 }
   0x5   :  { %8688 = sst [smem:[#allocation15_spill]] %s8627_s4 }
   0x6   :  { %8689 = sst [smem:[#allocation16_spill]] %s8628_s5 }
   0x7   :  { %8690 = sst [smem:[#allocation17_spill]] %s8629_s6 }
   0x8   :  { %8691 = sst [smem:[#allocation18_spill]] %s8630_s7 }
   0x9   :  { %8692 = sst [smem:[#allocation19_spill]] %s8631_s8 }
   0xa   :  { %8693 = sst [smem:[#allocation20_spill]] %s8632_s9 }
   0xb   :  { %8694 = sst [smem:[#allocation21_spill]] %s8633_s10 }
   0xc   :  { %8695 = sst [smem:[#allocation22_spill]] %s8634_s11 }
   0xd   :  { %8696 = sst [smem:[#allocation23_spill]] %s8635_s12 }
   0xe   :  { %8697 = sst [smem:[#allocation24_spill]] %s8636_s13 }
   0xf   :  { %8698 = sst [smem:[#allocation25_spill]] %s8647_s24 }
  0x10   :  { %8699 = sst [smem:[#allocation26_spill]] %s8648_s25 }
  0x11   :  { %8700 = sst [smem:[#allocation27_spill]] %s8649_s26 }
  0x12   :  { %31 = vsyncpa [#allocation3], 0 }
  0x13   :  { %33 = vsyncpa [#allocation3 + $0x1], 0  ;;  %s7621_s27 = smov 0   ;;  %s7623_s3 = smov 0  }
  0x14   :  { %s7625_s7 = smov 0   ;;  %s7627_s28 = smov 0  }
  0x15 LB: > { %8701 = sst [smem:[#allocation5_spill]] %s7453_s27  ;;  %s7642_s8 = sadd.s32 4294967295, %s7465_s28   ;;  %s7465_s28 = sphi %s7627_s28, %s8743_s28   ;;  %s7461_s7 = sphi %s7625_s7, %s8745_s7   ;;  %s7457_s3 = sphi %s7623_s3, %s8747_s3   ;;  %s7453_s27 = sphi %s7621_s27, %s8746_s27  }
  0x16   : > { %8702 = sst [smem:[#allocation6_spill]] %s7461_s7  ;;  %s6764_s4 = sadd.s32 4294967294, %s7465_s28  }
  0x17   : > { %8703 = sst [smem:[#allocation7_spill]] %s7465_s28  ;;  %s7646_s29 = sadd.s32 1, %s7465_s28  }
  0x18   : > { %8704 = sst [smem:[#allocation8_spill]] %s7646_s29  ;;  %s607_s0 = sadd.s32 1, %s7461_s7 }
  0x19   : > { %s604_s9 = ssub.s32 %s7465_s28, %s7646_s29  ;;  %p617_p0 = scmp.ne.s32.totalorder %s7461_s7, %s7457_s3 }
  0x1a   : > { %p605_p1 = scmp.eq.s32.totalorder %s604_s9, 0  ;;  %p618_p2 = scmp.eq.s32.totalorder %s7642_s8, 1 }
  0x1b   : > { %p623_p3 = scmp.ne.s32.totalorder %s7457_s3, %s7453_s27  ;;  %p624_p4 = scmp.eq.s32.totalorder %s6764_s4, 1 }
  0x1c   : > { %s7657_s30 = scalar_select %p605_p1, %s7461_s7, %s607_s0  }
  0x1d   : > { %p7659_p5 = por %p618_p2, %p617_p0  ;;  %p7663_p6 = por %p624_p4, %p623_p3 }
  0x1e   : > { %8705 = sst [smem:[#allocation9_spill]] %s7657_s30  ;;  %p6767_p7 = scmp.ge.s32.totalorder %s7465_s28, 1 }
  0x1f   : > { %s8707_s5 = scalar_select %p7663_p6, 1, 0 }
  0x20   : > { %p732_p8 = scmp.lt.s32.totalorder %s7465_s28, 3 }
  0x21   : > { %8708 = sst [smem:[#allocation10_spill]] %s8707_s5 }
  0x22   : > { %p733_p9 = pnand %p6767_p7, %p732_p8 }
  0x23   : > { %s8709_s1 = sld [smem:[#allocation16_spill]] (!%p733_p9)  ;;  %p809_p10 = scmp.lt.s32.totalorder (!%p733_p9), %s7642_s8, 1 }
  0x24   : > { %736 = sbr.rel (%p733_p9) target bundleno = 3495 (0xda7), region = 124  ;;  %s8710_s9 = sld [smem:[#allocation14_spill]] (!%p733_p9) }
  0x25   : > { %s8711_s6 = sld [smem:[#allocation12_spill]] (!%p733_p9)  ;;  %s8677_s29 = smov (!%p733_p9), 124  }
  0x26   : > { %s8712_s28 = sld [smem:[#allocation11_spill]] (!%p733_p9)  ;;  %s8666_s30 = smov (!%p733_p9), 108  }
  0x27   : > { %s8713_s24 = sld [smem:[#allocation18_spill]] (!%p733_p9)  ;;  %s8675_s27 = smov (!%p733_p9), 120  }
  0x28   : > { %s8714_s5 = sld [smem:[#allocation17_spill]] (!%p733_p9)  ;;  %s8662_s25 = smov (!%p733_p9), 104  }
  0x29   : > { %v830_v0 = vld [vmem:[%s8709_s1 + $0x8] sm:$0xff]  ;;  %v7467_v2 = vmov 0.0   ;;  %v829_v3 = vld [vmem:[%s8709_s1] sm:$0xff]  ;;  %s810_s10 = scalar_select %p809_p10, %s7642_s8, 1  ;;  %vm7468_vm0 = vmmov 0   ;;  %vm926_vm1 = vcmask 130048   ;;  %v1103_v25 = vlaneseq }
  0x2a   : > { %v827_v1 = vld [vmem:[%s8710_s9 + $0x18] sm:$0xff]  ;;  %7030 = vmatprep.subr.mxu1 %v7467_v2  ;;  %7019 = vmatprep.subr.mxu0 %v7467_v2  ;;  %v826_v4 = vld [vmem:[%s8710_s9 + $0x10] sm:$0xff]  ;;  %v825_v5 = vld [vmem:[%s8710_s9 + $0x8] sm:$0xff]  ;;  %vm846_vm2 = vcmask 261120   ;;  %s8715_s7 = sld [smem:[#allocation15_spill]]  ;;  %s8664_s26 = smov 100  }
  0x2b   : > { %7031 = vmatpush3.msra.mxu1 %v830_v0  ;;  %7020 = vmatpush3.msra.mxu0 %v827_v1  ;;  %s7689_s4 = sshll.u32 %s810_s10, 3  ;;  %v824_v8 = vld [vmem:[%s8710_s9] sm:$0xff]  ;;  %v7476_v23 = vmov 1983009808   ;;  %v7477_v26 = vmov 1934713408  }
  0x2c   : > { %7032 = vmatprep.subr.mxu1 %v7467_v2  ;;  %7034 = vmatprep.mubr.msk.f32.mxu1 %vm7468_vm0, %v7467_v2  ;;  %s816_s1 = scalar_lea.vmem %s8711_s6, %s7689_s4  ;;  %s7704_s10 = scalar_lea.vmem %s8712_s28, %s7689_s4  ;;  %v1101_v24 = vunpack.c.l.s4 %v7476_v23  ;;  %v1165_v27 = vunpack.c.l.s4 %v7477_v26  ;;  %v1104_v29 = vshrl.u32 %v1103_v25, 7  ;;  %vm1958_vm3 = vcmask 31744  }
  0x2d   : > { %7033 = vmatpush3.msra.mxu1 %v829_v3  ;;  %7021 = vmatprep.subr.mxu0 %v7467_v2  ;;  %v833_v6 = vld [vmem:[%s8713_s24 + $0x8] sm:$0xff]  ;;  %v822_v7 = vld [vmem:[%s816_s1] sm:$0xff]  ;;  %s8673_s1 = smov 116   ;;  %s8668_s28 = smov 112   ;;  %vm2567_vm4 = vcmask 64512   ;;  %vm3547_vm5 = vcmask 195584  }
  0x2e   : > { %7022 = vmatpush3.msra.mxu0 %v826_v4  ;;  %7027 = vmatprep.mubr.msk.f32.mxu0 %vm7468_vm0, %v7467_v2  ;;  %v7716_v9 = vld [vmem:[%s7704_s10] sm:$0xff]  ;;  %s8716_s6 = sld [smem:[#allocation19_spill]]  ;;  %v1102_v28 = vunpack.c.0.s8 %v1101_v24  ;;  %v1166_v32 = vunpack.c.0.s8 %v1165_v27  ;;  %s8679_s0 = smov 20   ;;  %vm3542_vm6 = vcmask 97280   ;;  %vm3545_vm7 = vcmask 162816  }
  0x2f   : > { %7023 = vmatprep.subr.mxu0 %v7467_v2  ;;  %7037 = vmatprep.subr.mxu1 %v7467_v2  ;;  %v832_v10 = vld [vmem:[%s8713_s24] sm:$0xff]  ;;  %s8717_s11 = sld [smem:[#allocation22_spill]]  ;;  %vm3549_vm8 = vcmask 228352  }
  0x30   : > { %7035 = vmatmul.mubr.msk.f32.vlgmr.msra.gmra.mxu1 %vm926_vm1, %v822_v7  ;;  %7024 = vmatpush3.msra.mxu0 %v825_v5  ;;  %v6774_v11 = vld [vmem:[%s8714_s5] ss:$0 sm:$0xff]  ;;  %v7774_v33 = vsub.s32 %v1102_v28, %v1104_v29  ;;  %v7776_v40 = vsub.s32 %v1166_v32, %v1104_v29  ;;  %s8670_s5 = smov 12   ;;  %s8720_s12 = sld [smem:[#allocation23_spill]] }
  0x31   : > { %7025 = vmatprep.subr.mxu0 %v7467_v2  ;;  %7038 = vmatpush3.msra.mxu1 %v833_v6  ;;  %v6772_v16 = vld [vmem:[%s8715_s7] ss:$0 sm:$0xff]  ;;  %s8671_s7 = smov 4   ;;  %s8726_s13 = sld [smem:[#allocation24_spill]] }
  0x32   : > { %7026 = vmatpush3.msra.mxu0 %v824_v8  ;;  %7039 = vmatprep.subr.mxu1 %v7467_v2 }
  0x33   : > { %7028 = vmatmul.mubr.msk.f32.vlgmr.msra.gmra.mxu0 %vm846_vm2, %v7716_v9  ;;  %7040 = vmatpush3.msra.mxu1 %v832_v10 }
  0x34   : > { %7041 = vmatprep.mubr.msk.f32.mxu1 %vm7468_vm0, %v7467_v2  ;;  %7044 = vmatprep.subr.mxu1 %v7467_v2  ;;  %v6776_v19 = vld [vmem:[%s8716_s6] ss:$0 sm:$0xff]  ;;  %s8680_s6 = smov 16  }
  0x35   : > { %7042 = vmatmul.mubr.msk.f32.vlgmr.msra.gmra.mxu1 %vm926_vm1, %v822_v7  ;;  %7054 = vmatprep.subr.mxu0 %v7467_v2 }
  0x36   : > { %7046 = vmatprep.mubr.msk.f32.mxu1 %vm7468_vm0, %v7467_v2  ;;  %7056 = vmatprep.mubr.msk.f32.mxu0 %vm7468_vm0, %v7467_v2 }
  0xf0   : > { %v996_v12 = vpop.f32.mrf.mxu1 }
  0xf1   : > { %v997_v13 = vadd.f32 %v6774_v11, %v996_v12 }
  0xf2   : > { %v7036_v14 = vpop.f32.mrf.mxu1 }
  0xf3   : > { %1377 = vrot.lane.b32.xlu1 %v997_v13, %s8673_s1  ;;  %1371 = vrot.lane.b32.xlu0 %v997_v13, %s8677_s29  ;;  %v916_v15 = vpop.f32.mrf.mxu0 }
  0xf4   : > { %v7742_v18 = vadd.f32 %v6772_v16, %v916_v15 }
  0xf5   : > { %v7029_v17 = vpop.f32.mrf.mxu0  ;;  %v1072_v20 = vpop.f32.mrf.mxu1 }
  0xf6   : > { %v7766_v21 = vadd.f32 %v6776_v19, %v1072_v20 }
  0xf7   : > { %1383 = vrot.lane.b32.xlu1 %v997_v13, %s8666_s30  ;;  %1374 = vrot.lane.b32.xlu0 %v997_v13, %s8675_s27  ;;  %v7043_v22 = vpop.f32.mrf.mxu1 }
  0xfb   : > { %1380 = vrot.lane.b32.xlu0 %v997_v13, %s8668_s28  ;;  %1077 = vrot.lane.b32.xlu1 %v7742_v18, %s8677_s29 }
  0xff   : > { %1080 = vrot.lane.b32.xlu0 %v7742_v18, %s8675_s27  ;;  %1083 = vrot.lane.b32.xlu1 %v7742_v18, %s8673_s1 }
 0x103   : > { %1386 = vrot.lane.b32.xlu0 %v997_v13, %s8662_s25  ;;  %1389 = vrot.lane.b32.xlu1 %v997_v13, %s8664_s26 }
 0x107   : > { %1086 = vrot.lane.b32.xlu0 %v7742_v18, %s8668_s28  ;;  %1089 = vrot.lane.b32.xlu1 %v7742_v18, %s8666_s30 }
 0x10b   : > { %1092 = vrot.lane.b32.xlu0 %v7742_v18, %s8662_s25  ;;  %1095 = vrot.lane.b32.xlu1 %v7742_v18, %s8664_s26 }
 0x10f   : > { %1665 = vrot.lane.b32.xlu1 %v7766_v21, %s8677_s29  ;;  %1668 = vrot.lane.b32.xlu0 %v7766_v21, %s8675_s27  ;;  %s8719_s27 = sld [smem:[#allocation13_spill]]  ;;  %s8721_s29 = smov 124  }
 0x113   : > { %1671 = vrot.lane.b32.xlu1 %v7766_v21, %s8673_s1  ;;  %s8737_s1 = sld [smem:[#allocation25_spill]] }
 0x165   : > { %v1378_v30 = vpop.permute.xlu1 %1377  ;;  %v1372_v31 = vpop.permute.xlu0 %1371 }
 0x166   : > { %v1408_v34 = vcombine.low %v1372_v31, %v1378_v30  ;;  %v1409_v35 = vcombine.high %v1372_v31, %v1378_v30 }
 0x168   : > { %v1416_v41 = vrot.slane %v1408_v34, %v7774_v33  ;;  %v1423_v42 = vrot.slane %v1409_v35, %v7774_v33 }
 0x169   : > { %v1384_v36 = vpop.permute.xlu1 %1383  ;;  %v1375_v37 = vpop.permute.xlu0 %1374 }
 0x16a   : > { %v1392_v38 = vcombine.low %v997_v13, %v1375_v37  ;;  %v1393_v39 = vcombine.high %v997_v13, %v1375_v37 }
 0x16c   : > { %v1400_v43 = vrot.slane %v1392_v38, %v7774_v33  ;;  %v1407_v44 = vrot.slane %v1393_v39, %v7774_v33 }
 0x16d   : > { %v1381_v45 = vpop.permute.xlu0 %1380  ;;  %v1078_v46 = vpop.permute.xlu1 %1077 }
 0x16e   : > { %v1456_v47 = vcombine.low %v1400_v43, %v1416_v41  ;;  %v1457_v48 = vcombine.high %v1400_v43, %v1416_v41  ;;  %v1472_v49 = vcombine.low %v1407_v44, %v1423_v42  ;;  %v1473_v50 = vcombine.high %v1407_v44, %v1423_v42 }
 0x170   : > { %v1464_v51 = vrot.slane %v1456_v47, %v7776_v40  ;;  %v1471_v52 = vrot.slane %v1457_v48, %v7776_v40  ;;  %v1480_v53 = vrot.slane %v1472_v49, %v7776_v40  ;;  %v1487_v54 = vrot.slane %v1473_v50, %v7776_v40 }
 0x171   : > { %v1081_v55 = vpop.permute.xlu0 %1080  ;;  %v1084_v56 = vpop.permute.xlu1 %1083 }
 0x172   : > { %v6786_v57 = vcombine.low %v1464_v51, %v1471_v52  ;;  %v6788_v58 = vcombine.high %v1464_v51, %v1471_v52  ;;  %v6790_v59 = vcombine.low %v1480_v53, %v1487_v54  ;;  %v6792_v60 = vcombine.high %v1480_v53, %v1487_v54 }
 0x173   : > { %v1098_v61 = vcombine.low %v7742_v18, %v1081_v55  ;;  %v1099_v62 = vcombine.high %v7742_v18, %v1081_v55  ;;  %v1114_v63 = vcombine.low %v1078_v46, %v1084_v56  ;;  %v1115_v0 = vcombine.high %v1078_v46, %v1084_v56 }
 0x174   : > { %v1536_v1 = vrot.slane %v6786_v57, %v7774_v33  ;;  %v1552_v3 = vrot.slane %v6788_v58, %v7774_v33  ;;  %v1568_v4 = vrot.slane %v6790_v59, %v7774_v33  ;;  %v1584_v5 = vrot.slane %v6792_v60, %v7774_v33 }
 0x175   : > { %v1106_v6 = vrot.slane %v1098_v61, %v7774_v33  ;;  %v1113_v7 = vrot.slane %v1099_v62, %v7774_v33  ;;  %v1122_v8 = vrot.slane %v1114_v63, %v7774_v33  ;;  %v1129_v10 = vrot.slane %v1115_v0, %v7774_v33  ;;  %v1387_v11 = vpop.permute.xlu0 %1386  ;;  %v1390_v12 = vpop.permute.xlu1 %1389 }
 0x176   : > { %v1592_v13 = vcombine.low %v1536_v1, %v1552_v3  ;;  %v1593_v14 = vcombine.high %v1536_v1, %v1552_v3  ;;  %v1624_v15 = vcombine.low %v1568_v4, %v1584_v5  ;;  %v1625_v16 = vcombine.high %v1568_v4, %v1584_v5 }
 0x177   : > { %v1162_v17 = vcombine.low %v1106_v6, %v1122_v8  ;;  %v1163_v18 = vcombine.high %v1106_v6, %v1122_v8  ;;  %v1178_v19 = vcombine.low %v1113_v7, %v1129_v10  ;;  %v1179_v20 = vcombine.high %v1113_v7, %v1129_v10 }
 0x178   : > { %v1424_v22 = vcombine.low %v1381_v45, %v1387_v11  ;;  %v1425_v23 = vcombine.high %v1381_v45, %v1387_v11  ;;  %v1440_v24 = vcombine.low %v1384_v36, %v1390_v12  ;;  %v1441_v25 = vcombine.high %v1384_v36, %v1390_v12 }
 0x179   : > { %v1170_v26 = vrot.slane %v1162_v17, %v7776_v40  ;;  %v1177_v27 = vrot.slane %v1163_v18, %v7776_v40  ;;  %v1186_v28 = vrot.slane %v1178_v19, %v7776_v40  ;;  %v1193_v29 = vrot.slane %v1179_v20, %v7776_v40  ;;  %v1087_v35 = vpop.permute.xlu0 %1086  ;;  %v1090_v45 = vpop.permute.xlu1 %1089 }
 0x17a   : > { %v1432_v30 = vrot.slane %v1424_v22, %v7774_v33  ;;  %v1439_v31 = vrot.slane %v1425_v23, %v7774_v33  ;;  %v1448_v32 = vrot.slane %v1440_v24, %v7774_v33  ;;  %v1455_v34 = vrot.slane %v1441_v25, %v7774_v33 }
 0x17b   : > { %v6778_v37 = vcombine.low %v1170_v26, %v1177_v27  ;;  %v6780_v36 = vcombine.high %v1170_v26, %v1177_v27  ;;  %v6782_v38 = vcombine.low %v1186_v28, %v1193_v29  ;;  %v6784_v39 = vcombine.high %v1186_v28, %v1193_v29 }
 0x17c   : > { %v1488_v41 = vcombine.low %v1432_v30, %v1448_v32  ;;  %v1489_v42 = vcombine.high %v1432_v30, %v1448_v32  ;;  %v1504_v43 = vcombine.low %v1439_v31, %v1455_v34  ;;  %v1505_v44 = vcombine.high %v1439_v31, %v1455_v34 }
 0x17d   : > { %v1242_v46 = vrot.slane %v6778_v37, %v7774_v33  ;;  %v1258_v47 = vrot.slane %v6780_v36, %v7774_v33  ;;  %v1274_v48 = vrot.slane %v6782_v38, %v7774_v33  ;;  %v1290_v49 = vrot.slane %v6784_v39, %v7774_v33  ;;  %v1093_v62 = vpop.permute.xlu0 %1092  ;;  %v1096_v8 = vpop.permute.xlu1 %1095 }
 0x17e   : > { %v1496_v50 = vrot.slane %v1488_v41, %v7776_v40  ;;  %v1503_v51 = vrot.slane %v1489_v42, %v7776_v40  ;;  %v1512_v52 = vrot.slane %v1504_v43, %v7776_v40  ;;  %v1519_v53 = vrot.slane %v1505_v44, %v7776_v40 }
 0x17f   : > { %v1298_v54 = vcombine.low %v1242_v46, %v1258_v47  ;;  %v1299_v55 = vcombine.high %v1242_v46, %v1258_v47  ;;  %v1330_v56 = vcombine.low %v1274_v48, %v1290_v49  ;;  %v1331_v57 = vcombine.high %v1274_v48, %v1290_v49 }
 0x180   : > { %v6787_v58 = vcombine.low %v1496_v50, %v1503_v51  ;;  %v6789_v59 = vcombine.high %v1496_v50, %v1503_v51  ;;  %v6791_v60 = vcombine.low %v1512_v52, %v1519_v53  ;;  %v6793_v61 = vcombine.high %v1512_v52, %v1519_v53 }
 0x181   : > { %v1600_v63 = vrot.slane %v1592_v13, %v7776_v40  ;;  %v1632_v0 = vrot.slane %v1624_v15, %v7776_v40  ;;  %v1607_v1 = vrot.slane %v1593_v14, %v7776_v40  ;;  %v1639_v3 = vrot.slane %v1625_v16, %v7776_v40 }
 0x182   : > { %v7817_v4 = vrot.slane %v6787_v58, %v7774_v33  ;;  %v7820_v5 = vrot.slane %v6789_v59, %v7774_v33  ;;  %v7823_v6 = vrot.slane %v6791_v60, %v7774_v33  ;;  %v7826_v7 = vrot.slane %v6793_v61, %v7774_v33  ;;  %v1666_v60 = vpop.permute.xlu1 %1665  ;;  %v1669_v61 = vpop.permute.xlu0 %1668 }
 0x183   : > { %v1656_v10 = vcombine.low %v1600_v63, %v1632_v0  ;;  %v1658_v11 = vcombine.low %v1607_v1, %v1639_v3  ;;  %v1130_v12 = vcombine.low %v1087_v35, %v1093_v62  ;;  %v1131_v13 = vcombine.high %v1087_v35, %v1093_v62 }
 0x184   : > { %v1608_v14 = vcombine.low %v7817_v4, %v7820_v5  ;;  %v1640_v15 = vcombine.low %v7823_v6, %v7826_v7  ;;  %v1146_v17 = vcombine.low %v1090_v45, %v1096_v8  ;;  %v1147_v19 = vcombine.high %v1090_v45, %v1096_v8 }
 0x185   : > { %7045 = vmatpush3.xpose.msk.msra.mxu1 %vm1958_vm3, %v1656_v10  ;;  %7055 = vmatpush3.xpose.msk.msra.mxu0 %vm1958_vm3, %v1658_v11  ;;  %v1138_v16 = vrot.slane %v1130_v12, %v7774_v33  ;;  %v1145_v18 = vrot.slane %v1131_v13, %v7774_v33  ;;  %v1306_v20 = vrot.slane %v1298_v54, %v7776_v40 }
 0x186   : > { %7049 = vmatprep.subr.mxu1 %v7467_v2  ;;  %v1338_v22 = vrot.slane %v1330_v56, %v7776_v40  ;;  %v1154_v23 = vrot.slane %v1146_v17, %v7774_v33  ;;  %v1313_v24 = vrot.slane %v1299_v55, %v7776_v40  ;;  %v1345_v25 = vrot.slane %v1331_v57, %v7776_v40  ;;  %v1672_v8 = vpop.permute.xlu1 %1671 }
 0x187   : > { %7064 = vmatprep.subr.mxu0 %v7467_v2  ;;  %v1161_v26 = vrot.slane %v1147_v19, %v7774_v33  ;;  %v1657_v28 = vcombine.high %v1600_v63, %v1632_v0  ;;  %v1616_v29 = vrot.slane %v1608_v14, %v7776_v40  ;;  %v1648_v34 = vrot.slane %v1640_v15, %v7776_v40 }
 0x188   : > { %v1362_v27 = vcombine.low %v1306_v20, %v1338_v22  ;;  %v1194_v30 = vcombine.low %v1138_v16, %v1154_v23  ;;  %v1195_v31 = vcombine.high %v1138_v16, %v1154_v23  ;;  %v1364_v32 = vcombine.low %v1313_v24, %v1345_v25 }
 0x189   : > { %v1609_v35 = vcombine.high %v7817_v4, %v7820_v5  ;;  %v1641_v37 = vcombine.high %v7823_v6, %v7826_v7  ;;  %v1210_v36 = vcombine.low %v1145_v18, %v1161_v26  ;;  %v1211_v38 = vcombine.high %v1145_v18, %v1161_v26 }
 0x18a   : > { %7047 = vmatmul.mubr.msk.f32.vlgmr.msra.gmra.mxu1 %vm1958_vm3, %v1362_v27  ;;  %v1202_v39 = vrot.slane %v1194_v30, %v7776_v40  ;;  %v1209_v41 = vrot.slane %v1195_v31, %v7776_v40  ;;  %7057 = vmatmul.mubr.msk.f32.vlgmr.msra.gmra.mxu0 %vm1958_vm3, %v1364_v32  ;;  %v1660_v42 = vcombine.low %v1616_v29, %v1648_v34 }
 0x18b   : > { %7050 = vmatpush3.xpose.msk.msra.mxu1 %vm1958_vm3, %v1657_v28  ;;  %v1218_v43 = vrot.slane %v1210_v36, %v7776_v40  ;;  %v1225_v44 = vrot.slane %v1211_v38, %v7776_v40  ;;  %7051 = vmatprep.mubr.msk.f32.mxu1 %vm7468_vm0, %v7467_v2  ;;  %v1363_v45 = vcombine.high %v1306_v20, %v1338_v22 }
 0x18c   : > { %7059 = vmatprep.subr.mxu1 %v7467_v2  ;;  %v6779_v46 = vcombine.low %v1202_v39, %v1209_v41  ;;  %v6781_v47 = vcombine.high %v1202_v39, %v1209_v41  ;;  %v1659_v48 = vcombine.high %v1607_v1, %v1639_v3  ;;  %7065 = vmatpush3.xpose.msk.msra.mxu0 %vm1958_vm3, %v1660_v42 }
 0x18d   : > { %7066 = vmatprep.mubr.msk.f32.mxu0 %vm7468_vm0, %v7467_v2  ;;  %v6783_v49 = vcombine.low %v1218_v43, %v1225_v44  ;;  %v6785_v50 = vcombine.high %v1218_v43, %v1225_v44  ;;  %7074 = vmatprep.subr.mxu0 %v7467_v2  ;;  %v1365_v55 = vcombine.high %v1313_v24, %v1345_v25 }
 0x18e   : > { %7052 = vmatmul.mubr.msk.f32.vlgmr.msra.gmra.mxu1 %vm1958_vm3, %v1363_v45  ;;  %v1249_v51 = vrot.slane %v6779_v46, %v7774_v33  ;;  %v1265_v52 = vrot.slane %v6781_v47, %v7774_v33  ;;  %v1661_v57 = vcombine.high %v1616_v29, %v1648_v34  ;;  %v1623_v58 = vrot.slane %v1609_v35, %v7776_v40 }
 0x18f   : > { %7060 = vmatpush3.xpose.msk.msra.mxu1 %vm1958_vm3, %v1659_v48  ;;  %7061 = vmatprep.mubr.msk.f32.mxu1 %vm7468_vm0, %v7467_v2  ;;  %v1281_v53 = vrot.slane %v6783_v49, %v7774_v33  ;;  %v1297_v54 = vrot.slane %v6785_v50, %v7774_v33  ;;  %v1655_v59 = vrot.slane %v1641_v37, %v7776_v40 }
 0x190   : > { %7069 = vmatprep.subr.mxu1 %v7467_v2  ;;  %v1314_v56 = vcombine.low %v1249_v51, %v1265_v52  ;;  %v1315_v62 = vcombine.high %v1249_v51, %v1265_v52  ;;  %v1686_v3 = vcombine.low %v7766_v21, %v1669_v61  ;;  %v1687_v4 = vcombine.high %v7766_v21, %v1669_v61 }
 0x191   : > { %v1346_v63 = vcombine.low %v1281_v53, %v1297_v54  ;;  %v1347_v0 = vcombine.high %v1281_v53, %v1297_v54  ;;  %v1662_v6 = vcombine.low %v1623_v58, %v1655_v59  ;;  %v1663_v7 = vcombine.high %v1623_v58, %v1655_v59 }
 0x192   : > { %7062 = vmatmul.mubr.msk.f32.vlgmr.msra.gmra.mxu1 %vm1958_vm3, %v1365_v55  ;;  %v1322_v1 = vrot.slane %v1314_v56, %v7776_v40  ;;  %v1329_v12 = vrot.slane %v1315_v62, %v7776_v40  ;;  %v1694_v14 = vrot.slane %v1686_v3, %v7774_v33  ;;  %v1701_v15 = vrot.slane %v1687_v4, %v7774_v33 }
 0x193   : > { %7070 = vmatpush3.xpose.msk.msra.mxu1 %vm1958_vm3, %v1661_v57  ;;  %7071 = vmatprep.mubr.msk.f32.mxu1 %vm7468_vm0, %v7467_v2  ;;  %v1354_v5 = vrot.slane %v1346_v63, %v7776_v40  ;;  %v1361_v13 = vrot.slane %v1347_v0, %v7776_v40  ;;  %v1702_v16 = vcombine.low %v1666_v60, %v1672_v8 }
 0x194   : > { %7079 = vmatprep.subr.mxu1 %v7467_v2  ;;  %v1703_v17 = vcombine.high %v1666_v60, %v1672_v8 }
 0x195   : > { %v1366_v10 = vcombine.low %v1322_v1, %v1354_v5  ;;  %v1367_v11 = vcombine.high %v1322_v1, %v1354_v5  ;;  %v1710_v18 = vrot.slane %v1702_v16, %v7774_v33  ;;  %v1368_v20 = vcombine.low %v1329_v12, %v1361_v13 }
 0x196   : > { %v1717_v19 = vrot.slane %v1703_v17, %v7774_v33  ;;  %v1369_v22 = vcombine.high %v1329_v12, %v1361_v13 }
 0x197   : > { %7067 = vmatmul.mubr.msk.f32.vlgmr.msra.gmra.mxu0 %vm1958_vm3, %v1366_v10  ;;  %7072 = vmatmul.mubr.msk.f32.vlgmr.msra.gmra.mxu1 %vm1958_vm3, %v1367_v11  ;;  %v1750_v23 = vcombine.low %v1694_v14, %v1710_v18  ;;  %v1751_v24 = vcombine.high %v1694_v14, %v1710_v18 }
 0x198   : > { %7075 = vmatpush3.xpose.msk.msra.mxu0 %vm1958_vm3, %v1662_v6  ;;  %7080 = vmatpush3.xpose.msk.msra.mxu1 %vm1958_vm3, %v1663_v7  ;;  %v1766_v25 = vcombine.low %v1701_v15, %v1717_v19  ;;  %v1767_v26 = vcombine.high %v1701_v15, %v1717_v19 }
 0x199   : > { %7076 = vmatprep.mubr.msk.f32.mxu0 %vm7468_vm0, %v7467_v2  ;;  %7081 = vmatprep.mubr.msk.f32.mxu1 %vm7468_vm0, %v7467_v2  ;;  %v1758_v27 = vrot.slane %v1750_v23, %v7776_v40  ;;  %v1765_v28 = vrot.slane %v1751_v24, %v7776_v40 }
 0x19a   : > { %7084 = vmatprep.subr.mxu0 %v7467_v2  ;;  %v1774_v29 = vrot.slane %v1766_v25, %v7776_v40  ;;  %v1781_v30 = vrot.slane %v1767_v26, %v7776_v40  ;;  %7089 = vmatprep.subr.mxu1 %v7467_v2 }
 0x19b   : > { %7077 = vmatmul.mubr.msk.f32.vlgmr.msra.gmra.mxu0 %vm1958_vm3, %v1368_v20  ;;  %7082 = vmatmul.mubr.msk.f32.vlgmr.msra.gmra.mxu1 %vm1958_vm3, %v1369_v22  ;;  %v6794_v31 = vcombine.low %v1758_v27, %v1765_v28  ;;  %v6796_v32 = vcombine.high %v1758_v27, %v1765_v28 }
 0x19c   : > { %7086 = vmatprep.mubr.msk.f32.mxu0 %vm7468_vm0, %v7467_v2  ;;  %7091 = vmatprep.mubr.msk.f32.mxu1 %vm7468_vm0, %v7467_v2  ;;  %v6798_v34 = vcombine.low %v1774_v29, %v1781_v30  ;;  %v6800_v35 = vcombine.high %v1774_v29, %v1781_v30 }
 0x19d   : > { %v1830_v37 = vrot.slane %v6794_v31, %v7774_v33  ;;  %v1846_v36 = vrot.slane %v6796_v32, %v7774_v33 }
 0x19e   : > { %v1862_v38 = vrot.slane %v6798_v34, %v7774_v33  ;;  %v1878_v39 = vrot.slane %v6800_v35, %v7774_v33 }
 0x19f   : > { %v1886_v41 = vcombine.low %v1830_v37, %v1846_v36  ;;  %v1887_v47 = vcombine.high %v1830_v37, %v1846_v36 }
 0x1a0   : > { %v1918_v42 = vcombine.low %v1862_v38, %v1878_v39  ;;  %v1919_v48 = vcombine.high %v1862_v38, %v1878_v39 }
 0x1a1   : > { %v1894_v43 = vrot.slane %v1886_v41, %v7776_v40  ;;  %v7919_v49 = vrot.slane %v1887_v47, %v7776_v40 }
 0x1a2   : > { %v1926_v44 = vrot.slane %v1918_v42, %v7776_v40  ;;  %v7922_v50 = vrot.slane %v1919_v48, %v7776_v40 }
 0x1a4   : > { %v1950_v45 = vcombine.low %v1894_v43, %v1926_v44  ;;  %v1951_v46 = vcombine.high %v1894_v43, %v1926_v44  ;;  %v1952_v51 = vcombine.low %v7919_v49, %v7922_v50  ;;  %v1953_v52 = vcombine.high %v7919_v49, %v7922_v50 }
 0x1a6   : > { %7085 = vmatpush3.msra.mxu0 %v1950_v45  ;;  %7090 = vmatpush3.msra.mxu1 %v1951_v46 }
 0x1a7   : > { %7094 = vmatprep.subr.mxu0 %v7467_v2  ;;  %7099 = vmatprep.subr.mxu1 %v7467_v2 }
 0x24a   : > { %v2031_v53 = vpop.f32.mrf.mxu1  ;;  %v2183_v54 = vpop.f32.mrf.mxu0 }
 0x24b   : > { %v2568_v55 = vsel %vm2567_vm4, %v2031_v53, -inf  ;;  %v2574_v60 = vsel %vm2567_vm4, %v2183_v54, -inf }
 0x24c   : > { %2569 = vmax.xlane.f32.xlu0 %v2568_v55  ;;  %v7048_v56 = vpop.f32.mrf.mxu1  ;;  %v7058_v57 = vpop.f32.mrf.mxu0 }
 0x24e   : > { %v2107_v58 = vpop.f32.mrf.mxu1 }
 0x24f   : > { %v2571_v59 = vsel %vm2567_vm4, %v2107_v58, -inf }
 0x250   : > { %2572 = vmax.xlane.f32.xlu1 %v2571_v59  ;;  %v7053_v61 = vpop.f32.mrf.mxu1  ;;  %2575 = vmax.xlane.f32.xlu0 %v2574_v60 }
 0x252   : > { %v2259_v62 = vpop.f32.mrf.mxu1 }
 0x253   : > { %v2577_v63 = vsel %vm2567_vm4, %v2259_v62, -inf }
 0x254   : > { %v7063_v0 = vpop.f32.mrf.mxu1  ;;  %2578 = vmax.xlane.f32.xlu0 %v2577_v63 }
 0x257   : > { %v2335_v1 = vpop.f32.mrf.mxu0  ;;  %v2411_v3 = vpop.f32.mrf.mxu1 }
 0x258   : > { %v2583_v4 = vsel %vm2567_vm4, %v2411_v3, -inf  ;;  %v2580_v5 = vsel %vm2567_vm4, %v2335_v1, -inf }
 0x259   : > { %v7073_v6 = vpop.f32.mrf.mxu1  ;;  %2584 = vmax.xlane.f32.xlu0 %v2583_v4  ;;  %2581 = vmax.xlane.f32.xlu1 %v2580_v5  ;;  %v7068_v7 = vpop.f32.mrf.mxu0 }
 0x25b   : > { %v2487_v8 = vpop.f32.mrf.mxu0  ;;  %v2563_v10 = vpop.f32.mrf.mxu1 }
 0x25c   : > { %v2589_v11 = vsel %vm2567_vm4, %v2563_v10, -inf  ;;  %v2586_v12 = vsel %vm2567_vm4, %v2487_v8, -inf }
 0x25d   : > { %v7083_v13 = vpop.f32.mrf.mxu1  ;;  %2590 = vmax.xlane.f32.xlu0 %v2589_v11  ;;  %2587 = vmax.xlane.f32.xlu1 %v2586_v12  ;;  %v7078_v14 = vpop.f32.mrf.mxu0 }
 0x26e   : > { %1677 = vrot.lane.b32.xlu1 %v7766_v21, %s8666_s30  ;;  %s820_s30 = scalar_lea.vmem %s8719_s27, %s7689_s4  ;;  %s8722_s27 = smov 120  }
 0x26f   : > { %s7485_s4 = smov [#allocation2]  }
 0x273   : > { %1674 = vrot.lane.b32.xlu0 %v7766_v21, %s8668_s28  ;;  %s8736_s28 = sld [smem:[#allocation21_spill]] }
 0x2d5   : > { %v2570_v15 = vpop.xlane.xlu0 %2569 }
 0x2d6   : > { %v2592_v16 = vsub.f32 %v2031_v53, %v2570_v15 }
 0x2d8   : > { %v2600_v17 = vmul.f32 1.442695, %v2592_v16 }
 0x2d9   : > { %v2573_v18 = vpop.xlane.xlu1 %2572  ;;  %v2576_v19 = vpop.xlane.xlu0 %2575 }
 0x2da   : > { %7334 = vpow2.f32 %v2600_v17  ;;  %v2593_v20 = vsub.f32 %v2107_v58, %v2573_v18  ;;  %v2594_v22 = vsub.f32 %v2183_v54, %v2576_v19 }
 0x2dc   : > { %v2602_v23 = vmul.f32 1.442695, %v2593_v20  ;;  %v2604_v24 = vmul.f32 1.442695, %v2594_v22 }
 0x2dd   : > { %v2579_v25 = vpop.xlane.xlu0 %2578 }
 0x2de   : > { %7336 = vpow2.f32 %v2602_v23  ;;  %v2595_v26 = vsub.f32 %v2259_v62, %v2579_v25 }
 0x2df   : > { %7338 = vpow2.f32 %v2604_v24 }
 0x2e0   : > { %v2606_v27 = vmul.f32 1.442695, %v2595_v26 }
 0x2e2   : > { %7340 = vpow2.f32 %v2606_v27  ;;  %v2585_v28 = vpop.xlane.xlu0 %2584  ;;  %v2582_v29 = vpop.xlane.xlu1 %2581 }
 0x2e3   : > { %v2597_v30 = vsub.f32 %v2411_v3, %v2585_v28  ;;  %v2596_v31 = vsub.f32 %v2335_v1, %v2582_v29 }
 0x2e5   : > { %v2610_v32 = vmul.f32 1.442695, %v2597_v30  ;;  %v2608_v34 = vmul.f32 1.442695, %v2596_v31 }
 0x2e6   : > { %v2591_v37 = vpop.xlane.xlu0 %2590  ;;  %v2588_v36 = vpop.xlane.xlu1 %2587 }
 0x2e7   : > { %v7335_v35 = vpop.eup %7334  ;;  %7342 = vpow2.f32 %v2610_v32  ;;  %v2599_v38 = vsub.f32 %v2563_v10, %v2591_v37  ;;  %v2598_v39 = vsub.f32 %v2487_v8, %v2588_v36 }
 0x2e8   : > { %v2616_v41 = vsel %vm2567_vm4, %v7335_v35, 0.0  ;;  %7344 = vpow2.f32 %v2608_v34 }
 0x2e9   : > { %2617 = vadd.xlane.f32.xlu1 %v2616_v41  ;;  %v2614_v42 = vmul.f32 1.442695, %v2599_v38  ;;  %v2612_v43 = vmul.f32 1.442695, %v2598_v39 }
 0x2ea   : > { %v1678_v62 = vpop.permute.xlu1 %1677  ;;  %v1675_v63 = vpop.permute.xlu0 %1674 }
 0x2eb   : > { %v7337_v44 = vpop.eup %7336  ;;  %7346 = vpow2.f32 %v2614_v42 }
 0x2ec   : > { %v7339_v45 = vpop.eup %7338  ;;  %v2619_v46 = vsel %vm2567_vm4, %v7337_v44, 0.0  ;;  %7348 = vpow2.f32 %v2612_v43 }
 0x2ed   : > { %2620 = vadd.xlane.f32.xlu0 %v2619_v46  ;;  %v2622_v47 = vsel %vm2567_vm4, %v7339_v45, 0.0 }
 0x2ee   : > { %2623 = vadd.xlane.f32.xlu1 %v2622_v47 }
 0x2ef   : > { %v7341_v48 = vpop.eup %7340 }
 0x2f0   : > { %v2625_v53 = vsel %vm2567_vm4, %v7341_v48, 0.0 }
 0x2f1   : > { %2626 = vadd.xlane.f32.xlu0 %v2625_v53 }
 0x2f4   : > { %v7944_v54 = vpop.eup %7342 }
 0x2f5   : > { %v7946_v55 = vpop.eup %7344  ;;  %v2631_v56 = vsel %vm2567_vm4, %v7944_v54, 0.0 }
 0x2f6   : > { %2632 = vadd.xlane.f32.xlu0 %v2631_v56  ;;  %v2628_v57 = vsel %vm2567_vm4, %v7946_v55, 0.0 }
 0x2f7   : > { %2629 = vadd.xlane.f32.xlu1 %v2628_v57 }
 0x2f8   : > { %v7952_v58 = vpop.eup %7346 }
 0x2f9   : > { %v7954_v59 = vpop.eup %7348  ;;  %v2637_v60 = vsel %vm2567_vm4, %v7952_v58, 0.0 }
 0x2fa   : > { %2638 = vadd.xlane.f32.xlu0 %v2637_v60  ;;  %v2634_v61 = vsel %vm2567_vm4, %v7954_v59, 0.0 }
 0x2fb   : > { %2635 = vadd.xlane.f32.xlu1 %v2634_v61 }
 0x30c   : > { %1680 = vrot.lane.b32.xlu1 %v7766_v21, %s8662_s25  ;;  %s8718_s25 = sld [smem:[#allocation20_spill]] }
 0x310   : > { %1683 = vrot.lane.b32.xlu0 %v7766_v21, %s8664_s26  ;;  %s8672_s26 = smov 8  }
 0x372   : > { %v2618_v0 = vpop.xlane.xlu1 %2617 }
 0x373   : > { %7350 = vrcp.f32 %v2618_v0 }
 0x376   : > { %v2621_v1 = vpop.xlane.xlu0 %2620 }
 0x377   : > { %7352 = vrcp.f32 %v2621_v1  ;;  %v2624_v3 = vpop.xlane.xlu1 %2623 }
 0x378   : > { %7354 = vrcp.f32 %v2624_v3 }
 0x37a   : > { %v2627_v4 = vpop.xlane.xlu0 %2626 }
 0x37b   : > { %7356 = vrcp.f32 %v2627_v4 }
 0x37f   : > { %v2633_v6 = vpop.xlane.xlu0 %2632 }
 0x380   : > { %v7351_v5 = vpop.eup %7350  ;;  %v2630_v7 = vpop.xlane.xlu1 %2629  ;;  %7358 = vrcp.f32 %v2633_v6  ;;  %v3630_v6 = vld [vmem:[%s8717_s11] sm:$0xff] }
 0x381   : > { %v2648_v8 = vmul.f32 %v7351_v5, %v7335_v35  ;;  %7360 = vrcp.f32 %v2630_v7 }
 0x383   : > { %7087 = vmatmul.mubr.msk.f32.vlgmr.msra.gmra.mxu0 %vm2567_vm4, %v2648_v8  ;;  %v2639_v11 = vpop.xlane.xlu0 %2638 }
 0x384   : > { %v7353_v10 = vpop.eup %7352  ;;  %7095 = vmatpush3.msra.mxu0 %v1952_v51  ;;  %7096 = vmatprep.mubr.msk.f32.mxu0 %vm7468_vm0, %v7467_v2  ;;  %v2636_v12 = vpop.xlane.xlu1 %2635  ;;  %7362 = vrcp.f32 %v2639_v11 }
 0x385   : > { %v7355_v21 = vpop.eup %7354  ;;  %v2649_v13 = vmul.f32 %v7353_v10, %v7337_v44  ;;  %7104 = vmatprep.subr.mxu0 %v7467_v2  ;;  %7364 = vrcp.f32 %v2636_v12 }
 0x386   : > { %v2650_v14 = vmul.f32 %v7355_v21, %v7339_v45 }
 0x387   : > { %7092 = vmatmul.mubr.msk.f32.vlgmr.msra.gmra.mxu1 %vm2567_vm4, %v2649_v13  ;;  %v1684_v16 = vpop.permute.xlu0 %1683 }
 0x388   : > { %v7357_v15 = vpop.eup %7356  ;;  %7097 = vmatmul.mubr.msk.f32.vlgmr.msra.gmra.mxu0 %vm2567_vm4, %v2650_v14  ;;  %7100 = vmatpush3.msra.mxu1 %v1953_v52  ;;  %v1734_v51 = vcombine.low %v1678_v62, %v1684_v16  ;;  %v1735_v17 = vcombine.high %v1678_v62, %v1684_v16  ;;  %v1681_v18 = vpop.permute.xlu1 %1680 }
 0x389   : > { %7101 = vmatprep.mubr.msk.f32.mxu1 %vm7468_vm0, %v7467_v2  ;;  %v2651_v19 = vmul.f32 %v7357_v15, %v7341_v48  ;;  %7109 = vmatprep.subr.mxu1 %v7467_v2  ;;  %v1718_v20 = vcombine.low %v1675_v63, %v1681_v18  ;;  %v1719_v22 = vcombine.high %v1675_v63, %v1681_v18 }
 0x38a   : > { %7106 = vmatprep.mubr.msk.f32.mxu0 %vm7468_vm0, %v7467_v2  ;;  %v1742_v23 = vrot.slane %v1734_v51, %v7774_v33  ;;  %v1749_v49 = vrot.slane %v1735_v17, %v7774_v33 }
 0x38b   : > { %7102 = vmatmul.mubr.msk.f32.vlgmr.msra.gmra.mxu1 %vm2567_vm4, %v2651_v19  ;;  %v1726_v50 = vrot.slane %v1718_v20, %v7774_v33  ;;  %v1733_v52 = vrot.slane %v1719_v22, %v7774_v33 }
 0x38c   : > { %7111 = vmatprep.mubr.msk.f32.mxu1 %vm7468_vm0, %v7467_v2 }
 0x38d   : > { %v1782_v24 = vcombine.low %v1726_v50, %v1742_v23  ;;  %v1783_v25 = vcombine.high %v1726_v50, %v1742_v23  ;;  %v1798_v26 = vcombine.low %v1733_v52, %v1749_v49  ;;  %v1799_v27 = vcombine.high %v1733_v52, %v1749_v49  ;;  %v7359_v46 = vpop.eup %7358 }
 0x38e   : > { %v7361_v47 = vpop.eup %7360  ;;  %v2653_v0 = vmul.f32 %v7359_v46, %v7944_v54  ;;  %v3633_v54 = vld [vmem:[%s8717_s11 + $0x18] sm:$0xff] }
 0x38f   : > { %v1790_v28 = vrot.slane %v1782_v24, %v7776_v40  ;;  %v1797_v29 = vrot.slane %v1783_v25, %v7776_v40  ;;  %v1806_v30 = vrot.slane %v1798_v26, %v7776_v40  ;;  %v1813_v31 = vrot.slane %v1799_v27, %v7776_v40 }
 0x390   : > { %v2652_v63 = vmul.f32 %v7361_v47, %v7946_v55 }
 0x391   : > { %v6795_v32 = vcombine.low %v1790_v28, %v1797_v29  ;;  %v6797_v34 = vcombine.high %v1790_v28, %v1797_v29  ;;  %v6799_v35 = vcombine.low %v1806_v30, %v1813_v31  ;;  %v6801_v37 = vcombine.high %v1806_v30, %v1813_v31  ;;  %v7363_v60 = vpop.eup %7362  ;;  %v838_v31 = vld [vmem:[%s8718_s25 + $0x18] sm:$0xff] }
 0x392   : > { %v7365_v1 = vpop.eup %7364  ;;  %v2655_v55 = vmul.f32 %v7363_v60, %v7952_v58  ;;  %v3632_v58 = vld [vmem:[%s8717_s11 + $0x10] sm:$0xff] }
 0x393   : > { %v1837_v36 = vrot.slane %v6795_v32, %v7774_v33  ;;  %v1853_v38 = vrot.slane %v6797_v34, %v7774_v33  ;;  %v1869_v39 = vrot.slane %v6799_v35, %v7774_v33  ;;  %v1885_v41 = vrot.slane %v6801_v37, %v7774_v33 }
 0x394   : > { %v2654_v5 = vmul.f32 %v7365_v1, %v7954_v59  ;;  %v3631_v59 = vld [vmem:[%s8717_s11 + $0x8] sm:$0xff]  ;;  %s8739_s11 = sld [smem:[#allocation27_spill]] }
 0x395   : > { %v1902_v42 = vcombine.low %v1837_v36, %v1853_v38  ;;  %v1934_v43 = vcombine.low %v1869_v39, %v1885_v41  ;;  %v1903_v44 = vcombine.high %v1837_v36, %v1853_v38  ;;  %v1935_v45 = vcombine.high %v1869_v39, %v1885_v41 }
 0x397   : > { %v1910_v48 = vrot.slane %v1902_v42, %v7776_v40  ;;  %v1942_v53 = vrot.slane %v1934_v43, %v7776_v40  ;;  %v1917_v56 = vrot.slane %v1903_v44, %v7776_v40  ;;  %v1949_v57 = vrot.slane %v1935_v45, %v7776_v40 }
 0x399   : > { %v1954_v61 = vcombine.low %v1910_v48, %v1942_v53  ;;  %v1955_v62 = vcombine.high %v1910_v48, %v1942_v53  ;;  %v1956_v3 = vcombine.low %v1917_v56, %v1949_v57  ;;  %v1957_v4 = vcombine.high %v1917_v56, %v1949_v57 }
 0x39b   : > { %7105 = vmatpush3.msra.mxu0 %v1954_v61  ;;  %7110 = vmatpush3.msra.mxu1 %v1955_v62 }
 0x39c   : > { %7107 = vmatmul.mubr.msk.f32.vlgmr.msra.gmra.mxu0 %vm2567_vm4, %v2652_v63  ;;  %7112 = vmatmul.mubr.msk.f32.vlgmr.msra.gmra.mxu1 %vm2567_vm4, %v2653_v0 }
 0x39d   : > { %7114 = vmatprep.subr.mxu0 %v7467_v2  ;;  %7119 = vmatprep.subr.mxu1 %v7467_v2 }
 0x39e   : > { %7115 = vmatpush3.msra.mxu0 %v1956_v3  ;;  %7120 = vmatpush3.msra.mxu1 %v1957_v4 }
 0x39f   : > { %7116 = vmatprep.mubr.msk.f32.mxu0 %vm7468_vm0, %v7467_v2  ;;  %7121 = vmatprep.mubr.msk.f32.mxu1 %vm7468_vm0, %v7467_v2 }
 0x3a0   : > { %7117 = vmatmul.mubr.msk.f32.vlgmr.msra.gmra.mxu0 %vm2567_vm4, %v2654_v5  ;;  %7122 = vmatmul.mubr.msk.f32.vlgmr.msra.gmra.mxu1 %vm2567_vm4, %v2655_v55 }
 0x3a1   : > { %7135 = vmatprep.subr.mxu1 %v7467_v2  ;;  %7143 = vmatprep.mubr.msk.f32.mxu1 %vm7468_vm0, %v7467_v2 }
 0x3a2   : > { %7124 = vmatprep.subr.mxu0 %v7467_v2  ;;  %7132 = vmatprep.mubr.msk.f32.mxu0 %vm7468_vm0, %v7467_v2 }
 0x3a3   : > { %7136 = vmatpush3.msra.mxu1 %v3633_v54  ;;  %7125 = vmatpush3.msra.mxu0 %v838_v31 }
 0x3a4   : > { %7137 = vmatprep.subr.mxu1 %v7467_v2  ;;  %7126 = vmatprep.subr.mxu0 %v7467_v2 }
 0x3a5   : > { %7138 = vmatpush3.msra.mxu1 %v3632_v58 }
 0x3a6   : > { %7139 = vmatprep.subr.mxu1 %v7467_v2 }
 0x3a7   : > { %7140 = vmatpush3.msra.mxu1 %v3631_v59 }
 0x3a8   : > { %7141 = vmatprep.subr.mxu1 %v7467_v2 }
 0x3a9   : > { %7142 = vmatpush3.msra.mxu1 %v3630_v6 }
 0x3aa   : > { %7144 = vmatmul.mubr.msk.f32.vlgmr.msra.gmra.mxu1 %vm846_vm2, %v7716_v9  ;;  %7155 = vmatprep.subr.mxu1 %v7467_v2 }
 0x3ab   : > { %7161 = vmatprep.mubr.msk.f32.mxu1 %vm7468_vm0, %v7467_v2 }
 0x443   : > { %v2725_v7 = vpop.f32.mrf.mxu0 }
 0x445   : > { %v7088_v8 = vpop.f32.mrf.mxu0 }
 0x447   : > { %v2798_v10 = vpop.f32.mrf.mxu1 }
 0x448   : > { %v2871_v11 = vpop.f32.mrf.mxu0 }
 0x449   : > { %v7093_v21 = vpop.f32.mrf.mxu1  ;;  %v3240_v12 = vcombine.low %v2725_v7, %v2871_v11  ;;  %v3241_v13 = vcombine.high %v2725_v7, %v2871_v11 }
 0x44a   : > { %v7098_v14 = vpop.f32.mrf.mxu0  ;;  %v837_v21 = vld [vmem:[%s8718_s25 + $0x10] sm:$0xff] }
 0x44b   : > { %v2944_v15 = vpop.f32.mrf.mxu1  ;;  %v3248_v18 = vrot.slane %v3240_v12, %v7774_v33  ;;  %v3255_v9 = vrot.slane %v3241_v13, %v7774_v33  ;;  %v836_v12 = vld [vmem:[%s8718_s25 + $0x8] sm:$0xff]  ;;  %7127 = vmatpush3.msra.mxu0 %v837_v21 }
 0x44c   : > { %v3256_v16 = vcombine.low %v2798_v10, %v2944_v15  ;;  %v3257_v51 = vcombine.high %v2798_v10, %v2944_v15  ;;  %7128 = vmatprep.subr.mxu0 %v7467_v2 }
 0x44d   : > { %v7103_v17 = vpop.f32.mrf.mxu1  ;;  %7129 = vmatpush3.msra.mxu0 %v836_v12 }
 0x44e   : > { %v3264_v19 = vrot.slane %v3256_v16, %v7774_v33  ;;  %v3271_v20 = vrot.slane %v3257_v51, %v7774_v33  ;;  %7130 = vmatprep.subr.mxu0 %v7467_v2 }
 0x450   : > { %v3304_v22 = vcombine.low %v3248_v18, %v3264_v19  ;;  %v3305_v23 = vcombine.high %v3248_v18, %v3264_v19  ;;  %v3320_v49 = vcombine.low %v3255_v9, %v3271_v20  ;;  %v3321_v50 = vcombine.high %v3255_v9, %v3271_v20 }
 0x452   : > { %v3312_v52 = vrot.slane %v3304_v22, %v7776_v40  ;;  %v3319_v24 = vrot.slane %v3305_v23, %v7776_v40  ;;  %v3328_v25 = vrot.slane %v3320_v49, %v7776_v40  ;;  %v3335_v26 = vrot.slane %v3321_v50, %v7776_v40  ;;  %v835_v49 = vld [vmem:[%s8718_s25] sm:$0xff] }
 0x453   : > { %7131 = vmatpush3.msra.mxu0 %v835_v49 }
 0x454   : > { %v6826_v27 = vcombine.low %v3312_v52, %v3319_v24  ;;  %v6828_v28 = vcombine.high %v3312_v52, %v3319_v24  ;;  %v6830_v29 = vcombine.low %v3328_v25, %v3335_v26  ;;  %v6832_v30 = vcombine.high %v3328_v25, %v3335_v26  ;;  %7146 = vmatprep.subr.mxu0 %v7467_v2 }
 0x456   : > { %v3384_v32 = vrot.slane %v6826_v27, %v7774_v33  ;;  %v3400_v34 = vrot.slane %v6828_v28, %v7774_v33  ;;  %v3416_v35 = vrot.slane %v6830_v29, %v7774_v33  ;;  %v3432_v37 = vrot.slane %v6832_v30, %v7774_v33 }
 0x458   : > { %v3441_v36 = vcombine.high %v3384_v32, %v3400_v34  ;;  %v3473_v38 = vcombine.high %v3416_v35, %v3432_v37  ;;  %v3440_v39 = vcombine.low %v3384_v32, %v3400_v34  ;;  %v3472_v41 = vcombine.low %v3416_v35, %v3432_v37  ;;  %v3641_v32 = vld [vmem:[%s8638_s15 + $0x10] sm:$0xff]  ;;  %v3640_v34 = vld [vmem:[%s8638_s15 + $0x8] sm:$0xff] }
 0x459   : > { %7156 = vmatpush3.msra.mxu1 %v3641_v32 }
 0x45a   : > { %v3455_v42 = vrot.slane %v3441_v36, %v7776_v40  ;;  %v3487_v43 = vrot.slane %v3473_v38, %v7776_v40  ;;  %v8059_v44 = vrot.slane %v3440_v39, %v7776_v40  ;;  %v8062_v45 = vrot.slane %v3472_v41, %v7776_v40  ;;  %7157 = vmatprep.subr.mxu1 %v7467_v2  ;;  %v3639_v36 = vld [vmem:[%s8638_s15] sm:$0xff] }
 0x45b   : > { %7158 = vmatpush3.msra.mxu1 %v3640_v34  ;;  %v823_v38 = vld [vmem:[%s820_s30] sm:$0xff] }
 0x45c   : > { %v3506_v46 = vcombine.low %v3455_v42, %v3487_v43  ;;  %v3505_v47 = vcombine.high %v8059_v44, %v8062_v45  ;;  %v3504_v48 = vcombine.low %v8059_v44, %v8062_v45  ;;  %v3017_v53 = vpop.f32.mrf.mxu0  ;;  %v3090_v56 = vpop.f32.mrf.mxu1  ;;  %v3507_v61 = vcombine.high %v3455_v42, %v3487_v43  ;;  %7159 = vmatprep.subr.mxu1 %v7467_v2  ;;  %v6836_v39 = vld [vmem:[%s8720_s12] ss:$0 sm:$0xff]  ;;  %v3637_v45 = vld [vmem:[%s8726_s13 + $0x10] sm:$0xff] }
 0x45d   : > { %7160 = vmatpush3.msra.mxu1 %v3639_v36 }
 0x45e   : > { %3517 = vrot.lane.b32.xlu0 %v3506_v46, %s8672_s26  ;;  %3513 = vrot.lane.b32.xlu1 %v3505_v47, %s8671_s7  ;;  %v7108_v57 = vpop.f32.mrf.mxu0  ;;  %v7113_v60 = vpop.f32.mrf.mxu1  ;;  %s8723_s26 = smov 116   ;;  %s8724_s7 = smov 112  }
 0x45f   : > { %7162 = vmatmul.mubr.msk.f32.vlgmr.msra.gmra.mxu1 %vm3547_vm5, %v823_v38  ;;  %7169 = vmatprep.subr.mxu1 %v7467_v2 }
 0x460   : > { %v3236_v62 = vpop.f32.mrf.mxu1  ;;  %v3163_v63 = vpop.f32.mrf.mxu0  ;;  %7171 = vmatprep.mubr.msk.f32.mxu1 %vm7468_vm0, %v7467_v2 }
 0x461   : > { %v3288_v0 = vcombine.low %v3090_v56, %v3236_v62  ;;  %v3289_v1 = vcombine.high %v3090_v56, %v3236_v62  ;;  %v3272_v3 = vcombine.low %v3017_v53, %v3163_v63  ;;  %v3273_v4 = vcombine.high %v3017_v53, %v3163_v63 }
 0x462   : > { %3521 = vrot.lane.b32.xlu1 %v3507_v61, %s8670_s5  ;;  %v7118_v5 = vpop.f32.mrf.mxu0  ;;  %v7123_v55 = vpop.f32.mrf.mxu1  ;;  %s8725_s5 = smov 108  }
 0x463   : > { %v3296_v54 = vrot.slane %v3288_v0, %v7774_v33  ;;  %v3303_v58 = vrot.slane %v3289_v1, %v7774_v33  ;;  %v3280_v59 = vrot.slane %v3272_v3, %v7774_v33  ;;  %v3287_v6 = vrot.slane %v3273_v4, %v7774_v33  ;;  %v3636_v4 = vld [vmem:[%s8726_s13 + $0x8] sm:$0xff]  ;;  %v3635_v5 = vld [vmem:[%s8726_s13] sm:$0xff] }
 0x465   : > { %v3336_v7 = vcombine.low %v3280_v59, %v3296_v54  ;;  %v3337_v8 = vcombine.high %v3280_v59, %v3296_v54  ;;  %v3352_v10 = vcombine.low %v3287_v6, %v3303_v58  ;;  %v3353_v11 = vcombine.high %v3287_v6, %v3303_v58  ;;  %v6838_v58 = vld [vmem:[%s8637_s14] ss:$0 sm:$0xff] }
 0x467   : > { %v3344_v13 = vrot.slane %v3336_v7, %v7776_v40  ;;  %v3351_v14 = vrot.slane %v3337_v8, %v7776_v40  ;;  %v3360_v15 = vrot.slane %v3352_v10, %v7776_v40  ;;  %v3367_v16 = vrot.slane %v3353_v11, %v7776_v40  ;;  %v6840_v8 = vld [vmem:[%s8639_s16] ss:$0 sm:$0xff] }
 0x469   : > { %v6827_v51 = vcombine.low %v3344_v13, %v3351_v14  ;;  %v6829_v17 = vcombine.high %v3344_v13, %v3351_v14  ;;  %v6831_v18 = vcombine.low %v3360_v15, %v3367_v16  ;;  %v6833_v9 = vcombine.high %v3360_v15, %v3367_v16 }
 0x46a   : > { %v3720_v41 = vpop.f32.mrf.mxu1 }
 0x46b   : > { %v3391_v19 = vrot.slane %v6827_v51, %v7774_v33  ;;  %v3407_v20 = vrot.slane %v6829_v17, %v7774_v33  ;;  %v3423_v22 = vrot.slane %v6831_v18, %v7774_v33  ;;  %v3439_v23 = vrot.slane %v6833_v9, %v7774_v33 }
 0x46c   : > { %v8125_v42 = vadd.f32 %v6836_v39, %v3720_v41  ;;  %v7145_v43 = vpop.f32.mrf.mxu1 }
 0x46d   : > { %v3456_v50 = vcombine.low %v3391_v19, %v3407_v20  ;;  %v3488_v52 = vcombine.low %v3423_v22, %v3439_v23  ;;  %v3457_v24 = vcombine.high %v3391_v19, %v3407_v20  ;;  %v3489_v25 = vcombine.high %v3423_v22, %v3439_v23 }
 0x46f   : > { %v3464_v26 = vrot.slane %v3456_v50, %v7776_v40  ;;  %v3496_v27 = vrot.slane %v3488_v52, %v7776_v40  ;;  %v3471_v30 = vrot.slane %v3457_v24, %v7776_v40  ;;  %v3503_v31 = vrot.slane %v3489_v25, %v7776_v40 }
 0x471   : > { %v3509_v28 = vcombine.high %v3464_v26, %v3496_v27  ;;  %v3508_v29 = vcombine.low %v3464_v26, %v3496_v27  ;;  %v3511_v35 = vcombine.high %v3471_v30, %v3503_v31  ;;  %v3510_v37 = vcombine.low %v3471_v30, %v3503_v31 }
 0x473   : > { %3529 = vrot.lane.b32.xlu1 %v3509_v28, %s8679_s0  ;;  %3525 = vrot.lane.b32.xlu0 %v3508_v29, %s8680_s6  ;;  %s8682_s0 = smov 28   ;;  %s8681_s6 = smov 24  }
 0x477   : > { %3537 = vrot.lane.b32.xlu1 %v3511_v35, %s8682_s0  ;;  %3533 = vrot.lane.b32.xlu0 %v3510_v37, %s8681_s6  ;;  %s8727_s0 = smov 100   ;;  %s8728_s6 = smov 104  }
 0x47b   : > { %3880 = vrot.lane.b32.xlu1 %v8125_v42, %s8721_s29  ;;  %3883 = vrot.lane.b32.xlu0 %v8125_v42, %s8722_s27 }
 0x47f   : > { %3886 = vrot.lane.b32.xlu1 %v8125_v42, %s8723_s26  ;;  %3889 = vrot.lane.b32.xlu0 %v8125_v42, %s8724_s7 }
 0x483   : > { %3892 = vrot.lane.b32.xlu1 %v8125_v42, %s8725_s5 }
 0x4d0   : > { %v3514_v46 = vpop.permute.xlu1 %3513  ;;  %v3518_v47 = vpop.permute.xlu0 %3517 }
 0x4d1   : > { %v3540_v53 = vsel %vm1958_vm3, %v3504_v48, %v3514_v46 }
 0x4d2   : > { %v3541_v57 = vsel %vm2567_vm4, %v3540_v53, %v3518_v47 }
 0x4d4   : > { %v3522_v56 = vpop.permute.xlu1 %3521 }
 0x4d5   : > { %v3543_v60 = vsel %vm3542_vm6, %v3541_v57, %v3522_v56 }
 0x4e5   : > { %v3530_v61 = vpop.permute.xlu1 %3529  ;;  %v3526_v62 = vpop.permute.xlu0 %3525 }
 0x4e6   : > { %v3544_v63 = vsel %vm926_vm1, %v3543_v60, %v3526_v62 }
 0x4e7   : > { %v3546_v1 = vsel %vm3545_vm7, %v3544_v63, %v3530_v61 }
 0x4e9   : > { %v3538_v0 = vpop.permute.xlu1 %3537  ;;  %v3534_v3 = vpop.permute.xlu0 %3533 }
 0x4ea   : > { %v3548_v44 = vsel %vm3547_vm5, %v3546_v1, %v3534_v3 }
 0x4eb   : > { %v3550_v48 = vsel %vm3549_vm8, %v3548_v44, %v3538_v0 }
 0x4ec   : > { %7133 = vmatmul.mubr.msk.f32.vlgmr.msra.gmra.mxu0 %vm846_vm2, %v3550_v48 }
 0x4ed   : > { %7147 = vmatpush3.msra.mxu0 %v3637_v45  ;;  %7152 = vmatprep.mubr.msk.f32.mxu0 %vm7468_vm0, %v7467_v2  ;;  %v3881_v12 = vpop.permute.xlu1 %3880  ;;  %v3884_v14 = vpop.permute.xlu0 %3883 }
 0x4ee   : > { %7148 = vmatprep.subr.mxu0 %v7467_v2  ;;  %v3901_v51 = vcombine.low %v8125_v42, %v3884_v14  ;;  %v3902_v17 = vcombine.high %v8125_v42, %v3884_v14 }
 0x4ef   : > { %7149 = vmatpush3.msra.mxu0 %v3636_v4 }
 0x4f0   : > { %7150 = vmatprep.subr.mxu0 %v7467_v2  ;;  %v3909_v19 = vrot.slane %v3901_v51, %v7774_v33  ;;  %v3916_v20 = vrot.slane %v3902_v17, %v7774_v33 }
 0x4f1   : > { %7151 = vmatpush3.msra.mxu0 %v3635_v5  ;;  %v3887_v13 = vpop.permute.xlu1 %3886  ;;  %v8202_v32 = vpop.permute.xlu0 %3889 }
 0x4f2   : > { %7153 = vmatmul.mubr.msk.f32.vlgmr.msra.gmra.mxu0 %vm3547_vm5, %v823_v38  ;;  %7164 = vmatprep.subr.mxu0 %v7467_v2  ;;  %v3917_v15 = vcombine.low %v3881_v12, %v3887_v13  ;;  %v3918_v16 = vcombine.high %v3881_v12, %v3887_v13 }
 0x4f3   : > { %7166 = vmatprep.mubr.msk.f32.mxu0 %vm7468_vm0, %v7467_v2 }
 0x4f4   : > { %v3925_v18 = vrot.slane %v3917_v15, %v7774_v33  ;;  %v3932_v9 = vrot.slane %v3918_v16, %v7774_v33 }
 0x4f5   : > { %v3893_v31 = vpop.permute.xlu1 %3892 }
 0x4f6   : > { %v3965_v22 = vcombine.low %v3909_v19, %v3925_v18  ;;  %v3966_v23 = vcombine.high %v3909_v19, %v3925_v18  ;;  %v3981_v49 = vcombine.low %v3916_v20, %v3932_v9  ;;  %v3982_v50 = vcombine.high %v3916_v20, %v3932_v9 }
 0x4f8   : > { %v3973_v52 = vrot.slane %v3965_v22, %v7776_v40  ;;  %v3980_v24 = vrot.slane %v3966_v23, %v7776_v40  ;;  %v3989_v25 = vrot.slane %v3981_v49, %v7776_v40  ;;  %v3996_v26 = vrot.slane %v3982_v50, %v7776_v40 }
 0x4fa   : > { %v6842_v27 = vcombine.low %v3973_v52, %v3980_v24  ;;  %v6844_v28 = vcombine.high %v3973_v52, %v3980_v24  ;;  %v6846_v29 = vcombine.low %v3989_v25, %v3996_v26  ;;  %v6848_v30 = vcombine.high %v3989_v25, %v3996_v26 }
 0x4fc   : > { %v4045_v34 = vrot.slane %v6842_v27, %v7774_v33  ;;  %v4061_v35 = vrot.slane %v6844_v28, %v7774_v33  ;;  %v8207_v37 = vrot.slane %v6846_v29, %v7774_v33  ;;  %v8210_v36 = vrot.slane %v6848_v30, %v7774_v33 }
 0x4fe   : > { %v4101_v41 = vcombine.low %v4045_v34, %v4061_v35  ;;  %v4102_v3 = vcombine.high %v4045_v34, %v4061_v35 }
 0x500   : > { %v8215_v60 = vrot.slane %v4101_v41, %v7776_v40  ;;  %v8237_v17 = vrot.slane %v4102_v3, %v7776_v40 }
 0x51f   : > { %v3875_v10 = vpop.f32.mrf.mxu1 }
 0x520   : > { %v8184_v11 = vadd.f32 %v6840_v8, %v3875_v10 }
 0x521   : > { %v7163_v21 = vpop.f32.mrf.mxu1 }
 0x5ac   : > { %v8165_v55 = vpop.f32.mrf.mxu0 }
 0x5ae   : > { %v7134_v54 = vpop.f32.mrf.mxu0 }
 0x5b2   : > { %v3799_v59 = vpop.f32.mrf.mxu0 }
 0x5b3   : > { %v3800_v6 = vadd.f32 %v6838_v58, %v3799_v59  ;;  %v4134_v58 = vcombine.high %v8207_v37, %v8210_v36 }
 0x5b4   : > { %v7154_v7 = vpop.f32.mrf.mxu0 }
 0x5b5   : > { %4177 = vrot.lane.b32.xlu1 %v3800_v6, %s8722_s27  ;;  %4174 = vrot.lane.b32.xlu0 %v3800_v6, %s8721_s29 }
 0x5b9   : > { %4186 = vrot.lane.b32.xlu1 %v3800_v6, %s8725_s5  ;;  %4180 = vrot.lane.b32.xlu0 %v3800_v6, %s8723_s26 }
 0x5bd   : > { %4192 = vrot.lane.b32.xlu1 %v3800_v6, %s8727_s0  ;;  %4183 = vrot.lane.b32.xlu0 %v3800_v6, %s8724_s7 }
 0x5c1   : > { %3898 = vrot.lane.b32.xlu1 %v8125_v42, %s8727_s0  ;;  %4189 = vrot.lane.b32.xlu0 %v3800_v6, %s8728_s6 }
 0x5c5   : > { %3895 = vrot.lane.b32.xlu0 %v8125_v42, %s8728_s6  ;;  %4468 = vrot.lane.b32.xlu1 %v8184_v11, %s8721_s29  ;;  %v4133_v42 = vcombine.low %v8207_v37, %v8210_v36  ;;  %s8732_s29 = smov 20  }
 0x5c7   : > { %v8218_v61 = vrot.slane %v4133_v42, %v7776_v40 }
 0x5c9   : > { %4471 = vrot.lane.b32.xlu0 %v8184_v11, %s8722_s27  ;;  %4474 = vrot.lane.b32.xlu1 %v8184_v11, %s8723_s26  ;;  %v4165_v7 = vcombine.low %v8215_v60, %v8218_v61  ;;  %v4166_v51 = vcombine.high %v8215_v60, %v8218_v61  ;;  %s8729_s26 = smov 8   ;;  %s8733_s27 = smov 16  }
 0x627   : > { %v4178_v38 = vpop.permute.xlu1 %4177  ;;  %v4175_v39 = vpop.permute.xlu0 %4174 }
 0x628   : > { %v4195_v43 = vcombine.low %v3800_v6, %v4178_v38  ;;  %v4196_v46 = vcombine.high %v3800_v6, %v4178_v38 }
 0x62a   : > { %v4203_v62 = vrot.slane %v4195_v43, %v7774_v33  ;;  %v4210_v63 = vrot.slane %v4196_v46, %v7774_v33 }
 0x62b   : > { %v4187_v47 = vpop.permute.xlu1 %4186  ;;  %v4181_v53 = vpop.permute.xlu0 %4180 }
 0x62c   : > { %v4211_v56 = vcombine.low %v4175_v39, %v4181_v53  ;;  %v4212_v57 = vcombine.high %v4175_v39, %v4181_v53 }
 0x62e   : > { %v4219_v0 = vrot.slane %v4211_v56, %v7774_v33  ;;  %v4226_v1 = vrot.slane %v4212_v57, %v7774_v33 }
 0x62f   : > { %v4193_v44 = vpop.permute.xlu1 %4192  ;;  %v4184_v45 = vpop.permute.xlu0 %4183 }
 0x630   : > { %v4259_v48 = vcombine.low %v4203_v62, %v4219_v0  ;;  %v4260_v4 = vcombine.high %v4203_v62, %v4219_v0  ;;  %v4275_v5 = vcombine.low %v4210_v63, %v4226_v1  ;;  %v4276_v54 = vcombine.high %v4210_v63, %v4226_v1 }
 0x631   : > { %v4243_v59 = vcombine.low %v4187_v47, %v4193_v44  ;;  %v4244_v6 = vcombine.high %v4187_v47, %v4193_v44 }
 0x632   : > { %v4267_v8 = vrot.slane %v4259_v48, %v7776_v40  ;;  %v4274_v10 = vrot.slane %v4260_v4, %v7776_v40  ;;  %v4283_v21 = vrot.slane %v4275_v5, %v7776_v40  ;;  %v4290_v12 = vrot.slane %v4276_v54, %v7776_v40 }
 0x633   : > { %v4251_v13 = vrot.slane %v4243_v59, %v7774_v33  ;;  %v4258_v14 = vrot.slane %v4244_v6, %v7774_v33  ;;  %v3899_v15 = vpop.permute.xlu1 %3898  ;;  %v4190_v16 = vpop.permute.xlu0 %4189 }
 0x634   : > { %v6850_v18 = vcombine.low %v4267_v8, %v4274_v10  ;;  %v6852_v9 = vcombine.high %v4267_v8, %v4274_v10  ;;  %v6854_v19 = vcombine.low %v4283_v21, %v4290_v12  ;;  %v6856_v20 = vcombine.high %v4283_v21, %v4290_v12 }
 0x635   : > { %v3949_v22 = vcombine.low %v3893_v31, %v3899_v15  ;;  %v3950_v23 = vcombine.high %v3893_v31, %v3899_v15  ;;  %v4227_v49 = vcombine.low %v4184_v45, %v4190_v16  ;;  %v4228_v50 = vcombine.high %v4184_v45, %v4190_v16 }
 0x636   : > { %v4339_v52 = vrot.slane %v6850_v18, %v7774_v33  ;;  %v4355_v24 = vrot.slane %v6852_v9, %v7774_v33  ;;  %v4371_v25 = vrot.slane %v6854_v19, %v7774_v33  ;;  %v4387_v26 = vrot.slane %v6856_v20, %v7774_v33 }
 0x637   : > { %v3957_v27 = vrot.slane %v3949_v22, %v7774_v33  ;;  %v3964_v28 = vrot.slane %v3950_v23, %v7774_v33  ;;  %v4235_v29 = vrot.slane %v4227_v49, %v7774_v33  ;;  %v4242_v30 = vrot.slane %v4228_v50, %v7774_v33  ;;  %v3896_v34 = vpop.permute.xlu0 %3895 }
 0x638   : > { %v4395_v31 = vcombine.low %v4339_v52, %v4355_v24  ;;  %v4396_v35 = vcombine.high %v4339_v52, %v4355_v24  ;;  %v4427_v38 = vcombine.low %v4371_v25, %v4387_v26  ;;  %v4428_v39 = vcombine.high %v4371_v25, %v4387_v26 }
 0x639   : > { %v4291_v41 = vcombine.low %v4235_v29, %v4251_v13  ;;  %v4292_v42 = vcombine.high %v4235_v29, %v4251_v13  ;;  %v4307_v43 = vcombine.low %v4242_v30, %v4258_v14  ;;  %v4308_v46 = vcombine.high %v4242_v30, %v4258_v14 }
 0x63a   : > { %v3933_v47 = vcombine.low %v8202_v32, %v3896_v34  ;;  %v3934_v53 = vcombine.high %v8202_v32, %v3896_v34  ;;  %v4403_v56 = vrot.slane %v4395_v31, %v7776_v40  ;;  %v4435_v57 = vrot.slane %v4427_v38, %v7776_v40 }
 0x63b   : > { %v4299_v62 = vrot.slane %v4291_v41, %v7776_v40  ;;  %v4306_v63 = vrot.slane %v4292_v42, %v7776_v40  ;;  %v4315_v0 = vrot.slane %v4307_v43, %v7776_v40  ;;  %v4322_v1 = vrot.slane %v4308_v46, %v7776_v40  ;;  %v4469_v41 = vpop.permute.xlu1 %4468  ;;  %v4472_v42 = vpop.permute.xlu0 %4471 }
 0x63c   : > { %v3941_v3 = vrot.slane %v3933_v47, %v7774_v33  ;;  %v3948_v44 = vrot.slane %v3934_v53, %v7774_v33  ;;  %v4459_v45 = vcombine.low %v4403_v56, %v4435_v57  ;;  %v4460_v48 = vcombine.high %v4403_v56, %v4435_v57 }
 0x63d   : > { %v6851_v4 = vcombine.low %v4299_v62, %v4306_v63  ;;  %v6853_v32 = vcombine.high %v4299_v62, %v4306_v63  ;;  %v6855_v5 = vcombine.low %v4315_v0, %v4322_v1  ;;  %v6857_v54 = vcombine.high %v4315_v0, %v4322_v1 }
 0x63e   : > { %v3997_v59 = vcombine.low %v3941_v3, %v3957_v27  ;;  %v3998_v6 = vcombine.high %v3941_v3, %v3957_v27  ;;  %v4013_v8 = vcombine.low %v3948_v44, %v3964_v28  ;;  %v4014_v10 = vcombine.high %v3948_v44, %v3964_v28  ;;  %7165 = vmatpush3.xpose.msk.msra.mxu0 %vm1958_vm3, %v4459_v45 }
 0x63f   : > { %v4346_v21 = vrot.slane %v6851_v4, %v7774_v33  ;;  %v4362_v12 = vrot.slane %v6853_v32, %v7774_v33  ;;  %v4378_v13 = vrot.slane %v6855_v5, %v7774_v33  ;;  %v4394_v14 = vrot.slane %v6857_v54, %v7774_v33  ;;  %7170 = vmatpush3.xpose.msk.msra.mxu1 %vm1958_vm3, %v4460_v48  ;;  %v4475_v3 = vpop.permute.xlu1 %4474 }
 0x640   : > { %v4005_v15 = vrot.slane %v3997_v59, %v7776_v40  ;;  %v4012_v16 = vrot.slane %v3998_v6, %v7776_v40  ;;  %v4021_v18 = vrot.slane %v4013_v8, %v7776_v40  ;;  %v4028_v9 = vrot.slane %v4014_v10, %v7776_v40  ;;  %7174 = vmatprep.subr.mxu0 %v7467_v2 }
 0x641   : > { %v4411_v19 = vcombine.low %v4346_v21, %v4362_v12  ;;  %v4412_v20 = vcombine.high %v4346_v21, %v4362_v12  ;;  %v4443_v22 = vcombine.low %v4378_v13, %v4394_v14  ;;  %7167 = vmatmul.mubr.msk.f32.vlgmr.msra.gmra.mxu0 %vm1958_vm3, %v4165_v7  ;;  %v4148_v23 = vrot.slane %v4134_v58, %v7776_v40 }
 0x642   : > { %v6843_v49 = vcombine.low %v4005_v15, %v4012_v16  ;;  %v6845_v50 = vcombine.high %v4005_v15, %v4012_v16  ;;  %v6847_v52 = vcombine.low %v4021_v18, %v4028_v9  ;;  %v6849_v24 = vcombine.high %v4021_v18, %v4028_v9  ;;  %7172 = vmatmul.mubr.msk.f32.vlgmr.msra.gmra.mxu1 %vm1958_vm3, %v4166_v51 }
 0x643   : > { %7179 = vmatprep.subr.mxu1 %v7467_v2  ;;  %v4410_v25 = vrot.slane %v4396_v35, %v7776_v40  ;;  %v4442_v7 = vrot.slane %v4428_v39, %v7776_v40  ;;  %7176 = vmatprep.mubr.msk.f32.mxu0 %vm7468_vm0, %v7467_v2  ;;  %v4419_v37 = vrot.slane %v4411_v19, %v7776_v40 }
 0x644   : > { %v4052_v36 = vrot.slane %v6843_v49, %v7774_v33  ;;  %v4068_v58 = vrot.slane %v6845_v50, %v7774_v33  ;;  %v4084_v26 = vrot.slane %v6847_v52, %v7774_v33  ;;  %v4100_v60 = vrot.slane %v6849_v24, %v7774_v33  ;;  %7181 = vmatprep.mubr.msk.f32.mxu1 %vm7468_vm0, %v7467_v2 }
 0x645   : > { %v4444_v61 = vcombine.high %v4378_v13, %v4394_v14  ;;  %v4461_v51 = vcombine.low %v4410_v25, %v4442_v7  ;;  %v4462_v27 = vcombine.high %v4410_v25, %v4442_v7  ;;  %v4451_v28 = vrot.slane %v4443_v22, %v7776_v40 }
 0x646   : > { %v4117_v29 = vcombine.low %v4052_v36, %v4068_v58  ;;  %v4118_v30 = vcombine.high %v4052_v36, %v4068_v58  ;;  %v4149_v34 = vcombine.low %v4084_v26, %v4100_v60  ;;  %v4167_v31 = vcombine.low %v8237_v17, %v4148_v23 }
 0x647   : > { %v4150_v35 = vcombine.high %v4084_v26, %v4100_v60  ;;  %7175 = vmatpush3.xpose.msk.msra.mxu0 %vm1958_vm3, %v4461_v51  ;;  %7180 = vmatpush3.xpose.msk.msra.mxu1 %vm1958_vm3, %v4462_v27  ;;  %v4463_v38 = vcombine.low %v4419_v37, %v4451_v28  ;;  %v4464_v39 = vcombine.high %v4419_v37, %v4451_v28 }
 0x648   : > { %v4168_v43 = vcombine.high %v8237_v17, %v4148_v23  ;;  %7184 = vmatprep.subr.mxu0 %v7467_v2  ;;  %7189 = vmatprep.subr.mxu1 %v7467_v2  ;;  %v4125_v46 = vrot.slane %v4117_v29, %v7776_v40  ;;  %v4157_v47 = vrot.slane %v4149_v34, %v7776_v40 }
 0x649   : > { %v4426_v53 = vrot.slane %v4412_v20, %v7776_v40  ;;  %v4458_v56 = vrot.slane %v4444_v61, %v7776_v40  ;;  %v4489_v57 = vcombine.low %v8184_v11, %v4472_v42  ;;  %v4490_v63 = vcombine.high %v8184_v11, %v4472_v42 }
 0x64a   : > { %7177 = vmatmul.mubr.msk.f32.vlgmr.msra.gmra.mxu0 %vm1958_vm3, %v4167_v31  ;;  %7182 = vmatmul.mubr.msk.f32.vlgmr.msra.gmra.mxu1 %vm1958_vm3, %v4168_v43  ;;  %v4169_v62 = vcombine.low %v4125_v46, %v4157_v47  ;;  %v4170_v17 = vcombine.high %v4125_v46, %v4157_v47  ;;  %v4132_v0 = vrot.slane %v4118_v30, %v7776_v40 }
 0x64b   : > { %7185 = vmatpush3.xpose.msk.msra.mxu0 %vm1958_vm3, %v4463_v38  ;;  %7190 = vmatpush3.xpose.msk.msra.mxu1 %vm1958_vm3, %v4464_v39  ;;  %v4164_v1 = vrot.slane %v4150_v35, %v7776_v40  ;;  %v4497_v44 = vrot.slane %v4489_v57, %v7774_v33  ;;  %v4505_v45 = vcombine.low %v4469_v41, %v4475_v3 }
 0x64c   : > { %7186 = vmatprep.mubr.msk.f32.mxu0 %vm7468_vm0, %v7467_v2  ;;  %7191 = vmatprep.mubr.msk.f32.mxu1 %vm7468_vm0, %v7467_v2  ;;  %v4506_v48 = vcombine.high %v4469_v41, %v4475_v3  ;;  %v4504_v4 = vrot.slane %v4490_v63, %v7774_v33  ;;  %v4465_v32 = vcombine.low %v4426_v53, %v4458_v56 }
 0x64d   : > { %7194 = vmatprep.subr.mxu0 %v7467_v2  ;;  %7199 = vmatprep.subr.mxu1 %v7467_v2  ;;  %v4466_v5 = vcombine.high %v4426_v53, %v4458_v56  ;;  %v4513_v54 = vrot.slane %v4505_v45, %v7774_v33  ;;  %v4171_v6 = vcombine.low %v4132_v0, %v4164_v1 }
 0x64e   : > { %7187 = vmatmul.mubr.msk.f32.vlgmr.msra.gmra.mxu0 %vm1958_vm3, %v4169_v62  ;;  %7192 = vmatmul.mubr.msk.f32.vlgmr.msra.gmra.mxu1 %vm1958_vm3, %v4170_v17  ;;  %v4520_v59 = vrot.slane %v4506_v48, %v7774_v33  ;;  %v4172_v8 = vcombine.high %v4132_v0, %v4164_v1 }
 0x64f   : > { %7195 = vmatpush3.xpose.msk.msra.mxu0 %vm1958_vm3, %v4465_v32  ;;  %7200 = vmatpush3.xpose.msk.msra.mxu1 %vm1958_vm3, %v4466_v5  ;;  %v4553_v10 = vcombine.low %v4497_v44, %v4513_v54  ;;  %v4554_v21 = vcombine.high %v4497_v44, %v4513_v54 }
 0x650   : > { %7196 = vmatprep.mubr.msk.f32.mxu0 %vm7468_vm0, %v7467_v2  ;;  %7201 = vmatprep.mubr.msk.f32.mxu1 %vm7468_vm0, %v7467_v2  ;;  %v4569_v12 = vcombine.low %v4504_v4, %v4520_v59  ;;  %v4570_v13 = vcombine.high %v4504_v4, %v4520_v59 }
 0x651   : > { %7204 = vmatprep.subr.mxu0 %v7467_v2  ;;  %7209 = vmatprep.subr.mxu1 %v7467_v2  ;;  %v4561_v14 = vrot.slane %v4553_v10, %v7776_v40  ;;  %v4568_v15 = vrot.slane %v4554_v21, %v7776_v40 }
 0x652   : > { %7197 = vmatmul.mubr.msk.f32.vlgmr.msra.gmra.mxu0 %vm1958_vm3, %v4171_v6  ;;  %7202 = vmatmul.mubr.msk.f32.vlgmr.msra.gmra.mxu1 %vm1958_vm3, %v4172_v8  ;;  %v4577_v16 = vrot.slane %v4569_v12, %v7776_v40  ;;  %v4584_v18 = vrot.slane %v4570_v13, %v7776_v40 }
 0x653   : > { %7206 = vmatprep.mubr.msk.f32.mxu0 %vm7468_vm0, %v7467_v2  ;;  %7211 = vmatprep.mubr.msk.f32.mxu1 %vm7468_vm0, %v7467_v2  ;;  %v6858_v9 = vcombine.low %v4561_v14, %v4568_v15  ;;  %v6860_v19 = vcombine.high %v4561_v14, %v4568_v15 }
 0x654   : > { %v6862_v20 = vcombine.low %v4577_v16, %v4584_v18  ;;  %v6864_v22 = vcombine.high %v4577_v16, %v4584_v18 }
 0x655   : > { %v4633_v23 = vrot.slane %v6858_v9, %v7774_v33  ;;  %v4649_v49 = vrot.slane %v6860_v19, %v7774_v33 }
 0x656   : > { %v4665_v50 = vrot.slane %v6862_v20, %v7774_v33  ;;  %v4681_v52 = vrot.slane %v6864_v22, %v7774_v33 }
 0x657   : > { %v4689_v24 = vcombine.low %v4633_v23, %v4649_v49  ;;  %v4690_v26 = vcombine.high %v4633_v23, %v4649_v49 }
 0x658   : > { %v4721_v25 = vcombine.low %v4665_v50, %v4681_v52  ;;  %v4722_v60 = vcombine.high %v4665_v50, %v4681_v52 }
 0x659   : > { %v4697_v7 = vrot.slane %v4689_v24, %v7776_v40  ;;  %v8350_v61 = vrot.slane %v4690_v26, %v7776_v40 }
 0x65a   : > { %v4729_v37 = vrot.slane %v4721_v25, %v7776_v40  ;;  %v8353_v51 = vrot.slane %v4722_v60, %v7776_v40 }
 0x65c   : > { %v4753_v36 = vcombine.low %v4697_v7, %v4729_v37  ;;  %v4754_v58 = vcombine.high %v4697_v7, %v4729_v37  ;;  %v4755_v27 = vcombine.low %v8350_v61, %v8353_v51  ;;  %v4756_v28 = vcombine.high %v8350_v61, %v8353_v51 }
 0x65e   : > { %7205 = vmatpush3.msra.mxu0 %v4753_v36  ;;  %7210 = vmatpush3.msra.mxu1 %v4754_v58 }
 0x65f   : > { %7214 = vmatprep.subr.mxu0 %v7467_v2  ;;  %7219 = vmatprep.subr.mxu1 %v7467_v2 }
 0x701   : > { %v4833_v29 = vpop.f32.mrf.mxu0 }
 0x702   : > { %v4909_v30 = vpop.f32.mrf.mxu1  ;;  %v5369_v34 = vsel %vm2567_vm4, %v4833_v29, -inf }
 0x703   : > { %v5372_v31 = vsel %vm2567_vm4, %v4909_v30, -inf  ;;  %5370 = vmax.xlane.f32.xlu0 %v5369_v34  ;;  %v7168_v35 = vpop.f32.mrf.mxu0 }
 0x704   : > { %5373 = vmax.xlane.f32.xlu1 %v5372_v31  ;;  %v7173_v38 = vpop.f32.mrf.mxu1 }
 0x70a   : > { %v4985_v39 = vpop.f32.mrf.mxu0  ;;  %v5061_v41 = vpop.f32.mrf.mxu1 }
 0x70b   : > { %v5375_v42 = vsel %vm2567_vm4, %v4985_v39, -inf  ;;  %v5378_v56 = vsel %vm2567_vm4, %v5061_v41, -inf }
 0x70c   : > { %v7183_v43 = vpop.f32.mrf.mxu1  ;;  %5376 = vmax.xlane.f32.xlu0 %v5375_v42  ;;  %v7178_v46 = vpop.f32.mrf.mxu0 }
 0x70e   : > { %v5137_v47 = vpop.f32.mrf.mxu0  ;;  %v5213_v53 = vpop.f32.mrf.mxu1 }
 0x70f   : > { %v5381_v57 = vsel %vm2567_vm4, %v5137_v47, -inf  ;;  %v5384_v1 = vsel %vm2567_vm4, %v5213_v53, -inf }
 0x710   : > { %5379 = vmax.xlane.f32.xlu0 %v5378_v56  ;;  %v7193_v62 = vpop.f32.mrf.mxu1  ;;  %5382 = vmax.xlane.f32.xlu1 %v5381_v57  ;;  %v7188_v17 = vpop.f32.mrf.mxu0 }
 0x712   : > { %v5289_v63 = vpop.f32.mrf.mxu0  ;;  %v5365_v0 = vpop.f32.mrf.mxu1 }
 0x713   : > { %v5387_v3 = vsel %vm2567_vm4, %v5289_v63, -inf  ;;  %v5390_v48 = vsel %vm2567_vm4, %v5365_v0, -inf }
 0x714   : > { %5385 = vmax.xlane.f32.xlu0 %v5384_v1  ;;  %v7203_v44 = vpop.f32.mrf.mxu1  ;;  %5388 = vmax.xlane.f32.xlu1 %v5387_v3  ;;  %v7198_v45 = vpop.f32.mrf.mxu0 }
 0x718   : > { %5391 = vmax.xlane.f32.xlu0 %v5390_v48 }
 0x725   : > { %4480 = vrot.lane.b32.xlu1 %v8184_v11, %s8725_s5  ;;  %s8731_s5 = smov 12  }
 0x72e   : > { %4477 = vrot.lane.b32.xlu0 %v8184_v11, %s8724_s7  ;;  %s8730_s7 = smov 4  }
 0x78c   : > { %v5371_v4 = vpop.xlane.xlu0 %5370 }
 0x78d   : > { %v5374_v32 = vpop.xlane.xlu1 %5373  ;;  %v5393_v5 = vsub.f32 %v4833_v29, %v5371_v4 }
 0x78e   : > { %v5394_v54 = vsub.f32 %v4909_v30, %v5374_v32 }
 0x78f   : > { %v5401_v59 = vmul.f32 1.442695, %v5393_v5 }
 0x790   : > { %v5403_v6 = vmul.f32 1.442695, %v5394_v54 }
 0x791   : > { %7366 = vpow2.f32 %v5401_v59 }
 0x792   : > { %7368 = vpow2.f32 %v5403_v6 }
 0x795   : > { %v5377_v8 = vpop.xlane.xlu0 %5376 }
 0x796   : > { %v5395_v10 = vsub.f32 %v4985_v39, %v5377_v8 }
 0x798   : > { %v5405_v21 = vmul.f32 1.442695, %v5395_v10 }
 0x799   : > { %v5380_v12 = vpop.xlane.xlu0 %5379  ;;  %v5383_v13 = vpop.xlane.xlu1 %5382 }
 0x79a   : > { %7370 = vpow2.f32 %v5405_v21  ;;  %v5396_v14 = vsub.f32 %v5061_v41, %v5380_v12  ;;  %v5397_v15 = vsub.f32 %v5137_v47, %v5383_v13 }
 0x79c   : > { %v5407_v16 = vmul.f32 1.442695, %v5396_v14  ;;  %v5409_v18 = vmul.f32 1.442695, %v5397_v15 }
 0x79d   : > { %v5386_v9 = vpop.xlane.xlu0 %5385  ;;  %v5389_v19 = vpop.xlane.xlu1 %5388 }
 0x79e   : > { %v7367_v20 = vpop.eup %7366  ;;  %7372 = vpow2.f32 %v5407_v16  ;;  %v5398_v22 = vsub.f32 %v5213_v53, %v5386_v9  ;;  %v5399_v23 = vsub.f32 %v5289_v63, %v5389_v19 }
 0x79f   : > { %v7369_v49 = vpop.eup %7368  ;;  %7374 = vpow2.f32 %v5409_v18  ;;  %v5417_v50 = vsel %vm2567_vm4, %v7367_v20, 0.0 }
 0x7a0   : > { %v5411_v52 = vmul.f32 1.442695, %v5398_v22  ;;  %v5413_v24 = vmul.f32 1.442695, %v5399_v23  ;;  %v5420_v25 = vsel %vm2567_vm4, %v7369_v49, 0.0  ;;  %5418 = vadd.xlane.f32.xlu1 %v5417_v50 }
 0x7a1   : > { %v5392_v7 = vpop.xlane.xlu0 %5391  ;;  %5421 = vadd.xlane.f32.xlu0 %v5420_v25  ;;  %v4481_v43 = vpop.permute.xlu1 %4480 }
 0x7a2   : > { %7376 = vpow2.f32 %v5411_v52  ;;  %v5400_v37 = vsub.f32 %v5365_v0, %v5392_v7 }
 0x7a3   : > { %7378 = vpow2.f32 %v5413_v24 }
 0x7a4   : > { %v5415_v36 = vmul.f32 1.442695, %v5400_v37 }
 0x7a5   : > { %v4478_v46 = vpop.permute.xlu0 %4477 }
 0x7a6   : > { %7380 = vpow2.f32 %v5415_v36 }
 0x7a7   : > { %v7371_v58 = vpop.eup %7370 }
 0x7a8   : > { %v5423_v26 = vsel %vm2567_vm4, %v7371_v58, 0.0 }
 0x7a9   : > { %5424 = vadd.xlane.f32.xlu1 %v5423_v26 }
 0x7ab   : > { %v7373_v60 = vpop.eup %7372 }
 0x7ac   : > { %v8374_v29 = vpop.eup %7374  ;;  %v5426_v30 = vsel %vm2567_vm4, %v7373_v60, 0.0 }
 0x7ad   : > { %5427 = vadd.xlane.f32.xlu0 %v5426_v30  ;;  %v5429_v34 = vsel %vm2567_vm4, %v8374_v29, 0.0 }
 0x7ae   : > { %5430 = vadd.xlane.f32.xlu1 %v5429_v34 }
 0x7af   : > { %v8379_v31 = vpop.eup %7376 }
 0x7b0   : > { %v8381_v35 = vpop.eup %7378  ;;  %v5432_v38 = vsel %vm2567_vm4, %v8379_v31, 0.0 }
 0x7b1   : > { %5433 = vadd.xlane.f32.xlu0 %v5432_v38  ;;  %v5435_v39 = vsel %vm2567_vm4, %v8381_v35, 0.0 }
 0x7b2   : > { %5436 = vadd.xlane.f32.xlu1 %v5435_v39 }
 0x7b3   : > { %v8387_v41 = vpop.eup %7380 }
 0x7b4   : > { %v5438_v42 = vsel %vm2567_vm4, %v8387_v41, 0.0 }
 0x7b5   : > { %5439 = vadd.xlane.f32.xlu0 %v5438_v42 }
 0x7c3   : > { %4483 = vrot.lane.b32.xlu1 %v8184_v11, %s8728_s6 }
 0x7cb   : > { %4486 = vrot.lane.b32.xlu0 %v8184_v11, %s8727_s0 }
 0x829   : > { %v5419_v47 = vpop.xlane.xlu1 %5418 }
 0x82a   : > { %v5422_v53 = vpop.xlane.xlu0 %5421  ;;  %7382 = vrcp.f32 %v5419_v47 }
 0x82b   : > { %7384 = vrcp.f32 %v5422_v53 }
 0x832   : > { %v5425_v56 = vpop.xlane.xlu1 %5424 }
 0x833   : > { %7386 = vrcp.f32 %v5425_v56 }
 0x836   : > { %v5428_v57 = vpop.xlane.xlu0 %5427 }
 0x837   : > { %v7383_v62 = vpop.eup %7382  ;;  %7388 = vrcp.f32 %v5428_v57  ;;  %v5431_v17 = vpop.xlane.xlu1 %5430 }
 0x838   : > { %v7385_v63 = vpop.eup %7384  ;;  %v5449_v0 = vmul.f32 %v7383_v62, %v7367_v20  ;;  %7390 = vrcp.f32 %v5431_v17 }
 0x839   : > { %v5450_v1 = vmul.f32 %v7385_v63, %v7369_v49 }
 0x83a   : > { %v5434_v3 = vpop.xlane.xlu0 %5433  ;;  %7207 = vmatmul.mubr.msk.f32.vlgmr.msra.gmra.mxu0 %vm2567_vm4, %v5449_v0 }
 0x83b   : > { %v5437_v44 = vpop.xlane.xlu1 %5436  ;;  %7212 = vmatmul.mubr.msk.f32.vlgmr.msra.gmra.mxu1 %vm2567_vm4, %v5450_v1  ;;  %7215 = vmatpush3.msra.mxu0 %v4755_v27  ;;  %7392 = vrcp.f32 %v5434_v3 }
 0x83c   : > { %7220 = vmatpush3.msra.mxu1 %v4756_v28  ;;  %7216 = vmatprep.mubr.msk.f32.mxu0 %vm7468_vm0, %v7467_v2  ;;  %7394 = vrcp.f32 %v5437_v44 }
 0x83d   : > { %7221 = vmatprep.mubr.msk.f32.mxu1 %vm7468_vm0, %v7467_v2  ;;  %7224 = vmatprep.subr.mxu0 %v7467_v2 }
 0x83e   : > { %v5440_v11 = vpop.xlane.xlu0 %5439  ;;  %7229 = vmatprep.subr.mxu1 %v7467_v2 }
 0x83f   : > { %v4484_v45 = vpop.permute.xlu1 %4483  ;;  %7396 = vrcp.f32 %v5440_v11 }
 0x840   : > { %v7387_v48 = vpop.eup %7386  ;;  %v4521_v4 = vcombine.low %v4478_v46, %v4484_v45  ;;  %v4522_v32 = vcombine.high %v4478_v46, %v4484_v45 }
 0x841   : > { %v5451_v27 = vmul.f32 %v7387_v48, %v7371_v58 }
 0x842   : > { %v4487_v5 = vpop.permute.xlu0 %4486  ;;  %v4529_v54 = vrot.slane %v4521_v4, %v7774_v33  ;;  %v4536_v59 = vrot.slane %v4522_v32, %v7774_v33 }
 0x843   : > { %v4537_v61 = vcombine.low %v4481_v43, %v4487_v5  ;;  %v4538_v51 = vcombine.high %v4481_v43, %v4487_v5  ;;  %7217 = vmatmul.mubr.msk.f32.vlgmr.msra.gmra.mxu0 %vm2567_vm4, %v5451_v27 }
 0x844   : > { %v7389_v28 = vpop.eup %7388  ;;  %7226 = vmatprep.mubr.msk.f32.mxu0 %vm7468_vm0, %v7467_v2 }
 0x845   : > { %v4545_v6 = vrot.slane %v4537_v61, %v7774_v33  ;;  %v4552_v8 = vrot.slane %v4538_v51, %v7774_v33  ;;  %v5452_v10 = vmul.f32 %v7389_v28, %v7373_v60  ;;  %v7391_v58 = vpop.eup %7390 }
 0x846   : > { %v5453_v46 = vmul.f32 %v7391_v58, %v8374_v29 }
 0x847   : > { %v4585_v21 = vcombine.low %v4529_v54, %v4545_v6  ;;  %v4586_v12 = vcombine.high %v4529_v54, %v4545_v6  ;;  %v4601_v13 = vcombine.low %v4536_v59, %v4552_v8  ;;  %v4602_v14 = vcombine.high %v4536_v59, %v4552_v8  ;;  %7222 = vmatmul.mubr.msk.f32.vlgmr.msra.gmra.mxu1 %vm2567_vm4, %v5452_v10 }
 0x848   : > { %7231 = vmatprep.mubr.msk.f32.mxu1 %vm7468_vm0, %v7467_v2  ;;  %v7393_v26 = vpop.eup %7392 }
 0x849   : > { %v4593_v15 = vrot.slane %v4585_v21, %v7776_v40  ;;  %v4600_v16 = vrot.slane %v4586_v12, %v7776_v40  ;;  %v4609_v18 = vrot.slane %v4601_v13, %v7776_v40  ;;  %v4616_v9 = vrot.slane %v4602_v14, %v7776_v40  ;;  %v7395_v39 = vpop.eup %7394 }
 0x84a   : > { %v5454_v47 = vmul.f32 %v7393_v26, %v8379_v31  ;;  %v5455_v62 = vmul.f32 %v7395_v39, %v8381_v35 }
 0x84b   : > { %v6859_v19 = vcombine.low %v4593_v15, %v4600_v16  ;;  %v6861_v20 = vcombine.high %v4593_v15, %v4600_v16  ;;  %v6863_v22 = vcombine.low %v4609_v18, %v4616_v9  ;;  %v6865_v23 = vcombine.high %v4609_v18, %v4616_v9  ;;  %v3646_v15 = vld [vmem:[%s8640_s17 + $0x18] sm:$0xff] }
 0x84c   : > { %v7397_v53 = vpop.eup %7396 }
 0x84d   : > { %v4640_v49 = vrot.slane %v6859_v19, %v7774_v33  ;;  %v4656_v50 = vrot.slane %v6861_v20, %v7774_v33  ;;  %v4672_v52 = vrot.slane %v6863_v22, %v7774_v33  ;;  %v4688_v24 = vrot.slane %v6865_v23, %v7774_v33 }
 0x84e   : > { %v5456_v29 = vmul.f32 %v7397_v53, %v8387_v41 }
 0x84f   : > { %v4705_v25 = vcombine.low %v4640_v49, %v4656_v50  ;;  %v4737_v7 = vcombine.low %v4672_v52, %v4688_v24  ;;  %v4706_v37 = vcombine.high %v4640_v49, %v4656_v50  ;;  %v4738_v36 = vcombine.high %v4672_v52, %v4688_v24 }
 0x851   : > { %v4713_v60 = vrot.slane %v4705_v25, %v7776_v40  ;;  %v4745_v30 = vrot.slane %v4737_v7, %v7776_v40  ;;  %v4720_v34 = vrot.slane %v4706_v37, %v7776_v40  ;;  %v4752_v38 = vrot.slane %v4738_v36, %v7776_v40 }
 0x853   : > { %v4757_v42 = vcombine.low %v4713_v60, %v4745_v30  ;;  %v4758_v43 = vcombine.high %v4713_v60, %v4745_v30  ;;  %v4759_v56 = vcombine.low %v4720_v34, %v4752_v38  ;;  %v4760_v57 = vcombine.high %v4720_v34, %v4752_v38 }
 0x855   : > { %7225 = vmatpush3.msra.mxu0 %v4757_v42  ;;  %7230 = vmatpush3.msra.mxu1 %v4758_v43 }
 0x856   : > { %7227 = vmatmul.mubr.msk.f32.vlgmr.msra.gmra.mxu0 %vm2567_vm4, %v5453_v46  ;;  %7232 = vmatmul.mubr.msk.f32.vlgmr.msra.gmra.mxu1 %vm2567_vm4, %v5454_v47 }
 0x857   : > { %7234 = vmatprep.subr.mxu0 %v7467_v2  ;;  %7239 = vmatprep.subr.mxu1 %v7467_v2 }
 0x858   : > { %7235 = vmatpush3.msra.mxu0 %v4759_v56  ;;  %7240 = vmatpush3.msra.mxu1 %v4760_v57 }
 0x859   : > { %7236 = vmatprep.mubr.msk.f32.mxu0 %vm7468_vm0, %v7467_v2  ;;  %7241 = vmatprep.mubr.msk.f32.mxu1 %vm7468_vm0, %v7467_v2 }
 0x85a   : > { %7237 = vmatmul.mubr.msk.f32.vlgmr.msra.gmra.mxu0 %vm2567_vm4, %v5455_v62  ;;  %7242 = vmatmul.mubr.msk.f32.vlgmr.msra.gmra.mxu1 %vm2567_vm4, %v5456_v29 }
 0x85b   : > { %7244 = vmatprep.subr.mxu0 %v7467_v2  ;;  %7252 = vmatprep.mubr.msk.f32.mxu0 %vm7468_vm0, %v7467_v2 }
 0x85c   : > { %7255 = vmatprep.subr.mxu1 %v7467_v2  ;;  %7263 = vmatprep.mubr.msk.f32.mxu1 %vm7468_vm0, %v7467_v2 }
 0x85d   : > { %7245 = vmatpush3.msra.mxu0 %v3646_v15 }
 0x85e   : > { %7246 = vmatprep.subr.mxu0 %v7467_v2 }
 0x8fa   : > { %v5526_v31 = vpop.f32.mrf.mxu0 }
 0x8fb   : > { %v5599_v35 = vpop.f32.mrf.mxu1 }
 0x8fc   : > { %v7208_v41 = vpop.f32.mrf.mxu0 }
 0x8fd   : > { %v7213_v17 = vpop.f32.mrf.mxu1 }
 0x903   : > { %v5672_v63 = vpop.f32.mrf.mxu0 }
 0x904   : > { %v6041_v1 = vcombine.low %v5526_v31, %v5672_v63  ;;  %v6042_v3 = vcombine.high %v5526_v31, %v5672_v63 }
 0x905   : > { %v7218_v0 = vpop.f32.mrf.mxu0 }
 0x906   : > { %v6049_v4 = vrot.slane %v6041_v1, %v7774_v33  ;;  %v6056_v32 = vrot.slane %v6042_v3, %v7774_v33  ;;  %v3645_v0 = vld [vmem:[%s8640_s17 + $0x10] sm:$0xff]  ;;  %v3644_v1 = vld [vmem:[%s8640_s17 + $0x8] sm:$0xff] }
 0x907   : > { %v5745_v44 = vpop.f32.mrf.mxu1  ;;  %7247 = vmatpush3.msra.mxu0 %v3645_v0 }
 0x908   : > { %v6057_v11 = vcombine.low %v5599_v35, %v5745_v44  ;;  %v6058_v45 = vcombine.high %v5599_v35, %v5745_v44  ;;  %7248 = vmatprep.subr.mxu0 %v7467_v2 }
 0x909   : > { %v7223_v48 = vpop.f32.mrf.mxu1  ;;  %7249 = vmatpush3.msra.mxu0 %v3644_v1 }
 0x90a   : > { %v6065_v27 = vrot.slane %v6057_v11, %v7774_v33  ;;  %v6072_v5 = vrot.slane %v6058_v45, %v7774_v33  ;;  %7250 = vmatprep.subr.mxu0 %v7467_v2 }
 0x90c   : > { %v6105_v61 = vcombine.low %v6049_v4, %v6065_v27  ;;  %v6106_v51 = vcombine.high %v6049_v4, %v6065_v27  ;;  %v6121_v28 = vcombine.low %v6056_v32, %v6072_v5  ;;  %v6122_v54 = vcombine.high %v6056_v32, %v6072_v5 }
 0x90e   : > { %v6113_v59 = vrot.slane %v6105_v61, %v7776_v40  ;;  %v6120_v6 = vrot.slane %v6106_v51, %v7776_v40  ;;  %v6129_v8 = vrot.slane %v6121_v28, %v7776_v40  ;;  %v6136_v10 = vrot.slane %v6122_v54, %v7776_v40  ;;  %v3643_v54 = vld [vmem:[%s8640_s17] sm:$0xff] }
 0x90f   : > { %7251 = vmatpush3.msra.mxu0 %v3643_v54  ;;  %v6479_v54 = vld [vmem:[%s8645_s22 + $0x8] sm:$0xff] }
 0x910   : > { %v6890_v21 = vcombine.low %v6113_v59, %v6120_v6  ;;  %v6892_v12 = vcombine.high %v6113_v59, %v6120_v6  ;;  %v6894_v13 = vcombine.low %v6129_v8, %v6136_v10  ;;  %v6896_v14 = vcombine.high %v6129_v8, %v6136_v10  ;;  %7266 = vmatprep.subr.mxu0 %v7467_v2 }
 0x912   : > { %v6185_v16 = vrot.slane %v6890_v21, %v7774_v33  ;;  %v6201_v18 = vrot.slane %v6892_v12, %v7774_v33  ;;  %v6217_v9 = vrot.slane %v6894_v13, %v7774_v33  ;;  %v6233_v19 = vrot.slane %v6896_v14, %v7774_v33 }
 0x914   : > { %v6242_v20 = vcombine.high %v6185_v16, %v6201_v18  ;;  %v6274_v22 = vcombine.high %v6217_v9, %v6233_v19  ;;  %v6241_v23 = vcombine.low %v6185_v16, %v6201_v18  ;;  %v6273_v49 = vcombine.low %v6217_v9, %v6233_v19  ;;  %v6834_v9 = vld [vmem:[%s8736_s28] ss:$0 sm:$0xff] }
 0x915   : > { %v3627_v19 = vadd.f32 %v6834_v9, %v8165_v55 }
 0x916   : > { %v5818_v50 = vpop.f32.mrf.mxu0  ;;  %v5891_v52 = vpop.f32.mrf.mxu1  ;;  %v6256_v24 = vrot.slane %v6242_v20, %v7776_v40  ;;  %v6288_v25 = vrot.slane %v6274_v22, %v7776_v40  ;;  %v8470_v7 = vrot.slane %v6241_v23, %v7776_v40  ;;  %v8473_v37 = vrot.slane %v6273_v49, %v7776_v40  ;;  %v7404_v20 = vld [vmem:[%s7704_s10] sm:$0xff]  ;;  %s806_s10 = sand.u32 1, %s7457_s3  }
 0x917   : > { %v6427_v22 = vadd.f32 %v7404_v20, %v3627_v19  ;;  %s6768_s0 = sshll.u32 %s806_s10, 3  ;;  %s6668_s13 = scalar_lea.sflag [#allocation3], %s806_s10 }
 0x918   : > { %v7228_v36 = vpop.f32.mrf.mxu0  ;;  %v7233_v58 = vpop.f32.mrf.mxu1  ;;  %v6307_v26 = vcombine.low %v6256_v24, %v6288_v25  ;;  %v6306_v60 = vcombine.high %v8470_v7, %v8473_v37  ;;  %v6305_v30 = vcombine.low %v8470_v7, %v8473_v37  ;;  %v6308_v56 = vcombine.high %v6256_v24, %v6288_v25 }
 0x91a   : > { %v6037_v34 = vpop.f32.mrf.mxu1  ;;  %6318 = vrot.lane.b32.xlu0 %v6307_v26, %s8729_s26  ;;  %6314 = vrot.lane.b32.xlu1 %v6306_v60, %s8730_s7  ;;  %v5964_v38 = vpop.f32.mrf.mxu0  ;;  %s8734_s26 = smov 28   ;;  %s8735_s7 = smov 24  }
 0x91b   : > { %v6089_v39 = vcombine.low %v5891_v52, %v6037_v34  ;;  %v6090_v42 = vcombine.high %v5891_v52, %v6037_v34  ;;  %v6073_v43 = vcombine.low %v5818_v50, %v5964_v38  ;;  %v6074_v46 = vcombine.high %v5818_v50, %v5964_v38 }
 0x91c   : > { %v7238_v47 = vpop.f32.mrf.mxu0  ;;  %v7243_v53 = vpop.f32.mrf.mxu1 }
 0x91d   : > { %v6097_v57 = vrot.slane %v6089_v39, %v7774_v33  ;;  %v6104_v62 = vrot.slane %v6090_v42, %v7774_v33  ;;  %v6081_v29 = vrot.slane %v6073_v43, %v7774_v33  ;;  %v6088_v31 = vrot.slane %v6074_v46, %v7774_v33  ;;  %v6477_v46 = vld [vmem:[%s8644_s21 + $0x18] sm:$0xff]  ;;  %v6476_v47 = vld [vmem:[%s8644_s21 + $0x10] sm:$0xff]  ;;  %v6475_v53 = vld [vmem:[%s8644_s21 + $0x8] sm:$0xff] }
 0x91e   : > { %6322 = vrot.lane.b32.xlu1 %v6308_v56, %s8731_s5  ;;  %v6474_v56 = vld [vmem:[%s8644_s21] sm:$0xff]  ;;  %s808_s5 = scalar_lea.vmem [#allocation2], %s6768_s0 }
 0x91f   : > { %v6137_v35 = vcombine.low %v6081_v29, %v6097_v57  ;;  %v6138_v41 = vcombine.high %v6081_v29, %v6097_v57  ;;  %v6153_v17 = vcombine.low %v6088_v31, %v6104_v62  ;;  %v6154_v63 = vcombine.high %v6088_v31, %v6104_v62  ;;  %v6898_v57 = vld [vmem:[%s8641_s18] ss:$0 sm:$0xff]  ;;  %s6681_s30 = sshll.u32 %s808_s5, 4  ;;  %s6682_s30 = int_to_ptr.vmem [resolvable:$true] %s6681_s30 }
 0x920   : > { %s7405_s6 = scalar_lea.vmem %s6682_s30, 128 }
 0x921   : > { %v6145_v3 = vrot.slane %v6137_v35, %v7776_v40  ;;  %v6152_v44 = vrot.slane %v6138_v41, %v7776_v40  ;;  %v6161_v11 = vrot.slane %v6153_v17, %v7776_v40  ;;  %v6168_v45 = vrot.slane %v6154_v63, %v7776_v40  ;;  %p7406_p11 = scmp.ne.s32.totalorder %s6682_s30, %s7405_s6 }
 0x923   : > { %v6891_v48 = vcombine.low %v6145_v3, %v6152_v44  ;;  %v6893_v4 = vcombine.high %v6145_v3, %v6152_v44  ;;  %v6895_v32 = vcombine.low %v6161_v11, %v6168_v45  ;;  %v6897_v27 = vcombine.high %v6161_v11, %v6168_v45  ;;  %v6900_v3 = vld [vmem:[%s8642_s19] ss:$0 sm:$0xff]  ;;  %p7407_p12 = pnand %p7406_p11, %p7659_p5 }
 0x924   : > { %v6901_v11 = vld [vmem:[%s8643_s20] ss:$0 sm:$0xff] }
 0x925   : > { %v6192_v5 = vrot.slane %v6891_v48, %v7774_v33  ;;  %v6208_v61 = vrot.slane %v6893_v4, %v7774_v33  ;;  %v6224_v51 = vrot.slane %v6895_v32, %v7774_v33  ;;  %v6240_v28 = vrot.slane %v6897_v27, %v7774_v33  ;;  %p7408_p13 = pneg %p7407_p12 }
 0x927   : > { %v6257_v59 = vcombine.low %v6192_v5, %v6208_v61  ;;  %v6289_v6 = vcombine.low %v6224_v51, %v6240_v28  ;;  %v6258_v8 = vcombine.high %v6192_v5, %v6208_v61  ;;  %v6290_v10 = vcombine.high %v6224_v51, %v6240_v28  ;;  %v6481_v51 = vld [vmem:[%s8645_s22 + $0x18] sm:$0xff]  ;;  %v6480_v28 = vld [vmem:[%s8645_s22 + $0x10] sm:$0xff] }
 0x928   : > { %7256 = vmatpush3.msra.mxu1 %v6481_v51 }
 0x929   : > { %v6265_v21 = vrot.slane %v6257_v59, %v7776_v40  ;;  %v6297_v12 = vrot.slane %v6289_v6, %v7776_v40  ;;  %v6272_v33 = vrot.slane %v6258_v8, %v7776_v40  ;;  %v6304_v15 = vrot.slane %v6290_v10, %v7776_v40  ;;  %7257 = vmatprep.subr.mxu1 %v7467_v2  ;;  %v6478_v59 = vld [vmem:[%s8645_s22] sm:$0xff] }
 0x92a   : > { %v6430_v40 = vsel %vm846_vm2, %v6427_v22, 0.0  ;;  %7258 = vmatpush3.msra.mxu1 %v6480_v28 }
 0x92b   : > { %v6310_v13 = vcombine.high %v6265_v21, %v6297_v12  ;;  %v6309_v14 = vcombine.low %v6265_v21, %v6297_v12  ;;  %v6312_v16 = vcombine.high %v6272_v33, %v6304_v15  ;;  %v6311_v18 = vcombine.low %v6272_v33, %v6304_v15  ;;  %7259 = vmatprep.subr.mxu1 %v7467_v2 }
 0x92c   : > { %7260 = vmatpush3.msra.mxu1 %v6479_v54 }
 0x92d   : > { %6330 = vrot.lane.b32.xlu1 %v6310_v13, %s8732_s29  ;;  %6326 = vrot.lane.b32.xlu0 %v6309_v14, %s8733_s27 }
 0x92e   : > { %7261 = vmatprep.subr.mxu1 %v7467_v2 }
 0x92f   : > { %7262 = vmatpush3.msra.mxu1 %v6478_v59 }
 0x931   : > { %6338 = vrot.lane.b32.xlu1 %v6312_v16, %s8734_s26  ;;  %6334 = vrot.lane.b32.xlu0 %v6311_v18, %s8735_s7  ;;  %v6904_v18 = vld [vmem:[%s8646_s23] ss:$0 sm:$0xff]  ;;  %s8738_s26 = sld [smem:[#allocation26_spill]]  ;;  %s6908_s7 = sshll.u32 %s7642_s8, 7 }
 0x932   : > { %s6679_s12 = scalar_lea.hbm %s8739_s11, %s6908_s7 }
 0x950   : > { %6431 = vadd.xlane.f32.xlu0 %v6430_v40 }
 0x98c   : > { %v6315_v23 = vpop.permute.xlu1 %6314  ;;  %v6319_v49 = vpop.permute.xlu0 %6318 }
 0x98d   : > { %v6341_v50 = vsel %vm1958_vm3, %v6305_v30, %v6315_v23 }
 0x98e   : > { %v6342_v24 = vsel %vm2567_vm4, %v6341_v50, %v6319_v49 }
 0x990   : > { %v6323_v52 = vpop.permute.xlu1 %6322 }
 0x991   : > { %v6343_v25 = vsel %vm3542_vm6, %v6342_v24, %v6323_v52 }
 0x99f   : > { %v6331_v36 = vpop.permute.xlu1 %6330  ;;  %v6327_v58 = vpop.permute.xlu0 %6326 }
 0x9a0   : > { %v6344_v55 = vsel %vm926_vm1, %v6343_v25, %v6327_v58 }
 0x9a1   : > { %v6345_v60 = vsel %vm3545_vm7, %v6344_v55, %v6331_v36  ;;  %v6905_v55 = vld [vmem:[%s8737_s1] ss:$0 sm:$0xff]  ;;  %s7409_s1 = sshll.u32 %s7485_s4, 4  ;;  %s7410_s1 = int_to_ptr.vmem [resolvable:$false] %s7409_s1 }
 0x9a2   : > { %s7411_s8 = scalar_lea.vmem %s7410_s1, 256  ;;  %p7412_p0 = scmp.lt.s32.totalorder %s6682_s30, %s7410_s1 }
 0x9a3   : > { %v6339_v26 = vpop.permute.xlu1 %6338  ;;  %v6335_v34 = vpop.permute.xlu0 %6334  ;;  %p7413_p1 = scmp.lt.s32.totalorder %s7411_s8, %s7405_s6 }
 0x9a4   : > { %v6346_v38 = vsel %vm3547_vm5, %v6345_v60, %v6335_v34  ;;  %v6906_v60 = vld [vmem:[%s8738_s26] ss:$0 sm:$0xff] }
 0x9a5   : > { %v6347_v39 = vsel %vm3549_vm8, %v6346_v38, %v6339_v26  ;;  %p7414_p2 = por %p7413_p1, %p7412_p0 }
 0x9a6   : > { %7253 = vmatmul.mubr.msk.f32.vlgmr.msra.gmra.mxu0 %vm846_vm2, %v6347_v39 }
 0x9a7   : > { %7274 = vmatprep.mubr.msk.f32.mxu0 %vm7468_vm0, %v7467_v2  ;;  %7267 = vmatpush3.msra.mxu0 %v6477_v46  ;;  %p7415_p3 = pnand %p7414_p2, %p7408_p13 }
 0x9a8   : > { %7268 = vmatprep.subr.mxu0 %v7467_v2 }
 0x9a9   : > { %7269 = vmatpush3.msra.mxu0 %v6476_v47 }
 0x9aa   : > { %7270 = vmatprep.subr.mxu0 %v7467_v2 }
 0x9ab   : > { %7271 = vmatpush3.msra.mxu0 %v6475_v53 }
 0x9ac   : > { %7272 = vmatprep.subr.mxu0 %v7467_v2 }
 0x9ad   : > { %7273 = vmatpush3.msra.mxu0 %v6474_v56 }
 0x9d9   : > { %v6432_v7 = vpop.xlane.xlu0 %6431 }
 0x9da   : > { %v6434_v37 = vmul.f32 0.03125, %v6432_v7 }
 0x9dc   : > { %v6435_v30 = vsub.f32 %v6427_v22, %v6434_v37 }
 0x9de   : > { %v6436_v42 = vmul.f32 %v6435_v30, %v6435_v30 }
 0x9e0   : > { %v6437_v43 = vsel %vm846_vm2, %v6436_v42, 0.0 }
 0x9e1   : > { %6438 = vadd.xlane.f32.xlu0 %v6437_v43 }
 0xa66   : > { %v6423_v62 = vpop.f32.mrf.mxu0 }
 0xa67   : > { %v6424_v29 = vadd.f32 %v6898_v57, %v6423_v62 }
 0xa68   : > { %v7254_v31 = vpop.f32.mrf.mxu0 }
 0xa69   : > { %v6458_v35 = vadd.f32 %v7404_v20, %v6424_v29 }
 0xa6a   : > { %v6439_v41 = vpop.xlane.xlu0 %6438 }
 0xa6b   : > { %v6440_v17 = vmul.f32 0.03125, %v6439_v41  ;;  %v6459_v63 = vsel %vm846_vm2, %v6458_v35, 0.0 }
 0xa6c   : > { %6460 = vadd.xlane.f32.xlu1 %v6459_v63 }
 0xa6d   : > { %v6441_v0 = vadd.f32 1e-05, %v6440_v17 }
 0xa6f   : > { %7398 = vrsqrt.f32 %v6441_v0 }
 0xa7c   : > { %v7399_v1 = vpop.eup %7398 }
 0xa7d   : > { %v6443_v44 = vmul.f32 %v7399_v1, %v6435_v30 }
 0xa7f   : > { %v6450_v45 = vmul.f32 %v6900_v3, %v6443_v44 }
 0xa81   : > { %v6457_v48 = vadd.f32 %v6901_v11, %v6450_v45 }
 0xa83   : > { %7275 = vmatmul.mubr.msk.f32.vlgmr.msra.gmra.mxu0 %vm846_vm2, %v6457_v48 }
 0xaf5   : > { %v6461_v4 = vpop.xlane.xlu1 %6460 }
 0xaf6   : > { %v6462_v32 = vmul.f32 0.03125, %v6461_v4 }
 0xaf8   : > { %v6463_v27 = vsub.f32 %v6458_v35, %v6462_v32 }
 0xafa   : > { %v6464_v5 = vmul.f32 %v6463_v27, %v6463_v27 }
 0xafc   : > { %v6465_v61 = vsel %vm846_vm2, %v6464_v5, 0.0 }
 0xafd   : > { %6466 = vadd.xlane.f32.xlu0 %v6465_v61 }
 0xb43   : > { %v6624_v6 = vpop.f32.mrf.mxu0 }
 0xb45   : > { %v7276_v8 = vpop.f32.mrf.mxu0 }
 0xb86   : > { %v6467_v10 = vpop.xlane.xlu0 %6466 }
 0xb87   : > { %v6468_v21 = vmul.f32 0.03125, %v6467_v10 }
 0xb89   : > { %v6469_v12 = vadd.f32 1e-05, %v6468_v21 }
 0xb8b   : > { %7400 = vrsqrt.f32 %v6469_v12 }
 0xb98   : > { %v7401_v13 = vpop.eup %7400 }
 0xb99   : > { %v6471_v14 = vmul.f32 %v7401_v13, %v6463_v27 }
 0xb9b   : > { %v6472_v33 = vmul.f32 %v6900_v3, %v6471_v14 }
 0xb9d   : > { %v6473_v15 = vadd.f32 %v6901_v11, %v6472_v33 }
 0xb9f   : > { %7264 = vmatmul.mubr.msk.f32.vlgmr.msra.gmra.mxu1 %vm846_vm2, %v6473_v15 }
 0xc5f   : > { %v6551_v16 = vpop.f32.mrf.mxu1 }
 0xc60   : > { %v6625_v9 = vadd.f32 %v6624_v6, %v6551_v16 }
 0xc61   : > { %v7265_v2 = vpop.f32.mrf.mxu1 }
 0xc62   : > { %v6635_v19 = vadd.f32 %v6904_v18, %v6625_v9 }
 0xc64   : > { %v6636_v20 = vmax.f32 %v6635_v19, 0.0 }
 0xc66   : > { %v6639_v22 = vsel %vm846_vm2, %v6636_v20, 0.0 }
 0xc67   : > { %6640 = vadd.xlane.f32.xlu1 %v6639_v22 }
 0xcf0   : > { %v6641_v40 = vpop.xlane.xlu1 %6640 }
 0xcf1   : > { %v6642_v23 = vmul.f32 0.03125, %v6641_v40 }
 0xcf3   : > { %v6643_v49 = vsub.f32 %v6636_v20, %v6642_v23 }
 0xcf5   : > { %v6644_v50 = vmul.f32 %v6643_v49, %v6643_v49 }
 0xcf7   : > { %v6645_v52 = vsel %vm846_vm2, %v6644_v50, 0.0 }
 0xcf8   : > { %6646 = vadd.xlane.f32.xlu0 %v6645_v52 }
 0xd81   : > { %v6647_v24 = vpop.xlane.xlu0 %6646 }
 0xd82   : > { %v6648_v25 = vmul.f32 0.03125, %v6647_v24 }
 0xd84   : > { %v6649_v36 = vadd.f32 1e-05, %v6648_v25 }
 0xd86   : > { %7402 = vrsqrt.f32 %v6649_v36 }
 0xd93   : > { %v7403_v58 = vpop.eup %7402 }
 0xd94   : > { %v6651_v26 = vmul.f32 %v7403_v58, %v6643_v49 }
 0xd96   : > { %v6658_v34 = vmul.f32 %v6905_v55, %v6651_v26 }
 0xd98   : > { %v6665_v38 = vadd.f32 %v6906_v60, %v6658_v34 }
 0xd9a   : > { %6666 = vst.msk [vmem:[%s808_s5] sm:$0xff] %vm846_vm2, %v6665_v38 }
 0xd9b   : > { %7418 = shalt.err (!%p7415_p3)
}
 0xd9c   : > { %s7419_s9 = scalar_lea.hbm %s6679_s12, 128  ;;  %s7423_s29 = scalar_lea.hbm %s8739_s11, 256 }
 0xd9d   : > { %p7420_p4 = scmp.ne.s32.totalorder %s6679_s12, %s7419_s9  ;;  %p7424_p9 = scmp.lt.s32.totalorder %s6679_s12, %s8739_s11 }
 0xd9e   : > { %p7425_p10 = scmp.lt.s32.totalorder %s7423_s29, %s7419_s9 }
 0xd9f   : > { %p7421_p7 = pnand %p7420_p4, %p7659_p5 }
 0xda0   : > { %p7426_p11 = por %p7425_p10, %p7424_p9 }
 0xda1   : > { %p7422_p8 = pneg %p7421_p7 }
 0xda3   : > { %p7427_p12 = pnand %p7426_p11, %p7422_p8 }
 0xda5   : > { %7430 = shalt.err (!%p7427_p12)
}
 0xda6   : > { %7277 = dma.vmem_to_hbm [thread:$0]  (%p7659_p5), %s6682_s30, 128, %s6679_s12, %s6668_s13  }
 0xda7 PF: > { %s8740_s7 = sld [smem:[#allocation7_spill]] }
 0xda8   : > { %s8741_s5 = sld [smem:[#allocation5_spill]] }
 0xdad   : > { %p7283_p13 = scmp.ge.s32.totalorder %s8740_s7, 2 }
 0xdae   : > { %s6693_s6 = sand.u32 1, %s8741_s5  }
 0xdaf   : > { %p7280_p0 = pnand %p7283_p13, %p7663_p6  ;;  %s6694_s4 = scalar_lea.sflag [#allocation3], %s6693_s6 }
 0xdb1   : > { %p7281_p1 = pneg %p7280_p0 }
 0xdb3   : > { %7448 = dma.done.wait (%p7281_p1), %s6694_s4, 128  }
 0xdb4   : > { %7450 = vsyncadd (%p7281_p1), %s6694_s4, 4294967168  ;;  %s8743_s28 = sld [smem:[#allocation8_spill]]  ;;  %s8746_s27 = smov %s7457_s3 }
 0xdb5   : > { %s8744_s1 = sld [smem:[#allocation6_spill]] }
 0xdb6   : > { %s8745_s7 = sld [smem:[#allocation9_spill]] }
 0xdba   : > { %p36_p2 = scmp.ge.s32.totalorder %s8743_s28, 4  }
 0xdbb   : > { %s8747_s3 = smov %s8744_s1 }
 0xdbc   :  { %38 = sbr.rel (!%p36_p2) target bundleno = 21 (0x15), region = 165 }
 0xdc1   :  { %6699 = vsyncpa [#allocation3], 1 }
 0xdc2   :  { %6701 = vsyncpa [#allocation3 + $0x1], 1 }

</bundles_post_ra>
